<compile_context>
chip_gen: v5e
topology: v5e:2x2
jax: 0.10.0
libtpu: 0.0.40
codegen_flags: <defaults>
</compile_context>

<pallas_src>
import math

import jax
import jax.numpy as jnp
from jax.experimental import pallas as pl
from jax.experimental.pallas import tpu as pltpu

# ----------------------------- config ---------------------------------------
VOCAB_SIZE  = 50
EMB_DIM     = 128          # D (lane-aligned)
NUM_HEADS   = 4
HEAD_DIM    = EMB_DIM // NUM_HEADS
FORWARD_DIM = 256          # FFN hidden size
NUM_LAYERS  = 2
MAX_LEN     = 16
BATCH       = 2
SEQ         = 8            # sublane-aligned
LN_EPS      = 1e-5


# --------------------------- Pallas kernel ----------------------------------
def _layernorm(x, gamma, beta):
    mu  = jnp.mean(x, axis=-1, keepdims=True)
    var = jnp.mean((x - mu) ** 2, axis=-1, keepdims=True)
    return (x - mu) * jax.lax.rsqrt(var + LN_EPS) * gamma + beta


def _bf16(x):
    return x.astype(jnp.bfloat16)


def encoder_stack_kernel(
    x_ref,                 # [B*S, D]      f32
    wqkv_ref, bqkv_ref,    # [L, D, 3D] bf16, [L, 1, 3D] f32   (fused Q|K|V)
    wo_ref,   bo_ref,      # [L, D, D]  bf16, [L, 1, D]  f32
    g1_ref,   be1_ref,     # [L, 1, D]  f32   (LayerNorm 1)
    w1_ref,   b1_ref,      # [L, D, F]  bf16, [L, 1, F]  f32
    w2_ref,   b2_ref,      # [L, F, D]  bf16, [L, 1, D]  f32
    g2_ref,   be2_ref,     # [L, 1, D]  f32   (LayerNorm 2)
    out_ref,               # [B*S, D]      f32
):
    x = x_ref[...]                                   # [B*S, D] f32, stays in VMEM
    scale = 1.0 / math.sqrt(HEAD_DIM)

    for l in range(NUM_LAYERS):                      # static unroll over layers
        wqkv = wqkv_ref[l]                           # [D, 3D] bf16
        bqkv = bqkv_ref[l]                           # [1, 3D] f32
        wo   = wo_ref[l]                             # [D, D]  bf16
        bo   = bo_ref[l]                             # [1, D]  f32

        # --- fused QKV projection: one MXU push with N = 3D = 384 ---
        qkv = jnp.dot(_bf16(x), wqkv,
                      preferred_element_type=jnp.float32) + bqkv   # [B*S, 3D] f32
        q = _bf16(qkv[:, 0 * EMB_DIM:1 * EMB_DIM])                 # 128-lane slices
        k = _bf16(qkv[:, 1 * EMB_DIM:2 * EMB_DIM])
        v = _bf16(qkv[:, 2 * EMB_DIM:3 * EMB_DIM])

        # --- multi-head self attention, per-batch (no cross-batch attention) ---
        attn_rows = []
        for b in range(BATCH):                       # static unroll, sublane slices
            r0 = b * SEQ
            qb, kb, vb = q[r0:r0 + SEQ], k[r0:r0 + SEQ], v[r0:r0 + SEQ]
            acc = jnp.zeros((SEQ, EMB_DIM), jnp.float32)
            for h in range(NUM_HEADS):               # static unroll over heads
                c0 = h * HEAD_DIM
                qh = qb[:, c0:c0 + HEAD_DIM]         # [S, hd] bf16
                kh = kb[:, c0:c0 + HEAD_DIM]
                vh = vb[:, c0:c0 + HEAD_DIM]
                # scores[i, j] = <q_i, k_j> / sqrt(head_dim)
                s = jax.lax.dot_general(
                    qh, kh, (((1,), (1,)), ((), ())),
                    preferred_element_type=jnp.float32) * scale    # [S, S] f32
                p = jax.nn.softmax(s, axis=-1)                      # f32
                ctx = jnp.dot(_bf16(p), vh,
                              preferred_element_type=jnp.float32)   # [S, hd] f32
                # accumulate directly against Wo's head-slice -> lane-dense [S, D]
                acc = acc + jnp.dot(_bf16(ctx), wo[c0:c0 + HEAD_DIM, :],
                                    preferred_element_type=jnp.float32)
            attn_rows.append(acc)
        attn = jnp.concatenate(attn_rows, axis=0) + bo              # sublane concat

        # --- residual + LayerNorm 1 (f32) ---
        h1 = _layernorm(x + attn, g1_ref[l], be1_ref[l])

        # --- feed-forward (bf16 matmuls, f32 accum) ---
        f = jnp.dot(_bf16(h1), w1_ref[l],
                    preferred_element_type=jnp.float32) + b1_ref[l]
        f = jnp.maximum(f, 0.0)
        f = jnp.dot(_bf16(f), w2_ref[l],
                    preferred_element_type=jnp.float32) + b2_ref[l]

        # --- residual + LayerNorm 2 (f32) ---
        x = _layernorm(h1 + f, g2_ref[l], be2_ref[l])

    out_ref[...] = x


def run_encoder_stack(x2d, stacked_params):
    """x2d: [B*S, D] f32; stacked_params: tuple of 12 layer-stacked weights."""
    n_inputs = 1 + len(stacked_params)
    vmem_spec = pl.BlockSpec(memory_space=pltpu.MemorySpace.VMEM)
    return pl.pallas_call(
        encoder_stack_kernel,
        out_shape=jax.ShapeDtypeStruct(x2d.shape, jnp.float32),
        in_specs=[vmem_spec] * n_inputs,
        out_specs=vmem_spec,
    )(x2d, *stacked_params)


# ------------------------ parameter construction ----------------------------
def sinusoid_table(max_len, emb_dim):
    pos = jnp.arange(max_len, dtype=jnp.float32)[:, None]           # [L, 1]
    i   = jnp.arange(emb_dim, dtype=jnp.float32)[None, :]           # [1, D]
    angle = pos / jnp.power(10000.0, 2.0 * jnp.floor(i / 2.0) / emb_dim)
    return jnp.where((jnp.arange(emb_dim) % 2 == 0)[None, :],
                     jnp.sin(angle), jnp.cos(angle))                 # [L, D]


def init_params(key):
    def nrm(k, shape, scale=0.02):
        return (scale * jax.random.normal(k, shape)).astype(jnp.float32)

    k_emb, k_layers = jax.random.split(key)
    emb_table = nrm(k_emb, (VOCAB_SIZE, EMB_DIM), scale=1.0)

    D, F = EMB_DIM, FORWARD_DIM
    wqkv, bqkv, wo, bo = [], [], [], []
    g1, be1, w1, b1, w2, b2, g2, be2 = [], [], [], [], [], [], [], []

    for l in range(NUM_LAYERS):
        kl = jax.random.fold_in(k_layers, l)
        ks = jax.random.split(kl, 6)
        wq, wk, wv = nrm(ks[0], (D, D)), nrm(ks[1], (D, D)), nrm(ks[2], (D, D))
        wqkv.append(jnp.concatenate([wq, wk, wv], axis=1))           # [D, 3D]
        bqkv.append(jnp.zeros((1, 3 * D), jnp.float32))
        wo.append(nrm(ks[3], (D, D)))
        bo.append(jnp.zeros((1, D), jnp.float32))
        g1.append(jnp.ones((1, D), jnp.float32))
        be1.append(jnp.zeros((1, D), jnp.float32))
        w1.append(nrm(ks[4], (D, F)))
        b1.append(jnp.zeros((1, F), jnp.float32))
        w2.append(nrm(ks[5], (F, D)))
        b2.append(jnp.zeros((1, D), jnp.float32))
        g2.append(jnp.ones((1, D), jnp.float32))
        be2.append(jnp.zeros((1, D), jnp.float32))

    sb = lambda xs: jnp.stack(xs).astype(jnp.bfloat16)   # matmul weights -> bf16
    sf = lambda xs: jnp.stack(xs).astype(jnp.float32)    # biases / LN params -> f32
    stacked = (
        sb(wqkv), sf(bqkv),
        sb(wo),   sf(bo),
        sf(g1),   sf(be1),
        sb(w1),   sf(b1),
        sb(w2),   sf(b2),
        sf(g2),   sf(be2),
    )
    return emb_table, stacked


# ------------------------------ encoder -------------------------------------
def encoder_forward(token_ids, emb_table, pos_table, stacked_params):
    """token_ids: [B, S] int32 -> [B, S, D] float32."""
    B, S = token_ids.shape
    # embedding gather + sinusoidal positional add kept in XLA (glue, tiny).
    tok = jnp.take(emb_table, token_ids, axis=0)                     # [B, S, D]
    pos = pos_table[:S][None, :, :]                                  # [1, S, D]
    x = (tok + pos).astype(jnp.float32)                              # dropout: identity (eval)
    x2d = x.reshape(B * S, EMB_DIM)                                  # [16, 128] slab
    y2d = run_encoder_stack(x2d, stacked_params)
    return y2d.reshape(B, S, EMB_DIM)


if __name__ == "__main__":
    key = jax.random.PRNGKey(0)
    k_params, k_ids = jax.random.split(key)

    emb_table, stacked_params = init_params(k_params)
    pos_table = sinusoid_table(MAX_LEN, EMB_DIM)

    token_ids = jax.random.randint(k_ids, (BATCH, SEQ), 0, VOCAB_SIZE, dtype=jnp.int32)

    out = encoder_forward(token_ids, emb_table, pos_table, stacked_params)
    out = jax.block_until_ready(out)

    assert out.shape == (BATCH, SEQ, EMB_DIM)
    assert jnp.all(jnp.isfinite(out))
    print("KERNEL_OK")
</pallas_src>

<mosaic_0001>
module attributes {stable_mosaic.version = 11 : i64} {
  func.func @encoder_stack_kernel(%arg0: memref<16x128xf32, #tpu.memory_space<vmem>>, %arg1: memref<2x128x384xbf16, #tpu.memory_space<vmem>>, %arg2: memref<2x1x384xf32, #tpu.memory_space<vmem>>, %arg3: memref<2x128x128xbf16, #tpu.memory_space<vmem>>, %arg4: memref<2x1x128xf32, #tpu.memory_space<vmem>>, %arg5: memref<2x1x128xf32, #tpu.memory_space<vmem>>, %arg6: memref<2x1x128xf32, #tpu.memory_space<vmem>>, %arg7: memref<2x128x256xbf16, #tpu.memory_space<vmem>>, %arg8: memref<2x1x256xf32, #tpu.memory_space<vmem>>, %arg9: memref<2x256x128xbf16, #tpu.memory_space<vmem>>, %arg10: memref<2x1x128xf32, #tpu.memory_space<vmem>>, %arg11: memref<2x1x128xf32, #tpu.memory_space<vmem>>, %arg12: memref<2x1x128xf32, #tpu.memory_space<vmem>>, %arg13: memref<16x128xf32, #tpu.memory_space<vmem>>) attributes {dimension_semantics = [], scalar_prefetch = 0 : i64, scratch_operands = 0 : i64, tpu.core_type = #tpu.core_type<tc>} {
    %c0 = arith.constant 0 : index
    %c0_0 = arith.constant 0 : index
    %0 = vector.load %arg0[%c0, %c0_0] : memref<16x128xf32, #tpu.memory_space<vmem>>, vector<16x128xf32>
    %c0_1 = arith.constant 0 : index
    %c0_2 = arith.constant 0 : index
    %c0_3 = arith.constant 0 : index
    %1 = vector.load %arg1[%c0_1, %c0_2, %c0_3] : memref<2x128x384xbf16, #tpu.memory_space<vmem>>, vector<1x128x384xbf16>
    %2 = vector.shape_cast %1 : vector<1x128x384xbf16> to vector<128x384xbf16>
    %c0_4 = arith.constant 0 : index
    %c0_5 = arith.constant 0 : index
    %c0_6 = arith.constant 0 : index
    %3 = vector.load %arg2[%c0_4, %c0_5, %c0_6] : memref<2x1x384xf32, #tpu.memory_space<vmem>>, vector<1x1x384xf32>
    %4 = vector.shape_cast %3 : vector<1x1x384xf32> to vector<1x384xf32>
    %c0_7 = arith.constant 0 : index
    %c0_8 = arith.constant 0 : index
    %c0_9 = arith.constant 0 : index
    %5 = vector.load %arg3[%c0_7, %c0_8, %c0_9] : memref<2x128x128xbf16, #tpu.memory_space<vmem>>, vector<1x128x128xbf16>
    %6 = vector.shape_cast %5 : vector<1x128x128xbf16> to vector<128x128xbf16>
    %c0_10 = arith.constant 0 : index
    %c0_11 = arith.constant 0 : index
    %c0_12 = arith.constant 0 : index
    %7 = vector.load %arg4[%c0_10, %c0_11, %c0_12] : memref<2x1x128xf32, #tpu.memory_space<vmem>>, vector<1x1x128xf32>
    %8 = vector.shape_cast %7 : vector<1x1x128xf32> to vector<1x128xf32>
    %9 = arith.truncf %0 : vector<16x128xf32> to vector<16x128xbf16>
    %cst = arith.constant dense<0.000000e+00> : vector<16x384xf32>
    %10 = tpu.matmul %9, %2, %cst {dimension_numbers = #tpu.dot_dimension_numbers<[1], [0], [0], [1], [0, 0, 1, 1], [], []>} : vector<16x128xbf16>, vector<128x384xbf16>, vector<16x384xf32> -> vector<16x384xf32>
    %11 = vector.broadcast %4 : vector<1x384xf32> to vector<16x384xf32>
    %12 = arith.addf %10, %11 : vector<16x384xf32>
    %13 = vector.extract_strided_slice %12 {offsets = [0, 0], sizes = [16, 128], strides = [1, 1]} : vector<16x384xf32> to vector<16x128xf32>
    %14 = arith.truncf %13 : vector<16x128xf32> to vector<16x128xbf16>
    %15 = vector.extract_strided_slice %12 {offsets = [0, 128], sizes = [16, 128], strides = [1, 1]} : vector<16x384xf32> to vector<16x128xf32>
    %16 = arith.truncf %15 : vector<16x128xf32> to vector<16x128xbf16>
    %17 = vector.extract_strided_slice %12 {offsets = [0, 256], sizes = [16, 128], strides = [1, 1]} : vector<16x384xf32> to vector<16x128xf32>
    %18 = arith.truncf %17 : vector<16x128xf32> to vector<16x128xbf16>
    %19 = vector.extract_strided_slice %14 {offsets = [0, 0], sizes = [8, 128], strides = [1, 1]} : vector<16x128xbf16> to vector<8x128xbf16>
    %20 = vector.extract_strided_slice %16 {offsets = [0, 0], sizes = [8, 128], strides = [1, 1]} : vector<16x128xbf16> to vector<8x128xbf16>
    %21 = vector.extract_strided_slice %18 {offsets = [0, 0], sizes = [8, 128], strides = [1, 1]} : vector<16x128xbf16> to vector<8x128xbf16>
    %cst_13 = arith.constant 0.000000e+00 : f32
    %22 = vector.broadcast %cst_13 : f32 to vector<8x128xf32>
    %23 = vector.extract_strided_slice %19 {offsets = [0, 0], sizes = [8, 32], strides = [1, 1]} : vector<8x128xbf16> to vector<8x32xbf16>
    %24 = vector.extract_strided_slice %20 {offsets = [0, 0], sizes = [8, 32], strides = [1, 1]} : vector<8x128xbf16> to vector<8x32xbf16>
    %25 = vector.extract_strided_slice %21 {offsets = [0, 0], sizes = [8, 32], strides = [1, 1]} : vector<8x128xbf16> to vector<8x32xbf16>
    %cst_14 = arith.constant dense<0.000000e+00> : vector<8x8xf32>
    %26 = tpu.matmul %23, %24, %cst_14 {dimension_numbers = #tpu.dot_dimension_numbers<[1], [1], [0], [0], [0, 0, 1, 0], [], []>} : vector<8x32xbf16>, vector<8x32xbf16>, vector<8x8xf32> -> vector<8x8xf32>
    %cst_15 = arith.constant 0.176776692 : f32
    %27 = vector.broadcast %cst_15 : f32 to vector<8x8xf32>
    %28 = arith.mulf %26, %27 : vector<8x8xf32>
    %cst_16 = arith.constant dense<0xFF800000> : vector<8xf32>
    %29 = vector.multi_reduction <maximumf>, %28, %cst_16 [1] : vector<8x8xf32> to vector<8xf32>
    %cst_17 = arith.constant 0xFF800000 : f32
    %30 = vector.broadcast %cst_17 : f32 to vector<8xf32>
    %31 = arith.maximumf %30, %29 : vector<8xf32>
    %32 = vector.shape_cast %31 : vector<8xf32> to vector<8x1xf32>
    %33 = vector.broadcast %32 : vector<8x1xf32> to vector<8x8xf32>
    %34 = arith.subf %28, %33 : vector<8x8xf32>
    %35 = math.exp %34 : vector<8x8xf32>
    %cst_18 = arith.constant dense<0.000000e+00> : vector<8xf32>
    %36 = vector.multi_reduction <add>, %35, %cst_18 [1] : vector<8x8xf32> to vector<8xf32>
    %37 = vector.shape_cast %36 : vector<8xf32> to vector<8x1xf32>
    %38 = vector.broadcast %37 : vector<8x1xf32> to vector<8x8xf32>
    %39 = arith.divf %35, %38 : vector<8x8xf32>
    %40 = arith.truncf %39 : vector<8x8xf32> to vector<8x8xbf16>
    %cst_19 = arith.constant dense<0.000000e+00> : vector<8x32xf32>
    %41 = tpu.matmul %40, %25, %cst_19 {dimension_numbers = #tpu.dot_dimension_numbers<[1], [0], [0], [1], [0, 0, 1, 1], [], []>} : vector<8x8xbf16>, vector<8x32xbf16>, vector<8x32xf32> -> vector<8x32xf32>
    %42 = arith.truncf %41 : vector<8x32xf32> to vector<8x32xbf16>
    %43 = vector.extract_strided_slice %6 {offsets = [0, 0], sizes = [32, 128], strides = [1, 1]} : vector<128x128xbf16> to vector<32x128xbf16>
    %cst_20 = arith.constant dense<0.000000e+00> : vector<8x128xf32>
    %44 = tpu.matmul %42, %43, %cst_20 {dimension_numbers = #tpu.dot_dimension_numbers<[1], [0], [0], [1], [0, 0, 1, 1], [], []>} : vector<8x32xbf16>, vector<32x128xbf16>, vector<8x128xf32> -> vector<8x128xf32>
    %45 = arith.addf %22, %44 : vector<8x128xf32>
    %46 = vector.extract_strided_slice %19 {offsets = [0, 32], sizes = [8, 32], strides = [1, 1]} : vector<8x128xbf16> to vector<8x32xbf16>
    %47 = vector.extract_strided_slice %20 {offsets = [0, 32], sizes = [8, 32], strides = [1, 1]} : vector<8x128xbf16> to vector<8x32xbf16>
    %48 = vector.extract_strided_slice %21 {offsets = [0, 32], sizes = [8, 32], strides = [1, 1]} : vector<8x128xbf16> to vector<8x32xbf16>
    %cst_21 = arith.constant dense<0.000000e+00> : vector<8x8xf32>
    %49 = tpu.matmul %46, %47, %cst_21 {dimension_numbers = #tpu.dot_dimension_numbers<[1], [1], [0], [0], [0, 0, 1, 0], [], []>} : vector<8x32xbf16>, vector<8x32xbf16>, vector<8x8xf32> -> vector<8x8xf32>
    %cst_22 = arith.constant 0.176776692 : f32
    %50 = vector.broadcast %cst_22 : f32 to vector<8x8xf32>
    %51 = arith.mulf %49, %50 : vector<8x8xf32>
    %cst_23 = arith.constant dense<0xFF800000> : vector<8xf32>
    %52 = vector.multi_reduction <maximumf>, %51, %cst_23 [1] : vector<8x8xf32> to vector<8xf32>
    %cst_24 = arith.constant 0xFF800000 : f32
    %53 = vector.broadcast %cst_24 : f32 to vector<8xf32>
    %54 = arith.maximumf %53, %52 : vector<8xf32>
    %55 = vector.shape_cast %54 : vector<8xf32> to vector<8x1xf32>
    %56 = vector.broadcast %55 : vector<8x1xf32> to vector<8x8xf32>
    %57 = arith.subf %51, %56 : vector<8x8xf32>
    %58 = math.exp %57 : vector<8x8xf32>
    %cst_25 = arith.constant dense<0.000000e+00> : vector<8xf32>
    %59 = vector.multi_reduction <add>, %58, %cst_25 [1] : vector<8x8xf32> to vector<8xf32>
    %60 = vector.shape_cast %59 : vector<8xf32> to vector<8x1xf32>
    %61 = vector.broadcast %60 : vector<8x1xf32> to vector<8x8xf32>
    %62 = arith.divf %58, %61 : vector<8x8xf32>
    %63 = arith.truncf %62 : vector<8x8xf32> to vector<8x8xbf16>
    %cst_26 = arith.constant dense<0.000000e+00> : vector<8x32xf32>
    %64 = tpu.matmul %63, %48, %cst_26 {dimension_numbers = #tpu.dot_dimension_numbers<[1], [0], [0], [1], [0, 0, 1, 1], [], []>} : vector<8x8xbf16>, vector<8x32xbf16>, vector<8x32xf32> -> vector<8x32xf32>
    %65 = arith.truncf %64 : vector<8x32xf32> to vector<8x32xbf16>
    %66 = vector.extract_strided_slice %6 {offsets = [32, 0], sizes = [32, 128], strides = [1, 1]} : vector<128x128xbf16> to vector<32x128xbf16>
    %cst_27 = arith.constant dense<0.000000e+00> : vector<8x128xf32>
    %67 = tpu.matmul %65, %66, %cst_27 {dimension_numbers = #tpu.dot_dimension_numbers<[1], [0], [0], [1], [0, 0, 1, 1], [], []>} : vector<8x32xbf16>, vector<32x128xbf16>, vector<8x128xf32> -> vector<8x128xf32>
    %68 = arith.addf %45, %67 : vector<8x128xf32>
    %69 = vector.extract_strided_slice %19 {offsets = [0, 64], sizes = [8, 32], strides = [1, 1]} : vector<8x128xbf16> to vector<8x32xbf16>
    %70 = vector.extract_strided_slice %20 {offsets = [0, 64], sizes = [8, 32], strides = [1, 1]} : vector<8x128xbf16> to vector<8x32xbf16>
    %71 = vector.extract_strided_slice %21 {offsets = [0, 64], sizes = [8, 32], strides = [1, 1]} : vector<8x128xbf16> to vector<8x32xbf16>
    %cst_28 = arith.constant dense<0.000000e+00> : vector<8x8xf32>
    %72 = tpu.matmul %69, %70, %cst_28 {dimension_numbers = #tpu.dot_dimension_numbers<[1], [1], [0], [0], [0, 0, 1, 0], [], []>} : vector<8x32xbf16>, vector<8x32xbf16>, vector<8x8xf32> -> vector<8x8xf32>
    %cst_29 = arith.constant 0.176776692 : f32
    %73 = vector.broadcast %cst_29 : f32 to vector<8x8xf32>
    %74 = arith.mulf %72, %73 : vector<8x8xf32>
    %cst_30 = arith.constant dense<0xFF800000> : vector<8xf32>
    %75 = vector.multi_reduction <maximumf>, %74, %cst_30 [1] : vector<8x8xf32> to vector<8xf32>
    %cst_31 = arith.constant 0xFF800000 : f32
    %76 = vector.broadcast %cst_31 : f32 to vector<8xf32>
    %77 = arith.maximumf %76, %75 : vector<8xf32>
    %78 = vector.shape_cast %77 : vector<8xf32> to vector<8x1xf32>
    %79 = vector.broadcast %78 : vector<8x1xf32> to vector<8x8xf32>
    %80 = arith.subf %74, %79 : vector<8x8xf32>
    %81 = math.exp %80 : vector<8x8xf32>
    %cst_32 = arith.constant dense<0.000000e+00> : vector<8xf32>
    %82 = vector.multi_reduction <add>, %81, %cst_32 [1] : vector<8x8xf32> to vector<8xf32>
    %83 = vector.shape_cast %82 : vector<8xf32> to vector<8x1xf32>
    %84 = vector.broadcast %83 : vector<8x1xf32> to vector<8x8xf32>
    %85 = arith.divf %81, %84 : vector<8x8xf32>
    %86 = arith.truncf %85 : vector<8x8xf32> to vector<8x8xbf16>
    %cst_33 = arith.constant dense<0.000000e+00> : vector<8x32xf32>
    %87 = tpu.matmul %86, %71, %cst_33 {dimension_numbers = #tpu.dot_dimension_numbers<[1], [0], [0], [1], [0, 0, 1, 1], [], []>} : vector<8x8xbf16>, vector<8x32xbf16>, vector<8x32xf32> -> vector<8x32xf32>
    %88 = arith.truncf %87 : vector<8x32xf32> to vector<8x32xbf16>
    %89 = vector.extract_strided_slice %6 {offsets = [64, 0], sizes = [32, 128], strides = [1, 1]} : vector<128x128xbf16> to vector<32x128xbf16>
    %cst_34 = arith.constant dense<0.000000e+00> : vector<8x128xf32>
    %90 = tpu.matmul %88, %89, %cst_34 {dimension_numbers = #tpu.dot_dimension_numbers<[1], [0], [0], [1], [0, 0, 1, 1], [], []>} : vector<8x32xbf16>, vector<32x128xbf16>, vector<8x128xf32> -> vector<8x128xf32>
    %91 = arith.addf %68, %90 : vector<8x128xf32>
    %92 = vector.extract_strided_slice %19 {offsets = [0, 96], sizes = [8, 32], strides = [1, 1]} : vector<8x128xbf16> to vector<8x32xbf16>
    %93 = vector.extract_strided_slice %20 {offsets = [0, 96], sizes = [8, 32], strides = [1, 1]} : vector<8x128xbf16> to vector<8x32xbf16>
    %94 = vector.extract_strided_slice %21 {offsets = [0, 96], sizes = [8, 32], strides = [1, 1]} : vector<8x128xbf16> to vector<8x32xbf16>
    %cst_35 = arith.constant dense<0.000000e+00> : vector<8x8xf32>
    %95 = tpu.matmul %92, %93, %cst_35 {dimension_numbers = #tpu.dot_dimension_numbers<[1], [1], [0], [0], [0, 0, 1, 0], [], []>} : vector<8x32xbf16>, vector<8x32xbf16>, vector<8x8xf32> -> vector<8x8xf32>
    %cst_36 = arith.constant 0.176776692 : f32
    %96 = vector.broadcast %cst_36 : f32 to vector<8x8xf32>
    %97 = arith.mulf %95, %96 : vector<8x8xf32>
    %cst_37 = arith.constant dense<0xFF800000> : vector<8xf32>
    %98 = vector.multi_reduction <maximumf>, %97, %cst_37 [1] : vector<8x8xf32> to vector<8xf32>
    %cst_38 = arith.constant 0xFF800000 : f32
    %99 = vector.broadcast %cst_38 : f32 to vector<8xf32>
    %100 = arith.maximumf %99, %98 : vector<8xf32>
    %101 = vector.shape_cast %100 : vector<8xf32> to vector<8x1xf32>
    %102 = vector.broadcast %101 : vector<8x1xf32> to vector<8x8xf32>
    %103 = arith.subf %97, %102 : vector<8x8xf32>
    %104 = math.exp %103 : vector<8x8xf32>
    %cst_39 = arith.constant dense<0.000000e+00> : vector<8xf32>
    %105 = vector.multi_reduction <add>, %104, %cst_39 [1] : vector<8x8xf32> to vector<8xf32>
    %106 = vector.shape_cast %105 : vector<8xf32> to vector<8x1xf32>
    %107 = vector.broadcast %106 : vector<8x1xf32> to vector<8x8xf32>
    %108 = arith.divf %104, %107 : vector<8x8xf32>
    %109 = arith.truncf %108 : vector<8x8xf32> to vector<8x8xbf16>
    %cst_40 = arith.constant dense<0.000000e+00> : vector<8x32xf32>
    %110 = tpu.matmul %109, %94, %cst_40 {dimension_numbers = #tpu.dot_dimension_numbers<[1], [0], [0], [1], [0, 0, 1, 1], [], []>} : vector<8x8xbf16>, vector<8x32xbf16>, vector<8x32xf32> -> vector<8x32xf32>
    %111 = arith.truncf %110 : vector<8x32xf32> to vector<8x32xbf16>
    %112 = vector.extract_strided_slice %6 {offsets = [96, 0], sizes = [32, 128], strides = [1, 1]} : vector<128x128xbf16> to vector<32x128xbf16>
    %cst_41 = arith.constant dense<0.000000e+00> : vector<8x128xf32>
    %113 = tpu.matmul %111, %112, %cst_41 {dimension_numbers = #tpu.dot_dimension_numbers<[1], [0], [0], [1], [0, 0, 1, 1], [], []>} : vector<8x32xbf16>, vector<32x128xbf16>, vector<8x128xf32> -> vector<8x128xf32>
    %114 = arith.addf %91, %113 : vector<8x128xf32>
    %115 = vector.extract_strided_slice %14 {offsets = [8, 0], sizes = [8, 128], strides = [1, 1]} : vector<16x128xbf16> to vector<8x128xbf16>
    %116 = vector.extract_strided_slice %16 {offsets = [8, 0], sizes = [8, 128], strides = [1, 1]} : vector<16x128xbf16> to vector<8x128xbf16>
    %117 = vector.extract_strided_slice %18 {offsets = [8, 0], sizes = [8, 128], strides = [1, 1]} : vector<16x128xbf16> to vector<8x128xbf16>
    %cst_42 = arith.constant 0.000000e+00 : f32
    %118 = vector.broadcast %cst_42 : f32 to vector<8x128xf32>
    %119 = vector.extract_strided_slice %115 {offsets = [0, 0], sizes = [8, 32], strides = [1, 1]} : vector<8x128xbf16> to vector<8x32xbf16>
    %120 = vector.extract_strided_slice %116 {offsets = [0, 0], sizes = [8, 32], strides = [1, 1]} : vector<8x128xbf16> to vector<8x32xbf16>
    %121 = vector.extract_strided_slice %117 {offsets = [0, 0], sizes = [8, 32], strides = [1, 1]} : vector<8x128xbf16> to vector<8x32xbf16>
    %cst_43 = arith.constant dense<0.000000e+00> : vector<8x8xf32>
    %122 = tpu.matmul %119, %120, %cst_43 {dimension_numbers = #tpu.dot_dimension_numbers<[1], [1], [0], [0], [0, 0, 1, 0], [], []>} : vector<8x32xbf16>, vector<8x32xbf16>, vector<8x8xf32> -> vector<8x8xf32>
    %cst_44 = arith.constant 0.176776692 : f32
    %123 = vector.broadcast %cst_44 : f32 to vector<8x8xf32>
    %124 = arith.mulf %122, %123 : vector<8x8xf32>
    %cst_45 = arith.constant dense<0xFF800000> : vector<8xf32>
    %125 = vector.multi_reduction <maximumf>, %124, %cst_45 [1] : vector<8x8xf32> to vector<8xf32>
    %cst_46 = arith.constant 0xFF800000 : f32
    %126 = vector.broadcast %cst_46 : f32 to vector<8xf32>
    %127 = arith.maximumf %126, %125 : vector<8xf32>
    %128 = vector.shape_cast %127 : vector<8xf32> to vector<8x1xf32>
    %129 = vector.broadcast %128 : vector<8x1xf32> to vector<8x8xf32>
    %130 = arith.subf %124, %129 : vector<8x8xf32>
    %131 = math.exp %130 : vector<8x8xf32>
    %cst_47 = arith.constant dense<0.000000e+00> : vector<8xf32>
    %132 = vector.multi_reduction <add>, %131, %cst_47 [1] : vector<8x8xf32> to vector<8xf32>
    %133 = vector.shape_cast %132 : vector<8xf32> to vector<8x1xf32>
    %134 = vector.broadcast %133 : vector<8x1xf32> to vector<8x8xf32>
    %135 = arith.divf %131, %134 : vector<8x8xf32>
    %136 = arith.truncf %135 : vector<8x8xf32> to vector<8x8xbf16>
    %cst_48 = arith.constant dense<0.000000e+00> : vector<8x32xf32>
    %137 = tpu.matmul %136, %121, %cst_48 {dimension_numbers = #tpu.dot_dimension_numbers<[1], [0], [0], [1], [0, 0, 1, 1], [], []>} : vector<8x8xbf16>, vector<8x32xbf16>, vector<8x32xf32> -> vector<8x32xf32>
    %138 = arith.truncf %137 : vector<8x32xf32> to vector<8x32xbf16>
    %139 = vector.extract_strided_slice %6 {offsets = [0, 0], sizes = [32, 128], strides = [1, 1]} : vector<128x128xbf16> to vector<32x128xbf16>
    %cst_49 = arith.constant dense<0.000000e+00> : vector<8x128xf32>
    %140 = tpu.matmul %138, %139, %cst_49 {dimension_numbers = #tpu.dot_dimension_numbers<[1], [0], [0], [1], [0, 0, 1, 1], [], []>} : vector<8x32xbf16>, vector<32x128xbf16>, vector<8x128xf32> -> vector<8x128xf32>
    %141 = arith.addf %118, %140 : vector<8x128xf32>
    %142 = vector.extract_strided_slice %115 {offsets = [0, 32], sizes = [8, 32], strides = [1, 1]} : vector<8x128xbf16> to vector<8x32xbf16>
    %143 = vector.extract_strided_slice %116 {offsets = [0, 32], sizes = [8, 32], strides = [1, 1]} : vector<8x128xbf16> to vector<8x32xbf16>
    %144 = vector.extract_strided_slice %117 {offsets = [0, 32], sizes = [8, 32], strides = [1, 1]} : vector<8x128xbf16> to vector<8x32xbf16>
    %cst_50 = arith.constant dense<0.000000e+00> : vector<8x8xf32>
    %145 = tpu.matmul %142, %143, %cst_50 {dimension_numbers = #tpu.dot_dimension_numbers<[1], [1], [0], [0], [0, 0, 1, 0], [], []>} : vector<8x32xbf16>, vector<8x32xbf16>, vector<8x8xf32> -> vector<8x8xf32>
    %cst_51 = arith.constant 0.176776692 : f32
    %146 = vector.broadcast %cst_51 : f32 to vector<8x8xf32>
    %147 = arith.mulf %145, %146 : vector<8x8xf32>
    %cst_52 = arith.constant dense<0xFF800000> : vector<8xf32>
    %148 = vector.multi_reduction <maximumf>, %147, %cst_52 [1] : vector<8x8xf32> to vector<8xf32>
    %cst_53 = arith.constant 0xFF800000 : f32
    %149 = vector.broadcast %cst_53 : f32 to vector<8xf32>
    %150 = arith.maximumf %149, %148 : vector<8xf32>
    %151 = vector.shape_cast %150 : vector<8xf32> to vector<8x1xf32>
    %152 = vector.broadcast %151 : vector<8x1xf32> to vector<8x8xf32>
    %153 = arith.subf %147, %152 : vector<8x8xf32>
    %154 = math.exp %153 : vector<8x8xf32>
    %cst_54 = arith.constant dense<0.000000e+00> : vector<8xf32>
    %155 = vector.multi_reduction <add>, %154, %cst_54 [1] : vector<8x8xf32> to vector<8xf32>
    %156 = vector.shape_cast %155 : vector<8xf32> to vector<8x1xf32>
    %157 = vector.broadcast %156 : vector<8x1xf32> to vector<8x8xf32>
    %158 = arith.divf %154, %157 : vector<8x8xf32>
    %159 = arith.truncf %158 : vector<8x8xf32> to vector<8x8xbf16>
    %cst_55 = arith.constant dense<0.000000e+00> : vector<8x32xf32>
    %160 = tpu.matmul %159, %144, %cst_55 {dimension_numbers = #tpu.dot_dimension_numbers<[1], [0], [0], [1], [0, 0, 1, 1], [], []>} : vector<8x8xbf16>, vector<8x32xbf16>, vector<8x32xf32> -> vector<8x32xf32>
    %161 = arith.truncf %160 : vector<8x32xf32> to vector<8x32xbf16>
    %162 = vector.extract_strided_slice %6 {offsets = [32, 0], sizes = [32, 128], strides = [1, 1]} : vector<128x128xbf16> to vector<32x128xbf16>
    %cst_56 = arith.constant dense<0.000000e+00> : vector<8x128xf32>
    %163 = tpu.matmul %161, %162, %cst_56 {dimension_numbers = #tpu.dot_dimension_numbers<[1], [0], [0], [1], [0, 0, 1, 1], [], []>} : vector<8x32xbf16>, vector<32x128xbf16>, vector<8x128xf32> -> vector<8x128xf32>
    %164 = arith.addf %141, %163 : vector<8x128xf32>
    %165 = vector.extract_strided_slice %115 {offsets = [0, 64], sizes = [8, 32], strides = [1, 1]} : vector<8x128xbf16> to vector<8x32xbf16>
    %166 = vector.extract_strided_slice %116 {offsets = [0, 64], sizes = [8, 32], strides = [1, 1]} : vector<8x128xbf16> to vector<8x32xbf16>
    %167 = vector.extract_strided_slice %117 {offsets = [0, 64], sizes = [8, 32], strides = [1, 1]} : vector<8x128xbf16> to vector<8x32xbf16>
    %cst_57 = arith.constant dense<0.000000e+00> : vector<8x8xf32>
    %168 = tpu.matmul %165, %166, %cst_57 {dimension_numbers = #tpu.dot_dimension_numbers<[1], [1], [0], [0], [0, 0, 1, 0], [], []>} : vector<8x32xbf16>, vector<8x32xbf16>, vector<8x8xf32> -> vector<8x8xf32>
    %cst_58 = arith.constant 0.176776692 : f32
    %169 = vector.broadcast %cst_58 : f32 to vector<8x8xf32>
    %170 = arith.mulf %168, %169 : vector<8x8xf32>
    %cst_59 = arith.constant dense<0xFF800000> : vector<8xf32>
    %171 = vector.multi_reduction <maximumf>, %170, %cst_59 [1] : vector<8x8xf32> to vector<8xf32>
    %cst_60 = arith.constant 0xFF800000 : f32
    %172 = vector.broadcast %cst_60 : f32 to vector<8xf32>
    %173 = arith.maximumf %172, %171 : vector<8xf32>
    %174 = vector.shape_cast %173 : vector<8xf32> to vector<8x1xf32>
    %175 = vector.broadcast %174 : vector<8x1xf32> to vector<8x8xf32>
    %176 = arith.subf %170, %175 : vector<8x8xf32>
    %177 = math.exp %176 : vector<8x8xf32>
    %cst_61 = arith.constant dense<0.000000e+00> : vector<8xf32>
    %178 = vector.multi_reduction <add>, %177, %cst_61 [1] : vector<8x8xf32> to vector<8xf32>
    %179 = vector.shape_cast %178 : vector<8xf32> to vector<8x1xf32>
    %180 = vector.broadcast %179 : vector<8x1xf32> to vector<8x8xf32>
    %181 = arith.divf %177, %180 : vector<8x8xf32>
    %182 = arith.truncf %181 : vector<8x8xf32> to vector<8x8xbf16>
    %cst_62 = arith.constant dense<0.000000e+00> : vector<8x32xf32>
    %183 = tpu.matmul %182, %167, %cst_62 {dimension_numbers = #tpu.dot_dimension_numbers<[1], [0], [0], [1], [0, 0, 1, 1], [], []>} : vector<8x8xbf16>, vector<8x32xbf16>, vector<8x32xf32> -> vector<8x32xf32>
    %184 = arith.truncf %183 : vector<8x32xf32> to vector<8x32xbf16>
    %185 = vector.extract_strided_slice %6 {offsets = [64, 0], sizes = [32, 128], strides = [1, 1]} : vector<128x128xbf16> to vector<32x128xbf16>
    %cst_63 = arith.constant dense<0.000000e+00> : vector<8x128xf32>
    %186 = tpu.matmul %184, %185, %cst_63 {dimension_numbers = #tpu.dot_dimension_numbers<[1], [0], [0], [1], [0, 0, 1, 1], [], []>} : vector<8x32xbf16>, vector<32x128xbf16>, vector<8x128xf32> -> vector<8x128xf32>
    %187 = arith.addf %164, %186 : vector<8x128xf32>
    %188 = vector.extract_strided_slice %115 {offsets = [0, 96], sizes = [8, 32], strides = [1, 1]} : vector<8x128xbf16> to vector<8x32xbf16>
    %189 = vector.extract_strided_slice %116 {offsets = [0, 96], sizes = [8, 32], strides = [1, 1]} : vector<8x128xbf16> to vector<8x32xbf16>
    %190 = vector.extract_strided_slice %117 {offsets = [0, 96], sizes = [8, 32], strides = [1, 1]} : vector<8x128xbf16> to vector<8x32xbf16>
    %cst_64 = arith.constant dense<0.000000e+00> : vector<8x8xf32>
    %191 = tpu.matmul %188, %189, %cst_64 {dimension_numbers = #tpu.dot_dimension_numbers<[1], [1], [0], [0], [0, 0, 1, 0], [], []>} : vector<8x32xbf16>, vector<8x32xbf16>, vector<8x8xf32> -> vector<8x8xf32>
    %cst_65 = arith.constant 0.176776692 : f32
    %192 = vector.broadcast %cst_65 : f32 to vector<8x8xf32>
    %193 = arith.mulf %191, %192 : vector<8x8xf32>
    %cst_66 = arith.constant dense<0xFF800000> : vector<8xf32>
    %194 = vector.multi_reduction <maximumf>, %193, %cst_66 [1] : vector<8x8xf32> to vector<8xf32>
    %cst_67 = arith.constant 0xFF800000 : f32
    %195 = vector.broadcast %cst_67 : f32 to vector<8xf32>
    %196 = arith.maximumf %195, %194 : vector<8xf32>
    %197 = vector.shape_cast %196 : vector<8xf32> to vector<8x1xf32>
    %198 = vector.broadcast %197 : vector<8x1xf32> to vector<8x8xf32>
    %199 = arith.subf %193, %198 : vector<8x8xf32>
    %200 = math.exp %199 : vector<8x8xf32>
    %cst_68 = arith.constant dense<0.000000e+00> : vector<8xf32>
    %201 = vector.multi_reduction <add>, %200, %cst_68 [1] : vector<8x8xf32> to vector<8xf32>
    %202 = vector.shape_cast %201 : vector<8xf32> to vector<8x1xf32>
    %203 = vector.broadcast %202 : vector<8x1xf32> to vector<8x8xf32>
    %204 = arith.divf %200, %203 : vector<8x8xf32>
    %205 = arith.truncf %204 : vector<8x8xf32> to vector<8x8xbf16>
    %cst_69 = arith.constant dense<0.000000e+00> : vector<8x32xf32>
    %206 = tpu.matmul %205, %190, %cst_69 {dimension_numbers = #tpu.dot_dimension_numbers<[1], [0], [0], [1], [0, 0, 1, 1], [], []>} : vector<8x8xbf16>, vector<8x32xbf16>, vector<8x32xf32> -> vector<8x32xf32>
    %207 = arith.truncf %206 : vector<8x32xf32> to vector<8x32xbf16>
    %208 = vector.extract_strided_slice %6 {offsets = [96, 0], sizes = [32, 128], strides = [1, 1]} : vector<128x128xbf16> to vector<32x128xbf16>
    %cst_70 = arith.constant dense<0.000000e+00> : vector<8x128xf32>
    %209 = tpu.matmul %207, %208, %cst_70 {dimension_numbers = #tpu.dot_dimension_numbers<[1], [0], [0], [1], [0, 0, 1, 1], [], []>} : vector<8x32xbf16>, vector<32x128xbf16>, vector<8x128xf32> -> vector<8x128xf32>
    %210 = arith.addf %187, %209 : vector<8x128xf32>
    %211 = tpu.concatenate %114, %210 in 0 : vector<8x128xf32>, vector<8x128xf32> -> vector<16x128xf32>
    %212 = vector.broadcast %8 : vector<1x128xf32> to vector<16x128xf32>
    %213 = arith.addf %211, %212 : vector<16x128xf32>
    %214 = arith.addf %0, %213 : vector<16x128xf32>
    %c0_71 = arith.constant 0 : index
    %c0_72 = arith.constant 0 : index
    %c0_73 = arith.constant 0 : index
    %215 = vector.load %arg5[%c0_71, %c0_72, %c0_73] : memref<2x1x128xf32, #tpu.memory_space<vmem>>, vector<1x1x128xf32>
    %216 = vector.shape_cast %215 : vector<1x1x128xf32> to vector<1x128xf32>
    %c0_74 = arith.constant 0 : index
    %c0_75 = arith.constant 0 : index
    %c0_76 = arith.constant 0 : index
    %217 = vector.load %arg6[%c0_74, %c0_75, %c0_76] : memref<2x1x128xf32, #tpu.memory_space<vmem>>, vector<1x1x128xf32>
    %218 = vector.shape_cast %217 : vector<1x1x128xf32> to vector<1x128xf32>
    %cst_77 = arith.constant dense<0.000000e+00> : vector<16xf32>
    %219 = vector.multi_reduction <add>, %214, %cst_77 [1] : vector<16x128xf32> to vector<16xf32>
    %220 = vector.shape_cast %219 : vector<16xf32> to vector<16x1xf32>
    %cst_78 = arith.constant 1.280000e+02 : f32
    %221 = vector.broadcast %cst_78 : f32 to vector<16x1xf32>
    %222 = arith.divf %220, %221 : vector<16x1xf32>
    %223 = vector.broadcast %222 : vector<16x1xf32> to vector<16x128xf32>
    %224 = arith.subf %214, %223 : vector<16x128xf32>
    %225 = arith.mulf %224, %224 : vector<16x128xf32>
    %cst_79 = arith.constant dense<0.000000e+00> : vector<16xf32>
    %226 = vector.multi_reduction <add>, %225, %cst_79 [1] : vector<16x128xf32> to vector<16xf32>
    %227 = vector.shape_cast %226 : vector<16xf32> to vector<16x1xf32>
    %cst_80 = arith.constant 1.280000e+02 : f32
    %228 = vector.broadcast %cst_80 : f32 to vector<16x1xf32>
    %229 = arith.divf %227, %228 : vector<16x1xf32>
    %230 = vector.broadcast %222 : vector<16x1xf32> to vector<16x128xf32>
    %231 = arith.subf %214, %230 : vector<16x128xf32>
    %cst_81 = arith.constant 9.99999974E-6 : f32
    %232 = vector.broadcast %cst_81 : f32 to vector<16x1xf32>
    %233 = arith.addf %229, %232 : vector<16x1xf32>
    %234 = math.rsqrt %233 : vector<16x1xf32>
    %235 = vector.broadcast %234 : vector<16x1xf32> to vector<16x128xf32>
    %236 = arith.mulf %231, %235 : vector<16x128xf32>
    %237 = vector.broadcast %216 : vector<1x128xf32> to vector<16x128xf32>
    %238 = arith.mulf %236, %237 : vector<16x128xf32>
    %239 = vector.broadcast %218 : vector<1x128xf32> to vector<16x128xf32>
    %240 = arith.addf %238, %239 : vector<16x128xf32>
    %241 = arith.truncf %240 : vector<16x128xf32> to vector<16x128xbf16>
    %c0_82 = arith.constant 0 : index
    %c0_83 = arith.constant 0 : index
    %c0_84 = arith.constant 0 : index
    %242 = vector.load %arg7[%c0_82, %c0_83, %c0_84] : memref<2x128x256xbf16, #tpu.memory_space<vmem>>, vector<1x128x256xbf16>
    %243 = vector.shape_cast %242 : vector<1x128x256xbf16> to vector<128x256xbf16>
    %cst_85 = arith.constant dense<0.000000e+00> : vector<16x256xf32>
    %244 = tpu.matmul %241, %243, %cst_85 {dimension_numbers = #tpu.dot_dimension_numbers<[1], [0], [0], [1], [0, 0, 1, 1], [], []>} : vector<16x128xbf16>, vector<128x256xbf16>, vector<16x256xf32> -> vector<16x256xf32>
    %c0_86 = arith.constant 0 : index
    %c0_87 = arith.constant 0 : index
    %c0_88 = arith.constant 0 : index
    %245 = vector.load %arg8[%c0_86, %c0_87, %c0_88] : memref<2x1x256xf32, #tpu.memory_space<vmem>>, vector<1x1x256xf32>
    %246 = vector.shape_cast %245 : vector<1x1x256xf32> to vector<1x256xf32>
    %247 = vector.broadcast %246 : vector<1x256xf32> to vector<16x256xf32>
    %248 = arith.addf %244, %247 : vector<16x256xf32>
    %cst_89 = arith.constant 0.000000e+00 : f32
    %249 = vector.broadcast %cst_89 : f32 to vector<16x256xf32>
    %250 = arith.maximumf %248, %249 : vector<16x256xf32>
    %251 = arith.truncf %250 : vector<16x256xf32> to vector<16x256xbf16>
    %c0_90 = arith.constant 0 : index
    %c0_91 = arith.constant 0 : index
    %c0_92 = arith.constant 0 : index
    %252 = vector.load %arg9[%c0_90, %c0_91, %c0_92] : memref<2x256x128xbf16, #tpu.memory_space<vmem>>, vector<1x256x128xbf16>
    %253 = vector.shape_cast %252 : vector<1x256x128xbf16> to vector<256x128xbf16>
    %cst_93 = arith.constant dense<0.000000e+00> : vector<16x128xf32>
    %254 = tpu.matmul %251, %253, %cst_93 {dimension_numbers = #tpu.dot_dimension_numbers<[1], [0], [0], [1], [0, 0, 1, 1], [], []>} : vector<16x256xbf16>, vector<256x128xbf16>, vector<16x128xf32> -> vector<16x128xf32>
    %c0_94 = arith.constant 0 : index
    %c0_95 = arith.constant 0 : index
    %c0_96 = arith.constant 0 : index
    %255 = vector.load %arg10[%c0_94, %c0_95, %c0_96] : memref<2x1x128xf32, #tpu.memory_space<vmem>>, vector<1x1x128xf32>
    %256 = vector.shape_cast %255 : vector<1x1x128xf32> to vector<1x128xf32>
    %257 = vector.broadcast %256 : vector<1x128xf32> to vector<16x128xf32>
    %258 = arith.addf %254, %257 : vector<16x128xf32>
    %259 = arith.addf %240, %258 : vector<16x128xf32>
    %c0_97 = arith.constant 0 : index
    %c0_98 = arith.constant 0 : index
    %c0_99 = arith.constant 0 : index
    %260 = vector.load %arg11[%c0_97, %c0_98, %c0_99] : memref<2x1x128xf32, #tpu.memory_space<vmem>>, vector<1x1x128xf32>
    %261 = vector.shape_cast %260 : vector<1x1x128xf32> to vector<1x128xf32>
    %c0_100 = arith.constant 0 : index
    %c0_101 = arith.constant 0 : index
    %c0_102 = arith.constant 0 : index
    %262 = vector.load %arg12[%c0_100, %c0_101, %c0_102] : memref<2x1x128xf32, #tpu.memory_space<vmem>>, vector<1x1x128xf32>
    %263 = vector.shape_cast %262 : vector<1x1x128xf32> to vector<1x128xf32>
    %cst_103 = arith.constant dense<0.000000e+00> : vector<16xf32>
    %264 = vector.multi_reduction <add>, %259, %cst_103 [1] : vector<16x128xf32> to vector<16xf32>
    %265 = vector.shape_cast %264 : vector<16xf32> to vector<16x1xf32>
    %cst_104 = arith.constant 1.280000e+02 : f32
    %266 = vector.broadcast %cst_104 : f32 to vector<16x1xf32>
    %267 = arith.divf %265, %266 : vector<16x1xf32>
    %268 = vector.broadcast %267 : vector<16x1xf32> to vector<16x128xf32>
    %269 = arith.subf %259, %268 : vector<16x128xf32>
    %270 = arith.mulf %269, %269 : vector<16x128xf32>
    %cst_105 = arith.constant dense<0.000000e+00> : vector<16xf32>
    %271 = vector.multi_reduction <add>, %270, %cst_105 [1] : vector<16x128xf32> to vector<16xf32>
    %272 = vector.shape_cast %271 : vector<16xf32> to vector<16x1xf32>
    %cst_106 = arith.constant 1.280000e+02 : f32
    %273 = vector.broadcast %cst_106 : f32 to vector<16x1xf32>
    %274 = arith.divf %272, %273 : vector<16x1xf32>
    %275 = vector.broadcast %267 : vector<16x1xf32> to vector<16x128xf32>
    %276 = arith.subf %259, %275 : vector<16x128xf32>
    %cst_107 = arith.constant 9.99999974E-6 : f32
    %277 = vector.broadcast %cst_107 : f32 to vector<16x1xf32>
    %278 = arith.addf %274, %277 : vector<16x1xf32>
    %279 = math.rsqrt %278 : vector<16x1xf32>
    %280 = vector.broadcast %279 : vector<16x1xf32> to vector<16x128xf32>
    %281 = arith.mulf %276, %280 : vector<16x128xf32>
    %282 = vector.broadcast %261 : vector<1x128xf32> to vector<16x128xf32>
    %283 = arith.mulf %281, %282 : vector<16x128xf32>
    %284 = vector.broadcast %263 : vector<1x128xf32> to vector<16x128xf32>
    %285 = arith.addf %283, %284 : vector<16x128xf32>
    %c1 = arith.constant 1 : index
    %c0_108 = arith.constant 0 : index
    %c0_109 = arith.constant 0 : index
    %286 = vector.load %arg1[%c1, %c0_108, %c0_109] : memref<2x128x384xbf16, #tpu.memory_space<vmem>>, vector<1x128x384xbf16>
    %287 = vector.shape_cast %286 : vector<1x128x384xbf16> to vector<128x384xbf16>
    %c1_110 = arith.constant 1 : index
    %c0_111 = arith.constant 0 : index
    %c0_112 = arith.constant 0 : index
    %288 = vector.load %arg2[%c1_110, %c0_111, %c0_112] : memref<2x1x384xf32, #tpu.memory_space<vmem>>, vector<1x1x384xf32>
    %289 = vector.shape_cast %288 : vector<1x1x384xf32> to vector<1x384xf32>
    %c1_113 = arith.constant 1 : index
    %c0_114 = arith.constant 0 : index
    %c0_115 = arith.constant 0 : index
    %290 = vector.load %arg3[%c1_113, %c0_114, %c0_115] : memref<2x128x128xbf16, #tpu.memory_space<vmem>>, vector<1x128x128xbf16>
    %291 = vector.shape_cast %290 : vector<1x128x128xbf16> to vector<128x128xbf16>
    %c1_116 = arith.constant 1 : index
    %c0_117 = arith.constant 0 : index
    %c0_118 = arith.constant 0 : index
    %292 = vector.load %arg4[%c1_116, %c0_117, %c0_118] : memref<2x1x128xf32, #tpu.memory_space<vmem>>, vector<1x1x128xf32>
    %293 = vector.shape_cast %292 : vector<1x1x128xf32> to vector<1x128xf32>
    %294 = arith.truncf %285 : vector<16x128xf32> to vector<16x128xbf16>
    %cst_119 = arith.constant dense<0.000000e+00> : vector<16x384xf32>
    %295 = tpu.matmul %294, %287, %cst_119 {dimension_numbers = #tpu.dot_dimension_numbers<[1], [0], [0], [1], [0, 0, 1, 1], [], []>} : vector<16x128xbf16>, vector<128x384xbf16>, vector<16x384xf32> -> vector<16x384xf32>
    %296 = vector.broadcast %289 : vector<1x384xf32> to vector<16x384xf32>
    %297 = arith.addf %295, %296 : vector<16x384xf32>
    %298 = vector.extract_strided_slice %297 {offsets = [0, 0], sizes = [16, 128], strides = [1, 1]} : vector<16x384xf32> to vector<16x128xf32>
    %299 = arith.truncf %298 : vector<16x128xf32> to vector<16x128xbf16>
    %300 = vector.extract_strided_slice %297 {offsets = [0, 128], sizes = [16, 128], strides = [1, 1]} : vector<16x384xf32> to vector<16x128xf32>
    %301 = arith.truncf %300 : vector<16x128xf32> to vector<16x128xbf16>
    %302 = vector.extract_strided_slice %297 {offsets = [0, 256], sizes = [16, 128], strides = [1, 1]} : vector<16x384xf32> to vector<16x128xf32>
    %303 = arith.truncf %302 : vector<16x128xf32> to vector<16x128xbf16>
    %304 = vector.extract_strided_slice %299 {offsets = [0, 0], sizes = [8, 128], strides = [1, 1]} : vector<16x128xbf16> to vector<8x128xbf16>
    %305 = vector.extract_strided_slice %301 {offsets = [0, 0], sizes = [8, 128], strides = [1, 1]} : vector<16x128xbf16> to vector<8x128xbf16>
    %306 = vector.extract_strided_slice %303 {offsets = [0, 0], sizes = [8, 128], strides = [1, 1]} : vector<16x128xbf16> to vector<8x128xbf16>
    %cst_120 = arith.constant 0.000000e+00 : f32
    %307 = vector.broadcast %cst_120 : f32 to vector<8x128xf32>
    %308 = vector.extract_strided_slice %304 {offsets = [0, 0], sizes = [8, 32], strides = [1, 1]} : vector<8x128xbf16> to vector<8x32xbf16>
    %309 = vector.extract_strided_slice %305 {offsets = [0, 0], sizes = [8, 32], strides = [1, 1]} : vector<8x128xbf16> to vector<8x32xbf16>
    %310 = vector.extract_strided_slice %306 {offsets = [0, 0], sizes = [8, 32], strides = [1, 1]} : vector<8x128xbf16> to vector<8x32xbf16>
    %cst_121 = arith.constant dense<0.000000e+00> : vector<8x8xf32>
    %311 = tpu.matmul %308, %309, %cst_121 {dimension_numbers = #tpu.dot_dimension_numbers<[1], [1], [0], [0], [0, 0, 1, 0], [], []>} : vector<8x32xbf16>, vector<8x32xbf16>, vector<8x8xf32> -> vector<8x8xf32>
    %cst_122 = arith.constant 0.176776692 : f32
    %312 = vector.broadcast %cst_122 : f32 to vector<8x8xf32>
    %313 = arith.mulf %311, %312 : vector<8x8xf32>
    %cst_123 = arith.constant dense<0xFF800000> : vector<8xf32>
    %314 = vector.multi_reduction <maximumf>, %313, %cst_123 [1] : vector<8x8xf32> to vector<8xf32>
    %cst_124 = arith.constant 0xFF800000 : f32
    %315 = vector.broadcast %cst_124 : f32 to vector<8xf32>
    %316 = arith.maximumf %315, %314 : vector<8xf32>
    %317 = vector.shape_cast %316 : vector<8xf32> to vector<8x1xf32>
    %318 = vector.broadcast %317 : vector<8x1xf32> to vector<8x8xf32>
    %319 = arith.subf %313, %318 : vector<8x8xf32>
    %320 = math.exp %319 : vector<8x8xf32>
    %cst_125 = arith.constant dense<0.000000e+00> : vector<8xf32>
    %321 = vector.multi_reduction <add>, %320, %cst_125 [1] : vector<8x8xf32> to vector<8xf32>
    %322 = vector.shape_cast %321 : vector<8xf32> to vector<8x1xf32>
    %323 = vector.broadcast %322 : vector<8x1xf32> to vector<8x8xf32>
    %324 = arith.divf %320, %323 : vector<8x8xf32>
    %325 = arith.truncf %324 : vector<8x8xf32> to vector<8x8xbf16>
    %cst_126 = arith.constant dense<0.000000e+00> : vector<8x32xf32>
    %326 = tpu.matmul %325, %310, %cst_126 {dimension_numbers = #tpu.dot_dimension_numbers<[1], [0], [0], [1], [0, 0, 1, 1], [], []>} : vector<8x8xbf16>, vector<8x32xbf16>, vector<8x32xf32> -> vector<8x32xf32>
    %327 = arith.truncf %326 : vector<8x32xf32> to vector<8x32xbf16>
    %328 = vector.extract_strided_slice %291 {offsets = [0, 0], sizes = [32, 128], strides = [1, 1]} : vector<128x128xbf16> to vector<32x128xbf16>
    %cst_127 = arith.constant dense<0.000000e+00> : vector<8x128xf32>
    %329 = tpu.matmul %327, %328, %cst_127 {dimension_numbers = #tpu.dot_dimension_numbers<[1], [0], [0], [1], [0, 0, 1, 1], [], []>} : vector<8x32xbf16>, vector<32x128xbf16>, vector<8x128xf32> -> vector<8x128xf32>
    %330 = arith.addf %307, %329 : vector<8x128xf32>
    %331 = vector.extract_strided_slice %304 {offsets = [0, 32], sizes = [8, 32], strides = [1, 1]} : vector<8x128xbf16> to vector<8x32xbf16>
    %332 = vector.extract_strided_slice %305 {offsets = [0, 32], sizes = [8, 32], strides = [1, 1]} : vector<8x128xbf16> to vector<8x32xbf16>
    %333 = vector.extract_strided_slice %306 {offsets = [0, 32], sizes = [8, 32], strides = [1, 1]} : vector<8x128xbf16> to vector<8x32xbf16>
    %cst_128 = arith.constant dense<0.000000e+00> : vector<8x8xf32>
    %334 = tpu.matmul %331, %332, %cst_128 {dimension_numbers = #tpu.dot_dimension_numbers<[1], [1], [0], [0], [0, 0, 1, 0], [], []>} : vector<8x32xbf16>, vector<8x32xbf16>, vector<8x8xf32> -> vector<8x8xf32>
    %cst_129 = arith.constant 0.176776692 : f32
    %335 = vector.broadcast %cst_129 : f32 to vector<8x8xf32>
    %336 = arith.mulf %334, %335 : vector<8x8xf32>
    %cst_130 = arith.constant dense<0xFF800000> : vector<8xf32>
    %337 = vector.multi_reduction <maximumf>, %336, %cst_130 [1] : vector<8x8xf32> to vector<8xf32>
    %cst_131 = arith.constant 0xFF800000 : f32
    %338 = vector.broadcast %cst_131 : f32 to vector<8xf32>
    %339 = arith.maximumf %338, %337 : vector<8xf32>
    %340 = vector.shape_cast %339 : vector<8xf32> to vector<8x1xf32>
    %341 = vector.broadcast %340 : vector<8x1xf32> to vector<8x8xf32>
    %342 = arith.subf %336, %341 : vector<8x8xf32>
    %343 = math.exp %342 : vector<8x8xf32>
    %cst_132 = arith.constant dense<0.000000e+00> : vector<8xf32>
    %344 = vector.multi_reduction <add>, %343, %cst_132 [1] : vector<8x8xf32> to vector<8xf32>
    %345 = vector.shape_cast %344 : vector<8xf32> to vector<8x1xf32>
    %346 = vector.broadcast %345 : vector<8x1xf32> to vector<8x8xf32>
    %347 = arith.divf %343, %346 : vector<8x8xf32>
    %348 = arith.truncf %347 : vector<8x8xf32> to vector<8x8xbf16>
    %cst_133 = arith.constant dense<0.000000e+00> : vector<8x32xf32>
    %349 = tpu.matmul %348, %333, %cst_133 {dimension_numbers = #tpu.dot_dimension_numbers<[1], [0], [0], [1], [0, 0, 1, 1], [], []>} : vector<8x8xbf16>, vector<8x32xbf16>, vector<8x32xf32> -> vector<8x32xf32>
    %350 = arith.truncf %349 : vector<8x32xf32> to vector<8x32xbf16>
    %351 = vector.extract_strided_slice %291 {offsets = [32, 0], sizes = [32, 128], strides = [1, 1]} : vector<128x128xbf16> to vector<32x128xbf16>
    %cst_134 = arith.constant dense<0.000000e+00> : vector<8x128xf32>
    %352 = tpu.matmul %350, %351, %cst_134 {dimension_numbers = #tpu.dot_dimension_numbers<[1], [0], [0], [1], [0, 0, 1, 1], [], []>} : vector<8x32xbf16>, vector<32x128xbf16>, vector<8x128xf32> -> vector<8x128xf32>
    %353 = arith.addf %330, %352 : vector<8x128xf32>
    %354 = vector.extract_strided_slice %304 {offsets = [0, 64], sizes = [8, 32], strides = [1, 1]} : vector<8x128xbf16> to vector<8x32xbf16>
    %355 = vector.extract_strided_slice %305 {offsets = [0, 64], sizes = [8, 32], strides = [1, 1]} : vector<8x128xbf16> to vector<8x32xbf16>
    %356 = vector.extract_strided_slice %306 {offsets = [0, 64], sizes = [8, 32], strides = [1, 1]} : vector<8x128xbf16> to vector<8x32xbf16>
    %cst_135 = arith.constant dense<0.000000e+00> : vector<8x8xf32>
    %357 = tpu.matmul %354, %355, %cst_135 {dimension_numbers = #tpu.dot_dimension_numbers<[1], [1], [0], [0], [0, 0, 1, 0], [], []>} : vector<8x32xbf16>, vector<8x32xbf16>, vector<8x8xf32> -> vector<8x8xf32>
    %cst_136 = arith.constant 0.176776692 : f32
    %358 = vector.broadcast %cst_136 : f32 to vector<8x8xf32>
    %359 = arith.mulf %357, %358 : vector<8x8xf32>
    %cst_137 = arith.constant dense<0xFF800000> : vector<8xf32>
    %360 = vector.multi_reduction <maximumf>, %359, %cst_137 [1] : vector<8x8xf32> to vector<8xf32>
    %cst_138 = arith.constant 0xFF800000 : f32
    %361 = vector.broadcast %cst_138 : f32 to vector<8xf32>
    %362 = arith.maximumf %361, %360 : vector<8xf32>
    %363 = vector.shape_cast %362 : vector<8xf32> to vector<8x1xf32>
    %364 = vector.broadcast %363 : vector<8x1xf32> to vector<8x8xf32>
    %365 = arith.subf %359, %364 : vector<8x8xf32>
    %366 = math.exp %365 : vector<8x8xf32>
    %cst_139 = arith.constant dense<0.000000e+00> : vector<8xf32>
    %367 = vector.multi_reduction <add>, %366, %cst_139 [1] : vector<8x8xf32> to vector<8xf32>
    %368 = vector.shape_cast %367 : vector<8xf32> to vector<8x1xf32>
    %369 = vector.broadcast %368 : vector<8x1xf32> to vector<8x8xf32>
    %370 = arith.divf %366, %369 : vector<8x8xf32>
    %371 = arith.truncf %370 : vector<8x8xf32> to vector<8x8xbf16>
    %cst_140 = arith.constant dense<0.000000e+00> : vector<8x32xf32>
    %372 = tpu.matmul %371, %356, %cst_140 {dimension_numbers = #tpu.dot_dimension_numbers<[1], [0], [0], [1], [0, 0, 1, 1], [], []>} : vector<8x8xbf16>, vector<8x32xbf16>, vector<8x32xf32> -> vector<8x32xf32>
    %373 = arith.truncf %372 : vector<8x32xf32> to vector<8x32xbf16>
    %374 = vector.extract_strided_slice %291 {offsets = [64, 0], sizes = [32, 128], strides = [1, 1]} : vector<128x128xbf16> to vector<32x128xbf16>
    %cst_141 = arith.constant dense<0.000000e+00> : vector<8x128xf32>
    %375 = tpu.matmul %373, %374, %cst_141 {dimension_numbers = #tpu.dot_dimension_numbers<[1], [0], [0], [1], [0, 0, 1, 1], [], []>} : vector<8x32xbf16>, vector<32x128xbf16>, vector<8x128xf32> -> vector<8x128xf32>
    %376 = arith.addf %353, %375 : vector<8x128xf32>
    %377 = vector.extract_strided_slice %304 {offsets = [0, 96], sizes = [8, 32], strides = [1, 1]} : vector<8x128xbf16> to vector<8x32xbf16>
    %378 = vector.extract_strided_slice %305 {offsets = [0, 96], sizes = [8, 32], strides = [1, 1]} : vector<8x128xbf16> to vector<8x32xbf16>
    %379 = vector.extract_strided_slice %306 {offsets = [0, 96], sizes = [8, 32], strides = [1, 1]} : vector<8x128xbf16> to vector<8x32xbf16>
    %cst_142 = arith.constant dense<0.000000e+00> : vector<8x8xf32>
    %380 = tpu.matmul %377, %378, %cst_142 {dimension_numbers = #tpu.dot_dimension_numbers<[1], [1], [0], [0], [0, 0, 1, 0], [], []>} : vector<8x32xbf16>, vector<8x32xbf16>, vector<8x8xf32> -> vector<8x8xf32>
    %cst_143 = arith.constant 0.176776692 : f32
    %381 = vector.broadcast %cst_143 : f32 to vector<8x8xf32>
    %382 = arith.mulf %380, %381 : vector<8x8xf32>
    %cst_144 = arith.constant dense<0xFF800000> : vector<8xf32>
    %383 = vector.multi_reduction <maximumf>, %382, %cst_144 [1] : vector<8x8xf32> to vector<8xf32>
    %cst_145 = arith.constant 0xFF800000 : f32
    %384 = vector.broadcast %cst_145 : f32 to vector<8xf32>
    %385 = arith.maximumf %384, %383 : vector<8xf32>
    %386 = vector.shape_cast %385 : vector<8xf32> to vector<8x1xf32>
    %387 = vector.broadcast %386 : vector<8x1xf32> to vector<8x8xf32>
    %388 = arith.subf %382, %387 : vector<8x8xf32>
    %389 = math.exp %388 : vector<8x8xf32>
    %cst_146 = arith.constant dense<0.000000e+00> : vector<8xf32>
    %390 = vector.multi_reduction <add>, %389, %cst_146 [1] : vector<8x8xf32> to vector<8xf32>
    %391 = vector.shape_cast %390 : vector<8xf32> to vector<8x1xf32>
    %392 = vector.broadcast %391 : vector<8x1xf32> to vector<8x8xf32>
    %393 = arith.divf %389, %392 : vector<8x8xf32>
    %394 = arith.truncf %393 : vector<8x8xf32> to vector<8x8xbf16>
    %cst_147 = arith.constant dense<0.000000e+00> : vector<8x32xf32>
    %395 = tpu.matmul %394, %379, %cst_147 {dimension_numbers = #tpu.dot_dimension_numbers<[1], [0], [0], [1], [0, 0, 1, 1], [], []>} : vector<8x8xbf16>, vector<8x32xbf16>, vector<8x32xf32> -> vector<8x32xf32>
    %396 = arith.truncf %395 : vector<8x32xf32> to vector<8x32xbf16>
    %397 = vector.extract_strided_slice %291 {offsets = [96, 0], sizes = [32, 128], strides = [1, 1]} : vector<128x128xbf16> to vector<32x128xbf16>
    %cst_148 = arith.constant dense<0.000000e+00> : vector<8x128xf32>
    %398 = tpu.matmul %396, %397, %cst_148 {dimension_numbers = #tpu.dot_dimension_numbers<[1], [0], [0], [1], [0, 0, 1, 1], [], []>} : vector<8x32xbf16>, vector<32x128xbf16>, vector<8x128xf32> -> vector<8x128xf32>
    %399 = arith.addf %376, %398 : vector<8x128xf32>
    %400 = vector.extract_strided_slice %299 {offsets = [8, 0], sizes = [8, 128], strides = [1, 1]} : vector<16x128xbf16> to vector<8x128xbf16>
    %401 = vector.extract_strided_slice %301 {offsets = [8, 0], sizes = [8, 128], strides = [1, 1]} : vector<16x128xbf16> to vector<8x128xbf16>
    %402 = vector.extract_strided_slice %303 {offsets = [8, 0], sizes = [8, 128], strides = [1, 1]} : vector<16x128xbf16> to vector<8x128xbf16>
    %cst_149 = arith.constant 0.000000e+00 : f32
    %403 = vector.broadcast %cst_149 : f32 to vector<8x128xf32>
    %404 = vector.extract_strided_slice %400 {offsets = [0, 0], sizes = [8, 32], strides = [1, 1]} : vector<8x128xbf16> to vector<8x32xbf16>
    %405 = vector.extract_strided_slice %401 {offsets = [0, 0], sizes = [8, 32], strides = [1, 1]} : vector<8x128xbf16> to vector<8x32xbf16>
    %406 = vector.extract_strided_slice %402 {offsets = [0, 0], sizes = [8, 32], strides = [1, 1]} : vector<8x128xbf16> to vector<8x32xbf16>
    %cst_150 = arith.constant dense<0.000000e+00> : vector<8x8xf32>
    %407 = tpu.matmul %404, %405, %cst_150 {dimension_numbers = #tpu.dot_dimension_numbers<[1], [1], [0], [0], [0, 0, 1, 0], [], []>} : vector<8x32xbf16>, vector<8x32xbf16>, vector<8x8xf32> -> vector<8x8xf32>
    %cst_151 = arith.constant 0.176776692 : f32
    %408 = vector.broadcast %cst_151 : f32 to vector<8x8xf32>
    %409 = arith.mulf %407, %408 : vector<8x8xf32>
    %cst_152 = arith.constant dense<0xFF800000> : vector<8xf32>
    %410 = vector.multi_reduction <maximumf>, %409, %cst_152 [1] : vector<8x8xf32> to vector<8xf32>
    %cst_153 = arith.constant 0xFF800000 : f32
    %411 = vector.broadcast %cst_153 : f32 to vector<8xf32>
    %412 = arith.maximumf %411, %410 : vector<8xf32>
    %413 = vector.shape_cast %412 : vector<8xf32> to vector<8x1xf32>
    %414 = vector.broadcast %413 : vector<8x1xf32> to vector<8x8xf32>
    %415 = arith.subf %409, %414 : vector<8x8xf32>
    %416 = math.exp %415 : vector<8x8xf32>
    %cst_154 = arith.constant dense<0.000000e+00> : vector<8xf32>
    %417 = vector.multi_reduction <add>, %416, %cst_154 [1] : vector<8x8xf32> to vector<8xf32>
    %418 = vector.shape_cast %417 : vector<8xf32> to vector<8x1xf32>
    %419 = vector.broadcast %418 : vector<8x1xf32> to vector<8x8xf32>
    %420 = arith.divf %416, %419 : vector<8x8xf32>
    %421 = arith.truncf %420 : vector<8x8xf32> to vector<8x8xbf16>
    %cst_155 = arith.constant dense<0.000000e+00> : vector<8x32xf32>
    %422 = tpu.matmul %421, %406, %cst_155 {dimension_numbers = #tpu.dot_dimension_numbers<[1], [0], [0], [1], [0, 0, 1, 1], [], []>} : vector<8x8xbf16>, vector<8x32xbf16>, vector<8x32xf32> -> vector<8x32xf32>
    %423 = arith.truncf %422 : vector<8x32xf32> to vector<8x32xbf16>
    %424 = vector.extract_strided_slice %291 {offsets = [0, 0], sizes = [32, 128], strides = [1, 1]} : vector<128x128xbf16> to vector<32x128xbf16>
    %cst_156 = arith.constant dense<0.000000e+00> : vector<8x128xf32>
    %425 = tpu.matmul %423, %424, %cst_156 {dimension_numbers = #tpu.dot_dimension_numbers<[1], [0], [0], [1], [0, 0, 1, 1], [], []>} : vector<8x32xbf16>, vector<32x128xbf16>, vector<8x128xf32> -> vector<8x128xf32>
    %426 = arith.addf %403, %425 : vector<8x128xf32>
    %427 = vector.extract_strided_slice %400 {offsets = [0, 32], sizes = [8, 32], strides = [1, 1]} : vector<8x128xbf16> to vector<8x32xbf16>
    %428 = vector.extract_strided_slice %401 {offsets = [0, 32], sizes = [8, 32], strides = [1, 1]} : vector<8x128xbf16> to vector<8x32xbf16>
    %429 = vector.extract_strided_slice %402 {offsets = [0, 32], sizes = [8, 32], strides = [1, 1]} : vector<8x128xbf16> to vector<8x32xbf16>
    %cst_157 = arith.constant dense<0.000000e+00> : vector<8x8xf32>
    %430 = tpu.matmul %427, %428, %cst_157 {dimension_numbers = #tpu.dot_dimension_numbers<[1], [1], [0], [0], [0, 0, 1, 0], [], []>} : vector<8x32xbf16>, vector<8x32xbf16>, vector<8x8xf32> -> vector<8x8xf32>
    %cst_158 = arith.constant 0.176776692 : f32
    %431 = vector.broadcast %cst_158 : f32 to vector<8x8xf32>
    %432 = arith.mulf %430, %431 : vector<8x8xf32>
    %cst_159 = arith.constant dense<0xFF800000> : vector<8xf32>
    %433 = vector.multi_reduction <maximumf>, %432, %cst_159 [1] : vector<8x8xf32> to vector<8xf32>
    %cst_160 = arith.constant 0xFF800000 : f32
    %434 = vector.broadcast %cst_160 : f32 to vector<8xf32>
    %435 = arith.maximumf %434, %433 : vector<8xf32>
    %436 = vector.shape_cast %435 : vector<8xf32> to vector<8x1xf32>
    %437 = vector.broadcast %436 : vector<8x1xf32> to vector<8x8xf32>
    %438 = arith.subf %432, %437 : vector<8x8xf32>
    %439 = math.exp %438 : vector<8x8xf32>
    %cst_161 = arith.constant dense<0.000000e+00> : vector<8xf32>
    %440 = vector.multi_reduction <add>, %439, %cst_161 [1] : vector<8x8xf32> to vector<8xf32>
    %441 = vector.shape_cast %440 : vector<8xf32> to vector<8x1xf32>
    %442 = vector.broadcast %441 : vector<8x1xf32> to vector<8x8xf32>
    %443 = arith.divf %439, %442 : vector<8x8xf32>
    %444 = arith.truncf %443 : vector<8x8xf32> to vector<8x8xbf16>
    %cst_162 = arith.constant dense<0.000000e+00> : vector<8x32xf32>
    %445 = tpu.matmul %444, %429, %cst_162 {dimension_numbers = #tpu.dot_dimension_numbers<[1], [0], [0], [1], [0, 0, 1, 1], [], []>} : vector<8x8xbf16>, vector<8x32xbf16>, vector<8x32xf32> -> vector<8x32xf32>
    %446 = arith.truncf %445 : vector<8x32xf32> to vector<8x32xbf16>
    %447 = vector.extract_strided_slice %291 {offsets = [32, 0], sizes = [32, 128], strides = [1, 1]} : vector<128x128xbf16> to vector<32x128xbf16>
    %cst_163 = arith.constant dense<0.000000e+00> : vector<8x128xf32>
    %448 = tpu.matmul %446, %447, %cst_163 {dimension_numbers = #tpu.dot_dimension_numbers<[1], [0], [0], [1], [0, 0, 1, 1], [], []>} : vector<8x32xbf16>, vector<32x128xbf16>, vector<8x128xf32> -> vector<8x128xf32>
    %449 = arith.addf %426, %448 : vector<8x128xf32>
    %450 = vector.extract_strided_slice %400 {offsets = [0, 64], sizes = [8, 32], strides = [1, 1]} : vector<8x128xbf16> to vector<8x32xbf16>
    %451 = vector.extract_strided_slice %401 {offsets = [0, 64], sizes = [8, 32], strides = [1, 1]} : vector<8x128xbf16> to vector<8x32xbf16>
    %452 = vector.extract_strided_slice %402 {offsets = [0, 64], sizes = [8, 32], strides = [1, 1]} : vector<8x128xbf16> to vector<8x32xbf16>
    %cst_164 = arith.constant dense<0.000000e+00> : vector<8x8xf32>
    %453 = tpu.matmul %450, %451, %cst_164 {dimension_numbers = #tpu.dot_dimension_numbers<[1], [1], [0], [0], [0, 0, 1, 0], [], []>} : vector<8x32xbf16>, vector<8x32xbf16>, vector<8x8xf32> -> vector<8x8xf32>
    %cst_165 = arith.constant 0.176776692 : f32
    %454 = vector.broadcast %cst_165 : f32 to vector<8x8xf32>
    %455 = arith.mulf %453, %454 : vector<8x8xf32>
    %cst_166 = arith.constant dense<0xFF800000> : vector<8xf32>
    %456 = vector.multi_reduction <maximumf>, %455, %cst_166 [1] : vector<8x8xf32> to vector<8xf32>
    %cst_167 = arith.constant 0xFF800000 : f32
    %457 = vector.broadcast %cst_167 : f32 to vector<8xf32>
    %458 = arith.maximumf %457, %456 : vector<8xf32>
    %459 = vector.shape_cast %458 : vector<8xf32> to vector<8x1xf32>
    %460 = vector.broadcast %459 : vector<8x1xf32> to vector<8x8xf32>
    %461 = arith.subf %455, %460 : vector<8x8xf32>
    %462 = math.exp %461 : vector<8x8xf32>
    %cst_168 = arith.constant dense<0.000000e+00> : vector<8xf32>
    %463 = vector.multi_reduction <add>, %462, %cst_168 [1] : vector<8x8xf32> to vector<8xf32>
    %464 = vector.shape_cast %463 : vector<8xf32> to vector<8x1xf32>
    %465 = vector.broadcast %464 : vector<8x1xf32> to vector<8x8xf32>
    %466 = arith.divf %462, %465 : vector<8x8xf32>
    %467 = arith.truncf %466 : vector<8x8xf32> to vector<8x8xbf16>
    %cst_169 = arith.constant dense<0.000000e+00> : vector<8x32xf32>
    %468 = tpu.matmul %467, %452, %cst_169 {dimension_numbers = #tpu.dot_dimension_numbers<[1], [0], [0], [1], [0, 0, 1, 1], [], []>} : vector<8x8xbf16>, vector<8x32xbf16>, vector<8x32xf32> -> vector<8x32xf32>
    %469 = arith.truncf %468 : vector<8x32xf32> to vector<8x32xbf16>
    %470 = vector.extract_strided_slice %291 {offsets = [64, 0], sizes = [32, 128], strides = [1, 1]} : vector<128x128xbf16> to vector<32x128xbf16>
    %cst_170 = arith.constant dense<0.000000e+00> : vector<8x128xf32>
    %471 = tpu.matmul %469, %470, %cst_170 {dimension_numbers = #tpu.dot_dimension_numbers<[1], [0], [0], [1], [0, 0, 1, 1], [], []>} : vector<8x32xbf16>, vector<32x128xbf16>, vector<8x128xf32> -> vector<8x128xf32>
    %472 = arith.addf %449, %471 : vector<8x128xf32>
    %473 = vector.extract_strided_slice %400 {offsets = [0, 96], sizes = [8, 32], strides = [1, 1]} : vector<8x128xbf16> to vector<8x32xbf16>
    %474 = vector.extract_strided_slice %401 {offsets = [0, 96], sizes = [8, 32], strides = [1, 1]} : vector<8x128xbf16> to vector<8x32xbf16>
    %475 = vector.extract_strided_slice %402 {offsets = [0, 96], sizes = [8, 32], strides = [1, 1]} : vector<8x128xbf16> to vector<8x32xbf16>
    %cst_171 = arith.constant dense<0.000000e+00> : vector<8x8xf32>
    %476 = tpu.matmul %473, %474, %cst_171 {dimension_numbers = #tpu.dot_dimension_numbers<[1], [1], [0], [0], [0, 0, 1, 0], [], []>} : vector<8x32xbf16>, vector<8x32xbf16>, vector<8x8xf32> -> vector<8x8xf32>
    %cst_172 = arith.constant 0.176776692 : f32
    %477 = vector.broadcast %cst_172 : f32 to vector<8x8xf32>
    %478 = arith.mulf %476, %477 : vector<8x8xf32>
    %cst_173 = arith.constant dense<0xFF800000> : vector<8xf32>
    %479 = vector.multi_reduction <maximumf>, %478, %cst_173 [1] : vector<8x8xf32> to vector<8xf32>
    %cst_174 = arith.constant 0xFF800000 : f32
    %480 = vector.broadcast %cst_174 : f32 to vector<8xf32>
    %481 = arith.maximumf %480, %479 : vector<8xf32>
    %482 = vector.shape_cast %481 : vector<8xf32> to vector<8x1xf32>
    %483 = vector.broadcast %482 : vector<8x1xf32> to vector<8x8xf32>
    %484 = arith.subf %478, %483 : vector<8x8xf32>
    %485 = math.exp %484 : vector<8x8xf32>
    %cst_175 = arith.constant dense<0.000000e+00> : vector<8xf32>
    %486 = vector.multi_reduction <add>, %485, %cst_175 [1] : vector<8x8xf32> to vector<8xf32>
    %487 = vector.shape_cast %486 : vector<8xf32> to vector<8x1xf32>
    %488 = vector.broadcast %487 : vector<8x1xf32> to vector<8x8xf32>
    %489 = arith.divf %485, %488 : vector<8x8xf32>
    %490 = arith.truncf %489 : vector<8x8xf32> to vector<8x8xbf16>
    %cst_176 = arith.constant dense<0.000000e+00> : vector<8x32xf32>
    %491 = tpu.matmul %490, %475, %cst_176 {dimension_numbers = #tpu.dot_dimension_numbers<[1], [0], [0], [1], [0, 0, 1, 1], [], []>} : vector<8x8xbf16>, vector<8x32xbf16>, vector<8x32xf32> -> vector<8x32xf32>
    %492 = arith.truncf %491 : vector<8x32xf32> to vector<8x32xbf16>
    %493 = vector.extract_strided_slice %291 {offsets = [96, 0], sizes = [32, 128], strides = [1, 1]} : vector<128x128xbf16> to vector<32x128xbf16>
    %cst_177 = arith.constant dense<0.000000e+00> : vector<8x128xf32>
    %494 = tpu.matmul %492, %493, %cst_177 {dimension_numbers = #tpu.dot_dimension_numbers<[1], [0], [0], [1], [0, 0, 1, 1], [], []>} : vector<8x32xbf16>, vector<32x128xbf16>, vector<8x128xf32> -> vector<8x128xf32>
    %495 = arith.addf %472, %494 : vector<8x128xf32>
    %496 = tpu.concatenate %399, %495 in 0 : vector<8x128xf32>, vector<8x128xf32> -> vector<16x128xf32>
    %497 = vector.broadcast %293 : vector<1x128xf32> to vector<16x128xf32>
    %498 = arith.addf %496, %497 : vector<16x128xf32>
    %499 = arith.addf %285, %498 : vector<16x128xf32>
    %c1_178 = arith.constant 1 : index
    %c0_179 = arith.constant 0 : index
    %c0_180 = arith.constant 0 : index
    %500 = vector.load %arg5[%c1_178, %c0_179, %c0_180] : memref<2x1x128xf32, #tpu.memory_space<vmem>>, vector<1x1x128xf32>
    %501 = vector.shape_cast %500 : vector<1x1x128xf32> to vector<1x128xf32>
    %c1_181 = arith.constant 1 : index
    %c0_182 = arith.constant 0 : index
    %c0_183 = arith.constant 0 : index
    %502 = vector.load %arg6[%c1_181, %c0_182, %c0_183] : memref<2x1x128xf32, #tpu.memory_space<vmem>>, vector<1x1x128xf32>
    %503 = vector.shape_cast %502 : vector<1x1x128xf32> to vector<1x128xf32>
    %cst_184 = arith.constant dense<0.000000e+00> : vector<16xf32>
    %504 = vector.multi_reduction <add>, %499, %cst_184 [1] : vector<16x128xf32> to vector<16xf32>
    %505 = vector.shape_cast %504 : vector<16xf32> to vector<16x1xf32>
    %cst_185 = arith.constant 1.280000e+02 : f32
    %506 = vector.broadcast %cst_185 : f32 to vector<16x1xf32>
    %507 = arith.divf %505, %506 : vector<16x1xf32>
    %508 = vector.broadcast %507 : vector<16x1xf32> to vector<16x128xf32>
    %509 = arith.subf %499, %508 : vector<16x128xf32>
    %510 = arith.mulf %509, %509 : vector<16x128xf32>
    %cst_186 = arith.constant dense<0.000000e+00> : vector<16xf32>
    %511 = vector.multi_reduction <add>, %510, %cst_186 [1] : vector<16x128xf32> to vector<16xf32>
    %512 = vector.shape_cast %511 : vector<16xf32> to vector<16x1xf32>
    %cst_187 = arith.constant 1.280000e+02 : f32
    %513 = vector.broadcast %cst_187 : f32 to vector<16x1xf32>
    %514 = arith.divf %512, %513 : vector<16x1xf32>
    %515 = vector.broadcast %507 : vector<16x1xf32> to vector<16x128xf32>
    %516 = arith.subf %499, %515 : vector<16x128xf32>
    %cst_188 = arith.constant 9.99999974E-6 : f32
    %517 = vector.broadcast %cst_188 : f32 to vector<16x1xf32>
    %518 = arith.addf %514, %517 : vector<16x1xf32>
    %519 = math.rsqrt %518 : vector<16x1xf32>
    %520 = vector.broadcast %519 : vector<16x1xf32> to vector<16x128xf32>
    %521 = arith.mulf %516, %520 : vector<16x128xf32>
    %522 = vector.broadcast %501 : vector<1x128xf32> to vector<16x128xf32>
    %523 = arith.mulf %521, %522 : vector<16x128xf32>
    %524 = vector.broadcast %503 : vector<1x128xf32> to vector<16x128xf32>
    %525 = arith.addf %523, %524 : vector<16x128xf32>
    %526 = arith.truncf %525 : vector<16x128xf32> to vector<16x128xbf16>
    %c1_189 = arith.constant 1 : index
    %c0_190 = arith.constant 0 : index
    %c0_191 = arith.constant 0 : index
    %527 = vector.load %arg7[%c1_189, %c0_190, %c0_191] : memref<2x128x256xbf16, #tpu.memory_space<vmem>>, vector<1x128x256xbf16>
    %528 = vector.shape_cast %527 : vector<1x128x256xbf16> to vector<128x256xbf16>
    %cst_192 = arith.constant dense<0.000000e+00> : vector<16x256xf32>
    %529 = tpu.matmul %526, %528, %cst_192 {dimension_numbers = #tpu.dot_dimension_numbers<[1], [0], [0], [1], [0, 0, 1, 1], [], []>} : vector<16x128xbf16>, vector<128x256xbf16>, vector<16x256xf32> -> vector<16x256xf32>
    %c1_193 = arith.constant 1 : index
    %c0_194 = arith.constant 0 : index
    %c0_195 = arith.constant 0 : index
    %530 = vector.load %arg8[%c1_193, %c0_194, %c0_195] : memref<2x1x256xf32, #tpu.memory_space<vmem>>, vector<1x1x256xf32>
    %531 = vector.shape_cast %530 : vector<1x1x256xf32> to vector<1x256xf32>
    %532 = vector.broadcast %531 : vector<1x256xf32> to vector<16x256xf32>
    %533 = arith.addf %529, %532 : vector<16x256xf32>
    %cst_196 = arith.constant 0.000000e+00 : f32
    %534 = vector.broadcast %cst_196 : f32 to vector<16x256xf32>
    %535 = arith.maximumf %533, %534 : vector<16x256xf32>
    %536 = arith.truncf %535 : vector<16x256xf32> to vector<16x256xbf16>
    %c1_197 = arith.constant 1 : index
    %c0_198 = arith.constant 0 : index
    %c0_199 = arith.constant 0 : index
    %537 = vector.load %arg9[%c1_197, %c0_198, %c0_199] : memref<2x256x128xbf16, #tpu.memory_space<vmem>>, vector<1x256x128xbf16>
    %538 = vector.shape_cast %537 : vector<1x256x128xbf16> to vector<256x128xbf16>
    %cst_200 = arith.constant dense<0.000000e+00> : vector<16x128xf32>
    %539 = tpu.matmul %536, %538, %cst_200 {dimension_numbers = #tpu.dot_dimension_numbers<[1], [0], [0], [1], [0, 0, 1, 1], [], []>} : vector<16x256xbf16>, vector<256x128xbf16>, vector<16x128xf32> -> vector<16x128xf32>
    %c1_201 = arith.constant 1 : index
    %c0_202 = arith.constant 0 : index
    %c0_203 = arith.constant 0 : index
    %540 = vector.load %arg10[%c1_201, %c0_202, %c0_203] : memref<2x1x128xf32, #tpu.memory_space<vmem>>, vector<1x1x128xf32>
    %541 = vector.shape_cast %540 : vector<1x1x128xf32> to vector<1x128xf32>
    %542 = vector.broadcast %541 : vector<1x128xf32> to vector<16x128xf32>
    %543 = arith.addf %539, %542 : vector<16x128xf32>
    %544 = arith.addf %525, %543 : vector<16x128xf32>
    %c1_204 = arith.constant 1 : index
    %c0_205 = arith.constant 0 : index
    %c0_206 = arith.constant 0 : index
    %545 = vector.load %arg11[%c1_204, %c0_205, %c0_206] : memref<2x1x128xf32, #tpu.memory_space<vmem>>, vector<1x1x128xf32>
    %546 = vector.shape_cast %545 : vector<1x1x128xf32> to vector<1x128xf32>
    %c1_207 = arith.constant 1 : index
    %c0_208 = arith.constant 0 : index
    %c0_209 = arith.constant 0 : index
    %547 = vector.load %arg12[%c1_207, %c0_208, %c0_209] : memref<2x1x128xf32, #tpu.memory_space<vmem>>, vector<1x1x128xf32>
    %548 = vector.shape_cast %547 : vector<1x1x128xf32> to vector<1x128xf32>
    %cst_210 = arith.constant dense<0.000000e+00> : vector<16xf32>
    %549 = vector.multi_reduction <add>, %544, %cst_210 [1] : vector<16x128xf32> to vector<16xf32>
    %550 = vector.shape_cast %549 : vector<16xf32> to vector<16x1xf32>
    %cst_211 = arith.constant 1.280000e+02 : f32
    %551 = vector.broadcast %cst_211 : f32 to vector<16x1xf32>
    %552 = arith.divf %550, %551 : vector<16x1xf32>
    %553 = vector.broadcast %552 : vector<16x1xf32> to vector<16x128xf32>
    %554 = arith.subf %544, %553 : vector<16x128xf32>
    %555 = arith.mulf %554, %554 : vector<16x128xf32>
    %cst_212 = arith.constant dense<0.000000e+00> : vector<16xf32>
    %556 = vector.multi_reduction <add>, %555, %cst_212 [1] : vector<16x128xf32> to vector<16xf32>
    %557 = vector.shape_cast %556 : vector<16xf32> to vector<16x1xf32>
    %cst_213 = arith.constant 1.280000e+02 : f32
    %558 = vector.broadcast %cst_213 : f32 to vector<16x1xf32>
    %559 = arith.divf %557, %558 : vector<16x1xf32>
    %560 = vector.broadcast %552 : vector<16x1xf32> to vector<16x128xf32>
    %561 = arith.subf %544, %560 : vector<16x128xf32>
    %cst_214 = arith.constant 9.99999974E-6 : f32
    %562 = vector.broadcast %cst_214 : f32 to vector<16x1xf32>
    %563 = arith.addf %559, %562 : vector<16x1xf32>
    %564 = math.rsqrt %563 : vector<16x1xf32>
    %565 = vector.broadcast %564 : vector<16x1xf32> to vector<16x128xf32>
    %566 = arith.mulf %561, %565 : vector<16x128xf32>
    %567 = vector.broadcast %546 : vector<1x128xf32> to vector<16x128xf32>
    %568 = arith.mulf %566, %567 : vector<16x128xf32>
    %569 = vector.broadcast %548 : vector<1x128xf32> to vector<16x128xf32>
    %570 = arith.addf %568, %569 : vector<16x128xf32>
    %c0_215 = arith.constant 0 : index
    %c0_216 = arith.constant 0 : index
    %571 = vector.load %arg13[%c0_215, %c0_216] : memref<16x128xf32, #tpu.memory_space<vmem>>, vector<16x128xf32>
    tpu.vector_store %arg13[%c0_215, %c0_216], %570 {strides = array<i32>} : memref<16x128xf32, #tpu.memory_space<vmem>>, vector<16x128xf32>,
    return
  }
}

</mosaic_0001>

<bundles_post_ra>
// kernel: tpu_custom_call.1
= control target key start
LH: loop header
LB: loop body
LE: loop exit
PB: predicated region body
PF: predicated region fallthrough
CT: control target
= control target key end

     0   :  { %18 = vsyncpa [#allocation3], 0  ;;  %s4659_s0 = inlined_call_operand.hbm [shape: f32[16,128], index: 0, kind: input, shape index: {}]   ;;  %s4660_s1 = inlined_call_operand.hbm [shape: bf16[2,128,384], index: 1, kind: input, shape index: {}]   ;;  %s4661_s2 = inlined_call_operand.hbm [shape: f32[2,1,384], index: 2, kind: input, shape index: {}]   ;;  %s4662_s3 = inlined_call_operand.hbm [shape: bf16[2,128,128], index: 3, kind: input, shape index: {}]   ;;  %s4663_s4 = inlined_call_operand.vmem [shape: f32[2,1,128], index: 4, kind: input, shape index: {}]   ;;  %s4664_s5 = inlined_call_operand.hbm [shape: f32[2,1,128], index: 5, kind: input, shape index: {}]   ;;  %s4665_s6 = inlined_call_operand.hbm [shape: f32[2,1,128], index: 6, kind: input, shape index: {}]   ;;  %s4666_s7 = inlined_call_operand.hbm [shape: bf16[2,128,256], index: 7, kind: input, shape index: {}]   ;;  %s4667_s8 = inlined_call_operand.vmem [shape: f32[2,1,256], index: 8, kind: input, shape index: {}]   ;;  %s4668_s9 = inlined_call_operand.hbm [shape: bf16[2,256,128], index: 9, kind: input, shape index: {}]   ;;  %s4669_s10 = inlined_call_operand.vmem [shape: f32[2,1,128], index: 10, kind: input, shape index: {}]   ;;  %s4670_s11 = inlined_call_operand.vmem [shape: f32[2,1,128], index: 11, kind: input, shape index: {}]   ;;  %s4671_s12 = inlined_call_operand.hbm [shape: f32[2,1,128], index: 12, kind: input, shape index: {}]   ;;  %s4672_s13 = inlined_call_operand.hbm [shape: f32[16,128], index: 13, kind: output, shape index: {}]  }
   0x1   :  { %19 = vsyncpa [#allocation6], 0 }
   0x2   :  { %20 = vsyncpa [#allocation9], 0 }
   0x3   :  { %21 = vsyncpa [#allocation12], 0 }
   0x4   :  { %22 = vsyncpa [#allocation15], 0  ;;  %s41_s27 = sshll.u32 %s4660_s1, 4  ;;  %s42_s27 = int_to_ptr.hbm [resolvable:$true] %s41_s27 }
   0x5   :  { %23 = vsyncpa [#allocation4], 0  ;;  %s4092_s28 = smov [#allocation5]   ;;  %s67_s15 = sshll.u32 %s4662_s3, 4  ;;  %s68_s15 = int_to_ptr.hbm [resolvable:$true] %s67_s15 }
   0x6   :  { %s43_s29 = sshll.u32 %s4092_s28, 4  ;;  %s4093_s16 = smov 192   ;;  %s44_s29 = int_to_ptr.vmem [resolvable:$true] %s43_s29 }
   0x7   :  { %s4094_s17 = smov 12   ;;  %s4095_s18 = smov [#allocation8]  }
   0x8   :  { %49 = dma.hbm_to_vmem [thread:$0]  %s42_s27, 6144, %s44_s29, [#allocation6], %s4093_s16, %s4093_s16, %s4094_s17  }
   0x9   :  { %s69_s19 = sshll.u32 %s4095_s18, 4  ;;  %s4096_s20 = smov 64   ;;  %s70_s19 = int_to_ptr.vmem [resolvable:$true] %s69_s19 }
   0xa   :  { %s4097_s21 = smov 4   ;;  %s95_s23 = sshll.u32 %s4665_s6, 4  ;;  %s96_s23 = int_to_ptr.hbm [resolvable:$true] %s95_s23 }
   0xb   :  { %75 = dma.hbm_to_vmem [thread:$0]  %s68_s15, 2048, %s70_s19, [#allocation9], %s4096_s20, %s4096_s20, %s4097_s21  }
   0xc   :  { %s4098_s24 = smov [#allocation11]   ;;  %s123_s27 = sshll.u32 %s4668_s9, 4  ;;  %s124_s27 = int_to_ptr.hbm [resolvable:$true] %s123_s27 }
   0xd   :  { %s97_s25 = sshll.u32 %s4098_s24, 4  ;;  %s4099_s28 = smov 16   ;;  %s98_s25 = int_to_ptr.vmem [resolvable:$true] %s97_s25 }
   0xe   :  { %s4100_s29 = smov 1   ;;  %s4101_s30 = smov [#allocation14]  }
   0xf   :  { %103 = dma.hbm_to_vmem [thread:$0]  %s96_s23, 32, %s98_s25, [#allocation12], %s4099_s28, %s4099_s28, %s4100_s29  }
  0x10   :  { %s125_s14 = sshll.u32 %s4101_s30, 4  ;;  %s28_s6 = sshll.u32 %s4659_s0, 4  ;;  %s126_s14 = int_to_ptr.vmem [resolvable:$true] %s125_s14  ;;  %s29_s6 = int_to_ptr.hbm [resolvable:$true] %s28_s6 }
  0x11   :  { %131 = dma.hbm_to_vmem [thread:$0]  %s124_s27, 4096, %s126_s14, [#allocation15], %s4096_s20, %s4096_s20, %s4097_s21  }
  0x12   :  { %s4102_s17 = smov [#allocation2]   ;;  %s54_s1 = sshll.u32 %s4661_s2, 4  ;;  %s55_s1 = int_to_ptr.hbm [resolvable:$true] %s54_s1 }
  0x13   :  { %s30_s9 = sshll.u32 %s4102_s17, 4  ;;  %s4103_s22 = smov 128   ;;  %s31_s9 = int_to_ptr.vmem [resolvable:$true] %s30_s9 }
  0x14   :  { %s4104_s23 = smov 8   ;;  %s4105_s0 = smov [#allocation7]  }
  0x15   :  { %36 = dma.hbm_to_vmem [thread:$0]  %s29_s6, 256, %s31_s9, [#allocation3], %s4103_s22, %s4103_s22, %s4104_s23  }
  0x16   :  { %s56_s24 = sshll.u32 %s4105_s0, 4  ;;  %s4106_s25 = smov 48   ;;  %s57_s24 = int_to_ptr.vmem [resolvable:$true] %s56_s24 }
  0x17   :  { %s4107_s3 = smov 3   ;;  %s82_s27 = sshll.u32 %s4664_s5, 4  ;;  %s83_s27 = int_to_ptr.hbm [resolvable:$true] %s82_s27 }
  0x18   :  { %62 = dma.hbm_to_vmem [thread:$0]  %s55_s1, 96, %s57_s24, [#allocation6], %s4106_s25, %s4106_s25, %s4107_s3  }
  0x19   :  { %s4108_s30 = smov [#allocation10]   ;;  %s108_s16 = sshll.u32 %s4666_s7, 4  ;;  %s109_s16 = int_to_ptr.hbm [resolvable:$true] %s108_s16 }
  0x1a   :  { %s84_s2 = sshll.u32 %s4108_s30, 4  ;;  %s4109_s6 = smov [#allocation13]   ;;  %s85_s2 = int_to_ptr.vmem [resolvable:$true] %s84_s2 }
  0x1b   :  { %90 = dma.hbm_to_vmem [thread:$0]  %s83_s27, 32, %s85_s2, [#allocation9], %s4099_s28, %s4099_s28, %s4100_s29  }
  0x1c   :  { %s110_s17 = sshll.u32 %s4109_s6, 4  ;;  %s140_s19 = sshll.u32 %s4671_s12, 4  ;;  %s111_s17 = int_to_ptr.vmem [resolvable:$true] %s110_s17  ;;  %s141_s19 = int_to_ptr.hbm [resolvable:$true] %s140_s19 }
  0x1d   :  { %116 = dma.hbm_to_vmem [thread:$0]  %s109_s16, 4096, %s111_s17, [#allocation12], %s4103_s22, %s4103_s22, %s4104_s23  }
  0x1e   :  { %s4110_s5 = smov [#allocation16]  }
  0x1f   :  { %s142_s1 = sshll.u32 %s4110_s5, 4  ;;  %s143_s1 = int_to_ptr.vmem [resolvable:$true] %s142_s1 }
  0x20   :  { %148 = dma.hbm_to_vmem [thread:$0]  %s141_s19, 32, %s143_s1, [#allocation15], %s4099_s28, %s4099_s28, %s4100_s29  }
  0x21   :  { %4080 = dma.done.wait [#allocation3], 256  }
  0x22   :  { %4081 = vsyncadd [#allocation3], 4294967040 }
  0x23   :  { %4082 = dma.done.wait [#allocation6], 6240  }
  0x24   :  { %4083 = vsyncadd [#allocation6], 4294961056 }
  0x25   :  { %4084 = dma.done.wait [#allocation9], 2080  }
  0x26   :  { %4085 = vsyncadd [#allocation9], 4294965216 }
  0x27   :  { %4086 = dma.done.wait [#allocation12], 4128  }
  0x28   :  { %4087 = vsyncadd [#allocation12], 4294963168 }
  0x29   :  { %4088 = dma.done.wait [#allocation15], 4128  }
  0x2a   :  { %4089 = vsyncadd [#allocation15], 4294963168  ;;  %v3117_v0 = vld [vmem:[#allocation5 + $0xa8] sm:$0xf]  ;;  %v3617_v1 = vld [vmem:[#allocation5 + $0xb0] sm:$0xf0] }
  0x2b   :  { %v3616_v2 = vld [vmem:[#allocation5 + $0xac] sm:$0xf]  ;;  %v3118_v3 = vor.u32 %v3617_v1, %v3117_v0  ;;  %v3119_v4 = vld [vmem:[#allocation5 + $0xb4] sm:$0xf0]  ;;  %v3105_v5 = vld [vmem:[#allocation5 + $0x90] sm:$0xf] }
  0x2c   :  { %v3614_v6 = vld [vmem:[#allocation5 + $0x98] sm:$0xf0]  ;;  %v3122_v7 = vor.u32 %v3616_v2, %v3119_v4  ;;  %v3613_v8 = vld [vmem:[#allocation5 + $0x94] sm:$0xf]  ;;  %v3107_v9 = vld [vmem:[#allocation5 + $0x9c] sm:$0xf0] }
  0x2d   :  { %374 = vmatpush.bf16.msra.mxu0 %v3118_v3  ;;  %v3106_v10 = vor.u32 %v3614_v6, %v3105_v5  ;;  %v3110_v11 = vor.u32 %v3613_v8, %v3107_v9  ;;  %v3093_v12 = vld [vmem:[#allocation5 + $0x78] sm:$0xf]  ;;  %v3611_v13 = vld [vmem:[#allocation5 + $0x80] sm:$0xf0]  ;;  %v3610_v14 = vld [vmem:[#allocation5 + $0x7c] sm:$0xf] }
  0x2e   :  { %388 = vmatpush.bf16.msra.mxu1 %v3122_v7  ;;  %v3095_v15 = vld [vmem:[#allocation5 + $0x84] sm:$0xf0]  ;;  %v3094_v16 = vor.u32 %v3611_v13, %v3093_v12  ;;  %v3081_v18 = vld [vmem:[#allocation5 + $0x60] sm:$0xf]  ;;  %v3608_v19 = vld [vmem:[#allocation5 + $0x68] sm:$0xf0] }
  0x2f   :  { %v3098_v17 = vor.u32 %v3610_v14, %v3095_v15  ;;  %v3607_v20 = vld [vmem:[#allocation5 + $0x64] sm:$0xf]  ;;  %v3083_v21 = vld [vmem:[#allocation5 + $0x6c] sm:$0xf0]  ;;  %v3082_v22 = vor.u32 %v3608_v19, %v3081_v18  ;;  %v3069_v23 = vld [vmem:[#allocation5 + $0x48] sm:$0xf] }
  0x30   :  { %v3125_v24 = vld [vmem:[#allocation5 + $0xb0] sm:$0xf]  ;;  %v3618_v25 = vld [vmem:[#allocation5 + $0xb8] sm:$0xf0]  ;;  %v3086_v26 = vor.u32 %v3607_v20, %v3083_v21  ;;  %v3605_v27 = vld [vmem:[#allocation5 + $0x50] sm:$0xf0] }
  0x31   :  { %375 = vmatpush.bf16.msra.mxu0 %v3106_v10  ;;  %v3126_v28 = vor.u32 %v3618_v25, %v3125_v24  ;;  %v3113_v29 = vld [vmem:[#allocation5 + $0x98] sm:$0xf]  ;;  %v3615_v30 = vld [vmem:[#allocation5 + $0xa0] sm:$0xf0]  ;;  %v3604_v31 = vld [vmem:[#allocation5 + $0x4c] sm:$0xf]  ;;  %v3070_v34 = vor.u32 %v3605_v27, %v3069_v23 }
  0x32   :  { %389 = vmatpush.bf16.msra.mxu1 %v3110_v11  ;;  %v3071_v32 = vld [vmem:[#allocation5 + $0x54] sm:$0xf0]  ;;  %v3114_v33 = vor.u32 %v3615_v30, %v3113_v29  ;;  %v3057_v35 = vld [vmem:[#allocation5 + $0x30] sm:$0xf]  ;;  %v3101_v36 = vld [vmem:[#allocation5 + $0x80] sm:$0xf] }
  0x33   :  { %402 = vmatpush.bf16.msra.mxu2 %v3126_v28  ;;  %v3612_v37 = vld [vmem:[#allocation5 + $0x88] sm:$0xf0]  ;;  %v3074_v38 = vor.u32 %v3604_v31, %v3071_v32  ;;  %v3602_v39 = vld [vmem:[#allocation5 + $0x38] sm:$0xf0]  ;;  %v3601_v40 = vld [vmem:[#allocation5 + $0x34] sm:$0xf] }
  0x34   :  { %v3059_v41 = vld [vmem:[#allocation5 + $0x3c] sm:$0xf0]  ;;  %v3089_v42 = vld [vmem:[#allocation5 + $0x68] sm:$0xf]  ;;  %v3609_v43 = vld [vmem:[#allocation5 + $0x70] sm:$0xf0]  ;;  %v3102_v46 = vor.u32 %v3612_v37, %v3101_v36  ;;  %v3058_v47 = vor.u32 %v3602_v39, %v3057_v35 }
  0x35   :  { %376 = vmatpush.bf16.msra.mxu0 %v3094_v16  ;;  %v3045_v44 = vld [vmem:[#allocation5 + $0x18] sm:$0xf]  ;;  %v3599_v45 = vld [vmem:[#allocation5 + $0x20] sm:$0xf0]  ;;  %v3062_v48 = vor.u32 %v3601_v40, %v3059_v41  ;;  %v3598_v49 = vld [vmem:[#allocation5 + $0x1c] sm:$0xf]  ;;  %v3090_v51 = vor.u32 %v3609_v43, %v3089_v42 }
  0x36   :  { %390 = vmatpush.bf16.msra.mxu1 %v3098_v17  ;;  %v3047_v50 = vld [vmem:[#allocation5 + $0x24] sm:$0xf0]  ;;  %v3046_v52 = vor.u32 %v3599_v45, %v3045_v44  ;;  %v3077_v53 = vld [vmem:[#allocation5 + $0x50] sm:$0xf]  ;;  %v3606_v54 = vld [vmem:[#allocation5 + $0x58] sm:$0xf0] }
  0x37   :  { %403 = vmatpush.bf16.msra.mxu2 %v3114_v33  ;;  %v3050_v55 = vor.u32 %v3598_v49, %v3047_v50  ;;  %v3033_v56 = vld [vmem:[#allocation5] sm:$0xf]  ;;  %v3596_v57 = vld [vmem:[#allocation5 + $0x8] sm:$0xf0]  ;;  %v3595_v58 = vld [vmem:[#allocation5 + $0x4] sm:$0xf]  ;;  %v3078_v61 = vor.u32 %v3606_v54, %v3077_v53 }
  0x38   :  { %v3035_v59 = vld [vmem:[#allocation5 + $0xc] sm:$0xf0]  ;;  %v3034_v62 = vor.u32 %v3596_v57, %v3033_v56  ;;  %v4233_v63 = vld [vmem:[#allocation2 + $0x8] sm:$0xff]  ;;  %v3603_v1 = vld [vmem:[#allocation5 + $0x40] sm:$0xf0]  ;;  %vm422_vm0 = vcmask 261120  }
  0x39   :  { %377 = vmatpush.bf16.msra.mxu0 %v3082_v22  ;;  %v4231_v60 = vld [vmem:[#allocation2] sm:$0xff]  ;;  %v3065_v0 = vld [vmem:[#allocation5 + $0x38] sm:$0xf]  ;;  %v3038_v2 = vor.u32 %v3595_v58, %v3035_v59  ;;  %v3053_v5 = vld [vmem:[#allocation5 + $0x20] sm:$0xf]  ;;  %s4111_s7 = smov 96  }
  0x3a   :  { %391 = vmatpush.bf16.msra.mxu1 %v3086_v26  ;;  %v238_v3 = vpack.c.bf16 %v4233_v63, %v4231_v60  ;;  %v3066_v4 = vor.u32 %v3603_v1, %v3065_v0  ;;  %v3600_v6 = vld [vmem:[#allocation5 + $0x28] sm:$0xf0]  ;;  %v3041_v8 = vld [vmem:[#allocation5 + $0x8] sm:$0xf]  ;;  %v3597_v9 = vld [vmem:[#allocation5 + $0x10] sm:$0xf0] }
  0x3b   :  { %404 = vmatpush.bf16.msra.mxu2 %v3102_v46  ;;  %v3054_v7 = vor.u32 %v3600_v6, %v3053_v5  ;;  %v3042_v10 = vor.u32 %v3597_v9, %v3041_v8  ;;  %v4237_v11 = vld [vmem:[#allocation7] sm:$0x7]  ;;  %vm472_vm1 = vcmask 1043456   ;;  %vm443_vm2 = vcmask 64512   ;;  %v4271_v56 = vld [vmem:[#allocation8 + $0x8] sm:$0xff]  ;;  %v4276_v59 = vld [vmem:[#allocation8] sm:$0xff] }
  0x3c   :  { %v240_v12 = vperm.slane %v4237_v11, 0  ;;  %v241_v13 = vperm.slane %v4237_v11, 1  ;;  %v242_v25 = vperm.slane %v4237_v11, 2  ;;  %s4112_s12 = smov 32   ;;  %s4114_s15 = smov [#allocation17]  }
  0x3d   :  { %378 = vmatpush.bf16.msra.mxu0 %v3070_v34  ;;  %s3012_s16 = sshll.u32 %s4114_s15, 4  ;;  %s3013_s16 = int_to_ptr.vmem [resolvable:$true] %s3012_s16 }
  0x3e   :  { %392 = vmatpush.bf16.msra.mxu1 %v3074_v38 }
  0x3f   :  { %405 = vmatpush.bf16.msra.mxu2 %v3090_v51 }
  0x41   :  { %379 = vmatpush.bf16.msra.mxu0 %v3058_v47 }
  0x42   :  { %393 = vmatpush.bf16.msra.mxu1 %v3062_v48 }
  0x43   :  { %406 = vmatpush.bf16.msra.mxu2 %v3078_v61 }
  0x45   :  { %380 = vmatpush.bf16.msra.mxu0 %v3046_v52 }
  0x46   :  { %394 = vmatpush.bf16.msra.mxu1 %v3050_v55 }
  0x47   :  { %407 = vmatpush.bf16.msra.mxu2 %v3066_v4 }
  0x49   :  { %381 = vmatpush.bf16.msra.mxu0 %v3034_v62 }
  0x4a   :  { %395 = vmatpush.bf16.msra.mxu1 %v3038_v2 }
  0x4b   :  { %408 = vmatpush.bf16.msra.mxu2 %v3054_v7 }
  0x4c   :  { %382 = vmatmul.bf16.vlgmr.msra.gmra.mxu0 %v238_v3 }
  0x4d   :  { %396 = vmatmul.bf16.vlgmr.msra.gmra.mxu1 %v238_v3 }
  0x4f   :  { %409 = vmatpush.bf16.msra.mxu2 %v3042_v10 }
  0x52   :  { %410 = vmatmul.bf16.vlgmr.msra.gmra.mxu2 %v238_v3 }
  0x53   :  { %619 = vmatpush.bf16.msrb.mxu2 %v4271_v56 }
  0x57   :  { %620 = vmatpush.bf16.msrb.mxu2 %v4276_v59 }
  0xc9   :  { %v383_v14 = vpop.f32.mrf.mxu0 }
  0xca   :  { %v397_v15 = vpop.f32.mrf.mxu1  ;;  %v384_v16 = vadd.f32 %v383_v14, %v240_v12 }
  0xcb   :  { %v398_v17 = vadd.f32 %v397_v15, %v241_v13 }
  0xcc   :  { %v416_v19 = vpack.c.bf16 %v384_v16, %v384_v16 }
  0xcd   :  { %v418_v18 = vpack.c.bf16 %v398_v17, %v398_v17 }
  0xce   :  { %v491_v23 = vunpack.c.l.b16 %v416_v19 }
  0xcf   :  { %v496_v20 = vunpack.c.l.b16 %v418_v18  ;;  %v427_v21 = vsel %vm422_vm0, %v418_v18, 0 }
  0xd0   :  { %436 = vmatpush.bf16.xpose.msra.mxu3 %v427_v21  ;;  %v4252_v24 = vpack.c.b16 %v491_v23, %v491_v23 }
  0xd1   :  { %v4246_v22 = vpack.c.b16 %v496_v20, %v496_v20 }
  0xd3   :  { %628 = vrot.lane.b32.xlu2 %v4246_v22, %s4096_s20  ;;  %498 = vrot.lane.b32.xlu1 %v4246_v22, %s4111_s7 }
  0xd5   :  { %v411_v26 = vpop.f32.mrf.mxu2 }
  0xd6   :  { %v412_v27 = vadd.f32 %v411_v26, %v242_v25 }
  0xd7   :  { %3127 = vmatmul.msk.bf16.vlgmr.msra.gmra.mxu3 %vm422_vm0, %v416_v19 }
  0xd8   :  { %v4262_v28 = vpack.c.bf16 %v412_v27, %v412_v27 }
  0xda   :  { %v474_v29 = vsel %vm472_vm1, %v4262_v28, 0  ;;  %v546_v7 = vunpack.c.l.b16 %v4262_v28 }
  0xdb   :  { %626 = vrot.lane.b32.xlu2 %v4252_v24, %s4096_s20  ;;  %493 = vrot.lane.b32.xlu1 %v4252_v24, %s4111_s7 }
  0xdc   :  { %483 = vmatpush.bf16.msrb.mxu3 %v474_v29  ;;  %v4283_v9 = vpack.c.b16 %v546_v7, %v546_v7 }
  0xdd   :  { %v413_v14 = vpop.f32.mrf.mxu2 }
 0x12d   :  { %v629_v53 = vpop.permute.xlu2 %628 }
 0x12e   :  { %v634_v55 = vsel %vm422_vm0, %v629_v53, 0 }
 0x135   :  { %v627_v58 = vpop.permute.xlu2 %626 }
 0x145   :  { %v499_v30 = vpop.permute.xlu1 %498 }
 0x146   :  { %v504_v31 = vsel %vm422_vm0, %v499_v30, 0 }
 0x147   :  { %513 = vmatpush.bf16.xpose.msra.mxu3 %v504_v31 }
 0x14d   :  { %v494_v57 = vpop.permute.xlu1 %493 }
 0x15a   :  { %v438_v32 = vpop.f32.mrf.mxu3 }
 0x15b   :  { %v442_v33 = vmul.f32 0.17677669, %v438_v32  ;;  %v414_v32 = vadd.f32 %v413_v14, %v242_v25  ;;  %v4310_v25 = vld [vmem:[#allocation8 + $0x28] sm:$0xff] }
 0x15d   :  { %v444_v34 = vsel %vm443_vm2, %v442_v33, -inf }
 0x15e   :  { %445 = vmax.xlane.f32.xlu0 %v444_v34 }
 0x162   :  { %v440_v35 = vpop.f32.mrf.mxu3 }
 0x1d1   :  { %v446_v36 = vpop.xlane.xlu0 %445 }
 0x1d2   :  { %v447_v37 = vsub.f32 %v442_v33, %v446_v36  ;;  %v4300_v33 = vpack.c.bf16 %v414_v32, %v414_v32 }
 0x1d4   :  { %v448_v38 = vmul.f32 1.442695, %v447_v37  ;;  %v4302_v37 = vld [vmem:[#allocation8 + $0x18] sm:$0xff] }
 0x1d5   :  { %591 = vmatpush.bf16.msrb.mxu1 %v4302_v37 }
 0x1d6   :  { %3758 = vpow2.f32 %v448_v38 }
 0x1dc   :  { %v3759_v39 = vpop.eup %3758 }
 0x1dd   :  { %v450_v40 = vsel %vm443_vm2, %v3759_v39, 0.0 }
 0x1de   :  { %451 = vadd.xlane.f32.xlu0 %v450_v40  ;;  %v4308_v40 = vld [vmem:[#allocation8 + $0x10] sm:$0xff] }
 0x1df   :  { %592 = vmatpush.bf16.msrb.mxu1 %v4308_v40 }
 0x1e3   :  { %718 = vmatpush.bf16.msra.mxu1 %v4310_v25 }
 0x251   :  { %v452_v41 = vpop.xlane.xlu0 %451 }
 0x252   :  { %3760 = vrcp.f32 %v452_v41  ;;  %v464_v45 = vand.u32 2147483648, %v452_v41  ;;  %v462_v47 = vand.u32 2147483647, %v452_v41  ;;  %vm458_vm4 = vweird.f32 %v452_v41 }
 0x254   :  { %v465_v49 = vor.u32 1.1754944e-38, %v464_v45  ;;  %vm463_vm6 = vcmp.eq.f32.partialorder %v462_v47, 8.507059e+37 }
 0x258   :  { %v3761_v42 = vpop.eup %3760 }
 0x259   :  { %v454_v43 = vmul.f32 %v3761_v42, %v452_v41  ;;  %vm459_vm3 = vweird.f32 %v3761_v42 }
 0x25a   :  { %vm460_vm5 = vmor %vm458_vm4, %vm459_vm3 }
 0x25b   :  { %v455_v44 = vsub.f32 1.0, %v454_v43 }
 0x25d   :  { %v456_v46 = vmul.f32 %v3761_v42, %v455_v44 }
 0x25f   :  { %v457_v48 = vadd.f32 %v3761_v42, %v456_v46 }
 0x261   :  { %v461_v50 = vsel %vm460_vm5, %v3761_v42, %v457_v48 }
 0x262   :  { %v466_v51 = vsel %vm463_vm6, %v465_v49, %v461_v50 }
 0x263   :  { %v467_v52 = vmul.f32 %v3759_v39, %v466_v51 }
 0x265   :  { %v468_v54 = vpack.c.bf16 %v467_v52, %v467_v52 }
 0x267   :  { %3128 = vmatmul.msk.bf16.vlgmr.msrb.gmra.mxu3 %vm443_vm2, %v468_v54 }
 0x268   :  { %643 = vmatpush.bf16.xpose.msrb.mxu3 %v634_v55 }
 0x277   :  { %3129 = vmatmul.msk.bf16.vlgmr.msra.gmra.mxu3 %vm422_vm0, %v494_v57 }
 0x287   :  { %3149 = vmatmul.msk.bf16.vlgmr.msrb.gmra.mxu3 %vm422_vm0, %v627_v58 }
 0x2ea   :  { %v485_v61 = vpop.f32.mrf.mxu3 }
 0x2eb   :  { %v489_v62 = vpack.c.bf16 %v485_v61, %v485_v61 }
 0x2ed   :  { %3148 = vmatmul.msk.bf16.vlgmr.msrb.gmra.mxu2 %vm422_vm0, %v489_v62 }
 0x2f2   :  { %v487_v0 = vpop.f32.mrf.mxu3 }
 0x2fa   :  { %v515_v1 = vpop.f32.mrf.mxu3 }
 0x2fb   :  { %v519_v2 = vmul.f32 0.17677669, %v515_v1 }
 0x2fd   :  { %v520_v3 = vsel %vm443_vm2, %v519_v2, -inf }
 0x2fe   :  { %521 = vmax.xlane.f32.xlu0 %v520_v3 }
 0x302   :  { %v517_v4 = vpop.f32.mrf.mxu3 }
 0x303   :  { %v3623_v4 = vld [vmem:[#allocation8 + $0x20] sm:$0xff] }
 0x304   :  { %719 = vmatpush.bf16.msra.mxu1 %v3623_v4 }
 0x30a   :  { %v645_v5 = vpop.f32.mrf.mxu3 }
 0x30b   :  { %v649_v6 = vmul.f32 0.17677669, %v645_v5  ;;  %v385_v5 = vpop.f32.mrf.mxu0 }
 0x30d   :  { %v650_v8 = vsel %vm443_vm2, %v649_v6, -inf }
 0x30e   :  { %651 = vmax.xlane.f32.xlu1 %v650_v8 }
 0x312   :  { %548 = vrot.lane.b32.xlu0 %v4283_v9, %s4111_s7  ;;  %v647_v10 = vpop.f32.mrf.mxu3 }
 0x327   :  { %726 = vrot.lane.b32.xlu1 %v4252_v24, %s4112_s12 }
 0x370   :  { %v4289_v15 = vpop.f32.mrf.mxu2 }
 0x371   :  { %v522_v16 = vpop.xlane.xlu0 %521 }
 0x372   :  { %v523_v17 = vsub.f32 %v519_v2, %v522_v16 }
 0x374   :  { %v524_v18 = vmul.f32 1.442695, %v523_v17 }
 0x376   :  { %3762 = vpow2.f32 %v524_v18 }
 0x378   :  { %v624_v19 = vpop.f32.mrf.mxu2 }
 0x37c   :  { %v3763_v20 = vpop.eup %3762 }
 0x37d   :  { %v526_v21 = vsel %vm443_vm2, %v3763_v20, 0.0 }
 0x37e   :  { %527 = vadd.xlane.f32.xlu2 %v526_v21 }
 0x381   :  { %v652_v23 = vpop.xlane.xlu1 %651 }
 0x382   :  { %v653_v26 = vsub.f32 %v649_v6, %v652_v23  ;;  %v399_v6 = vpop.f32.mrf.mxu1  ;;  %v386_v23 = vadd.f32 %v385_v5, %v240_v12 }
 0x383   :  { %v400_v7 = vadd.f32 %v399_v6, %v241_v13 }
 0x384   :  { %v654_v27 = vmul.f32 1.442695, %v653_v26  ;;  %v549_v28 = vpop.permute.xlu0 %548 }
 0x385   :  { %v554_v29 = vsel %vm472_vm1, %v549_v28, 0  ;;  %v419_v8 = vpack.c.bf16 %v400_v7, %v400_v7 }
 0x386   :  { %3764 = vpow2.f32 %v654_v27  ;;  %563 = vmatpush.bf16.msrb.mxu0 %v554_v29  ;;  %v417_v27 = vpack.c.bf16 %v386_v23, %v386_v23 }
 0x387   :  { %v830_v18 = vsel %vm422_vm0, %v419_v8, 0 }
 0x388   :  { %v892_v28 = vunpack.c.l.b16 %v417_v27 }
 0x38c   :  { %v3765_v24 = vpop.eup %3764 }
 0x38d   :  { %v656_v30 = vsel %vm443_vm2, %v3765_v24, 0.0 }
 0x38e   :  { %657 = vadd.xlane.f32.xlu0 %v656_v30 }
 0x396   :  { %728 = vrot.lane.b32.xlu2 %v4246_v22, %s4112_s12  ;;  %v875_v22 = vsel %vm472_vm1, %v4300_v33, 0 }
 0x399   :  { %v727_v45 = vpop.permute.xlu1 %726 }
 0x3a2   :  { %675 = vrot.lane.b32.xlu0 %v4283_v9, %s4096_s20 }
 0x3f1   :  { %v528_v31 = vpop.xlane.xlu2 %527 }
 0x3f2   :  { %3766 = vrcp.f32 %v528_v31  ;;  %v540_v42 = vand.u32 2147483648, %v528_v31  ;;  %v538_v43 = vand.u32 2147483647, %v528_v31  ;;  %vm534_vm8 = vweird.f32 %v528_v31 }
 0x3f4   :  { %v541_v46 = vor.u32 1.1754944e-38, %v540_v42  ;;  %vm539_vm10 = vcmp.eq.f32.partialorder %v538_v43, 8.507059e+37 }
 0x3f8   :  { %v3767_v34 = vpop.eup %3766 }
 0x3f9   :  { %v530_v35 = vmul.f32 %v3767_v34, %v528_v31  ;;  %v729_v36 = vpop.permute.xlu2 %728  ;;  %vm535_vm7 = vweird.f32 %v3767_v34 }
 0x3fa   :  { %v734_v38 = vsel %vm422_vm0, %v729_v36, 0  ;;  %vm536_vm9 = vmor %vm534_vm8, %vm535_vm7 }
 0x3fb   :  { %v531_v39 = vsub.f32 1.0, %v530_v35  ;;  %743 = vmatpush.bf16.xpose.msra.mxu2 %v734_v38 }
 0x3fd   :  { %v532_v41 = vmul.f32 %v3767_v34, %v531_v39 }
 0x3ff   :  { %v533_v44 = vadd.f32 %v3767_v34, %v532_v41 }
 0x401   :  { %v658_v47 = vpop.xlane.xlu0 %657  ;;  %v537_v48 = vsel %vm536_vm9, %v3767_v34, %v533_v44 }
 0x402   :  { %3768 = vrcp.f32 %v658_v47  ;;  %3160 = vmatmul.msk.bf16.vlgmr.msra.gmra.mxu2 %vm422_vm0, %v727_v45  ;;  %v542_v49 = vsel %vm539_vm10, %v541_v46, %v537_v48  ;;  %v670_v55 = vand.u32 2147483648, %v658_v47  ;;  %v668_v58 = vand.u32 2147483647, %v658_v47 }
 0x403   :  { %884 = vmatpush.bf16.msrb.mxu2 %v875_v22  ;;  %v543_v50 = vmul.f32 %v3763_v20, %v542_v49  ;;  %vm664_vm12 = vweird.f32 %v658_v47 }
 0x404   :  { %v671_v62 = vor.u32 1.1754944e-38, %v670_v55  ;;  %vm669_vm14 = vcmp.eq.f32.partialorder %v668_v58, 8.507059e+37 }
 0x405   :  { %v544_v51 = vpack.c.bf16 %v543_v50, %v543_v50 }
 0x407   :  { %996 = vmatpush.bf16.msra.mxu2 %v4271_v56  ;;  %3130 = vmatmul.msk.bf16.vlgmr.msrb.gmra.mxu0 %vm443_vm2, %v544_v51 }
 0x408   :  { %v3769_v52 = vpop.eup %3768 }
 0x409   :  { %v660_v53 = vmul.f32 %v3769_v52, %v658_v47  ;;  %vm665_vm11 = vweird.f32 %v3769_v52 }
 0x40a   :  { %vm666_vm13 = vmor %vm664_vm12, %vm665_vm11 }
 0x40b   :  { %997 = vmatpush.bf16.msra.mxu2 %v4276_v59  ;;  %v661_v54 = vsub.f32 1.0, %v660_v53 }
 0x40d   :  { %v662_v57 = vmul.f32 %v3769_v52, %v661_v54 }
 0x40f   :  { %v663_v61 = vadd.f32 %v3769_v52, %v662_v57 }
 0x411   :  { %v667_v0 = vsel %vm666_vm13, %v3769_v52, %v663_v61 }
 0x412   :  { %v672_v56 = vsel %vm669_vm14, %v671_v62, %v667_v0 }
 0x413   :  { %v673_v1 = vmul.f32 %v3765_v24, %v672_v56  ;;  %v893_v24 = vpack.c.b16 %v892_v28, %v892_v28 }
 0x414   :  { %v676_v2 = vpop.permute.xlu0 %675 }
 0x415   :  { %v681_v59 = vsel %vm472_vm1, %v676_v2, 0  ;;  %v674_v3 = vpack.c.bf16 %v673_v1, %v673_v1  ;;  %v4348_v1 = vld [vmem:[#allocation8 + $0x38] sm:$0xff] }
 0x416   :  { %690 = vmatpush.bf16.msra.mxu0 %v681_v59 }
 0x419   :  { %3150 = vmatmul.msk.bf16.vlgmr.msra.gmra.mxu0 %vm443_vm2, %v674_v3  ;;  %v4351_v3 = vld [vmem:[#allocation8 + $0x30] sm:$0xff] }
 0x41a   :  { %818 = vmatpush.bf16.msrb.mxu0 %v4348_v1 }
 0x41e   :  { %819 = vmatpush.bf16.msrb.mxu0 %v4351_v3 }
 0x484   :  { %v565_v10 = vpop.f32.mrf.mxu0 }
 0x485   :  { %v745_v14 = vpop.f32.mrf.mxu2  ;;  %v569_v16 = vpack.c.bf16 %v565_v10, %v565_v10 }
 0x486   :  { %v749_v17 = vmul.f32 0.17677669, %v745_v14 }
 0x487   :  { %3139 = vmatmul.msk.bf16.vlgmr.msrb.gmra.mxu1 %vm422_vm0, %v569_v16 }
 0x488   :  { %v750_v19 = vsel %vm443_vm2, %v749_v17, -inf  ;;  %839 = vmatpush.bf16.xpose.msrb.mxu1 %v830_v18 }
 0x489   :  { %751 = vmax.xlane.f32.xlu1 %v750_v19 }
 0x48c   :  { %v567_v20 = vpop.f32.mrf.mxu0 }
 0x48d   :  { %v747_v21 = vpop.f32.mrf.mxu2 }
 0x496   :  { %v692_v26 = vpop.f32.mrf.mxu0 }
 0x497   :  { %v696_v13 = vpack.c.bf16 %v692_v26, %v692_v26 }
 0x499   :  { %3159 = vmatmul.msk.bf16.vlgmr.msra.gmra.mxu1 %vm422_vm0, %v696_v13 }
 0x49a   :  { %980 = vmatpush.bf16.msra.mxu1 %v4302_v37 }
 0x49e   :  { %v694_v29 = vpop.f32.mrf.mxu0  ;;  %981 = vmatpush.bf16.msra.mxu1 %v4308_v40 }
 0x4a2   :  { %894 = vrot.lane.b32.xlu1 %v893_v24, %s4111_s7 }
 0x4a9   :  { %3171 = vmatmul.msk.bf16.vlgmr.msrb.gmra.mxu1 %vm422_vm0, %v417_v27 }
 0x4aa   :  { %1083 = vmatpush.bf16.msrb.mxu1 %v4310_v25 }
 0x4ae   :  { %1084 = vmatpush.bf16.msrb.mxu1 %v3623_v4 }
 0x4fc   :  { %v752_v34 = vpop.xlane.xlu1 %751 }
 0x4fd   :  { %v753_v36 = vsub.f32 %v749_v17, %v752_v34 }
 0x4ff   :  { %v754_v37 = vmul.f32 1.442695, %v753_v36 }
 0x501   :  { %3770 = vpow2.f32 %v754_v37 }
 0x504   :  { %v594_v11 = vpop.f32.mrf.mxu1 }
 0x505   :  { %v623_v30 = vadd.f32 %v4289_v15, %v594_v11  ;;  %v897_v15 = vunpack.c.l.b16 %v419_v8 }
 0x507   :  { %v3771_v40 = vpop.eup %3770  ;;  %v898_v42 = vpack.c.b16 %v897_v15, %v897_v15 }
 0x508   :  { %v756_v41 = vsel %vm443_vm2, %v3771_v40, 0.0 }
 0x50c   :  { %v596_v12 = vpop.f32.mrf.mxu1 }
 0x514   :  { %v895_v21 = vpop.permute.xlu1 %894 }
 0x516   :  { %v721_v31 = vpop.f32.mrf.mxu1 }
 0x517   :  { %v4334_v32 = vadd.f32 %v721_v31, %v623_v30 }
 0x51e   :  { %v723_v35 = vpop.f32.mrf.mxu1 }
 0x526   :  { %v841_v38 = vpop.f32.mrf.mxu1 }
 0x527   :  { %v845_v39 = vmul.f32 0.17677669, %v841_v38 }
 0x529   :  { %v846_v22 = vsel %vm443_vm2, %v845_v39, -inf }
 0x52a   :  { %847 = vmax.xlane.f32.xlu0 %v846_v22 }
 0x52e   :  { %v843_v25 = vpop.f32.mrf.mxu1 }
 0x532   :  { %757 = vadd.xlane.f32.xlu0 %v756_v41 }
 0x546   :  { %775 = vrot.lane.b32.xlu0 %v4283_v9, %s4112_s12 }
 0x54e   :  { %1093 = vrot.lane.b32.xlu0 %v898_v42, %s4112_s12 }
 0x556   :  { %1005 = vrot.lane.b32.xlu0 %v898_v42, %s4096_s20 }
 0x55e   :  { %1091 = vrot.lane.b32.xlu0 %v893_v24, %s4112_s12 }
 0x59d   :  { %v848_v43 = vpop.xlane.xlu0 %847 }
 0x59e   :  { %v849_v44 = vsub.f32 %v845_v39, %v848_v43 }
 0x5a0   :  { %v850_v45 = vmul.f32 1.442695, %v849_v44 }
 0x5a2   :  { %3772 = vpow2.f32 %v850_v45 }
 0x5a5   :  { %v758_v46 = vpop.xlane.xlu0 %757 }
 0x5a6   :  { %3774 = vrcp.f32 %v758_v46  ;;  %v770_v51 = vand.u32 2147483648, %v758_v46  ;;  %v768_v53 = vand.u32 2147483647, %v758_v46  ;;  %vm764_vm3 = vweird.f32 %v758_v46 }
 0x5a8   :  { %v3773_v47 = vpop.eup %3772  ;;  %v771_v55 = vor.u32 1.1754944e-38, %v770_v51  ;;  %vm769_vm5 = vcmp.eq.f32.partialorder %v768_v53, 8.507059e+37  ;;  %v947_v51 = vunpack.c.l.b16 %v4300_v33  ;;  %v4381_v33 = vld [vmem:[%s4663_s4] ss:$0 sm:$0xff] }
 0x5a9   :  { %v852_v48 = vsel %vm443_vm2, %v3773_v47, 0.0 }
 0x5aa   :  { %853 = vadd.xlane.f32.xlu2 %v852_v48 }
 0x5ac   :  { %v3775_v49 = vpop.eup %3774 }
 0x5ad   :  { %v760_v9 = vmul.f32 %v3775_v49, %v758_v46  ;;  %vm765_vm15 = vweird.f32 %v3775_v49 }
 0x5ae   :  { %vm766_vm4 = vmor %vm764_vm3, %vm765_vm15 }
 0x5af   :  { %v761_v50 = vsub.f32 1.0, %v760_v9 }
 0x5b1   :  { %v762_v52 = vmul.f32 %v3775_v49, %v761_v50 }
 0x5b3   :  { %v763_v54 = vadd.f32 %v3775_v49, %v762_v52 }
 0x5b5   :  { %v767_v57 = vsel %vm766_vm4, %v3775_v49, %v763_v54  ;;  %v4370_v54 = vpack.c.b16 %v947_v51, %v947_v51 }
 0x5b6   :  { %v772_v58 = vsel %vm769_vm5, %v771_v55, %v767_v57 }
 0x5b7   :  { %v773_v61 = vmul.f32 %v3771_v40, %v772_v58 }
 0x5b8   :  { %v776_v62 = vpop.permute.xlu0 %775 }
 0x5b9   :  { %v781_v0 = vsel %vm472_vm1, %v776_v62, 0  ;;  %v774_v56 = vpack.c.bf16 %v773_v61, %v773_v61 }
 0x5ba   :  { %790 = vmatpush.bf16.msra.mxu3 %v781_v0 }
 0x5bd   :  { %3161 = vmatmul.msk.bf16.vlgmr.msra.gmra.mxu3 %vm443_vm2, %v774_v56 }
 0x5c0   :  { %v1094_v2 = vpop.permute.xlu0 %1093 }
 0x5c1   :  { %v1099_v28 = vsel %vm422_vm0, %v1094_v2, 0 }
 0x5c2   :  { %899 = vrot.lane.b32.xlu2 %v898_v42, %s4111_s7 }
 0x5c8   :  { %v1006_v5 = vpop.permute.xlu0 %1005 }
 0x5c9   :  { %v1011_v10 = vsel %vm422_vm0, %v1006_v5, 0 }
 0x5ca   :  { %1003 = vrot.lane.b32.xlu2 %v893_v24, %s4096_s20 }
 0x5d0   :  { %v1092_v15 = vpop.permute.xlu0 %1091 }
 0x61d   :  { %v854_v59 = vpop.xlane.xlu2 %853 }
 0x61e   :  { %3776 = vrcp.f32 %v854_v59  ;;  %v866_v16 = vand.u32 2147483648, %v854_v59  ;;  %v864_v18 = vand.u32 2147483647, %v854_v59  ;;  %vm860_vm7 = vweird.f32 %v854_v59 }
 0x620   :  { %v867_v20 = vor.u32 1.1754944e-38, %v866_v16  ;;  %vm865_vm9 = vcmp.eq.f32.partialorder %v864_v18, 8.507059e+37 }
 0x624   :  { %v3777_v4 = vpop.eup %3776 }
 0x625   :  { %v856_v6 = vmul.f32 %v3777_v4, %v854_v59  ;;  %v900_v7 = vpop.permute.xlu2 %899  ;;  %vm861_vm6 = vweird.f32 %v3777_v4 }
 0x626   :  { %v905_v8 = vsel %vm422_vm0, %v900_v7, 0  ;;  %vm862_vm8 = vmor %vm860_vm7, %vm861_vm6 }
 0x627   :  { %v857_v14 = vsub.f32 1.0, %v856_v6  ;;  %914 = vmatpush.bf16.xpose.msrb.mxu3 %v905_v8 }
 0x629   :  { %v858_v17 = vmul.f32 %v3777_v4, %v857_v14 }
 0x62b   :  { %v859_v19 = vadd.f32 %v3777_v4, %v858_v17 }
 0x62d   :  { %v863_v23 = vsel %vm862_vm8, %v3777_v4, %v859_v19  ;;  %v1004_v29 = vpop.permute.xlu2 %1003 }
 0x62e   :  { %v868_v26 = vsel %vm865_vm9, %v867_v20, %v863_v23  ;;  %3173 = vmatmul.msk.bf16.vlgmr.msrb.gmra.mxu3 %vm422_vm0, %v895_v21 }
 0x62f   :  { %1020 = vmatpush.bf16.xpose.msra.mxu3 %v1011_v10  ;;  %v869_v13 = vmul.f32 %v3773_v47, %v868_v26 }
 0x631   :  { %v870_v27 = vpack.c.bf16 %v869_v13, %v869_v13 }
 0x633   :  { %3172 = vmatmul.msk.bf16.vlgmr.msrb.gmra.mxu2 %vm443_vm2, %v870_v27 }
 0x634   :  { %1108 = vmatpush.bf16.xpose.msrb.mxu2 %v1099_v28 }
 0x63e   :  { %3177 = vmatmul.msk.bf16.vlgmr.msra.gmra.mxu3 %vm422_vm0, %v1004_v29 }
 0x640   :  { %v792_v24 = vpop.f32.mrf.mxu3 }
 0x641   :  { %v796_v11 = vpack.c.bf16 %v792_v24, %v792_v24 }
 0x643   :  { %3170 = vmatmul.msk.bf16.vlgmr.msrb.gmra.mxu0 %vm422_vm0, %v796_v11 }
 0x648   :  { %v794_v12 = vpop.f32.mrf.mxu3 }
 0x6b1   :  { %v916_v30 = vpop.f32.mrf.mxu3 }
 0x6b2   :  { %v920_v31 = vmul.f32 0.17677669, %v916_v30 }
 0x6b4   :  { %v921_v34 = vsel %vm443_vm2, %v920_v31, -inf }
 0x6b5   :  { %922 = vmax.xlane.f32.xlu1 %v921_v34 }
 0x6b6   :  { %v886_v35 = vpop.f32.mrf.mxu2 }
 0x6b7   :  { %v890_v36 = vpack.c.bf16 %v886_v35, %v886_v35 }
 0x6b9   :  { %v918_v37 = vpop.f32.mrf.mxu3  ;;  %3176 = vmatmul.msk.bf16.vlgmr.msra.gmra.mxu2 %vm422_vm0, %v890_v36 }
 0x6be   :  { %v888_v38 = vpop.f32.mrf.mxu2 }
 0x6c0   :  { %v821_v39 = vpop.f32.mrf.mxu0 }
 0x6c1   :  { %v825_v22 = vadd.f32 %v821_v39, %v4334_v32  ;;  %v1022_v40 = vpop.f32.mrf.mxu3 }
 0x6c2   :  { %v1026_v25 = vmul.f32 0.17677669, %v1022_v40 }
 0x6c3   :  { %v1182_v0 = vadd.f32 %v4381_v33, %v825_v22 }
 0x6c4   :  { %v1027_v41 = vsel %vm443_vm2, %v1026_v25, -inf }
 0x6c5   :  { %1028 = vmax.xlane.f32.xlu2 %v1027_v41  ;;  %v4385_v56 = vadd.f32 %v1182_v0, %v4231_v60 }
 0x6c8   :  { %v823_v42 = vpop.f32.mrf.mxu0 }
 0x6c9   :  { %v1024_v43 = vpop.f32.mrf.mxu3  ;;  %3180 = vmatmul.msk.bf16.vlgmr.msrb.gmra.mxu2 %vm422_vm0, %v1092_v15 }
 0x728   :  { %v923_v44 = vpop.xlane.xlu1 %922 }
 0x729   :  { %v924_v45 = vsub.f32 %v920_v31, %v923_v44 }
 0x72b   :  { %v925_v46 = vmul.f32 1.442695, %v924_v45 }
 0x72d   :  { %3778 = vpow2.f32 %v925_v46 }
 0x733   :  { %v3779_v47 = vpop.eup %3778 }
 0x734   :  { %v927_v48 = vsel %vm443_vm2, %v3779_v47, 0.0 }
 0x735   :  { %928 = vadd.xlane.f32.xlu1 %v927_v48 }
 0x738   :  { %v1029_v32 = vpop.xlane.xlu2 %1028 }
 0x739   :  { %v1030_v50 = vsub.f32 %v1026_v25, %v1029_v32  ;;  %v4113_v25 = vmov 128.0  }
 0x73b   :  { %v1031_v52 = vmul.f32 1.442695, %v1030_v50 }
 0x73c   :  { %v4367_v49 = vpop.f32.mrf.mxu2 }
 0x73d   :  { %3780 = vpow2.f32 %v1031_v52 }
 0x743   :  { %v3781_v58 = vpop.eup %3780 }
 0x744   :  { %v1001_v9 = vpop.f32.mrf.mxu2  ;;  %v1033_v62 = vsel %vm443_vm2, %v3781_v58, 0.0 }
 0x74c   :  { %v1110_v53 = vpop.f32.mrf.mxu2 }
 0x74d   :  { %v1114_v55 = vmul.f32 0.17677669, %v1110_v53 }
 0x74e   :  { %949 = vrot.lane.b32.xlu1 %v4370_v54, %s4111_s7 }
 0x74f   :  { %v1115_v57 = vsel %vm443_vm2, %v1114_v55, -inf }
 0x750   :  { %1116 = vmax.xlane.f32.xlu0 %v1115_v57 }
 0x754   :  { %v1112_v61 = vpop.f32.mrf.mxu2 }
 0x758   :  { %1034 = vadd.xlane.f32.xlu0 %v1033_v62 }
 0x76c   :  { %1052 = vrot.lane.b32.xlu0 %v4370_v54, %s4096_s20 }
 0x796   :  { %1188 = vadd.xlane.f32.xlu0 %v4385_v56 }
 0x7a8   :  { %v929_v2 = vpop.xlane.xlu1 %928 }
 0x7a9   :  { %3782 = vrcp.f32 %v929_v2  ;;  %v941_v8 = vand.u32 2147483648, %v929_v2  ;;  %vm935_vm11 = vweird.f32 %v929_v2  ;;  %v939_v10 = vand.u32 2147483647, %v929_v2 }
 0x7ab   :  { %v942_v16 = vor.u32 1.1754944e-38, %v941_v8  ;;  %vm940_vm13 = vcmp.eq.f32.partialorder %v939_v10, 8.507059e+37 }
 0x7af   :  { %v3783_v59 = vpop.eup %3782 }
 0x7b0   :  { %v931_v4 = vmul.f32 %v3783_v59, %v929_v2  ;;  %vm936_vm10 = vweird.f32 %v3783_v59 }
 0x7b1   :  { %vm937_vm12 = vmor %vm935_vm11, %vm936_vm10 }
 0x7b2   :  { %v932_v5 = vsub.f32 1.0, %v931_v4 }
 0x7b4   :  { %v933_v6 = vmul.f32 %v3783_v59, %v932_v5 }
 0x7b6   :  { %v934_v7 = vadd.f32 %v3783_v59, %v933_v6 }
 0x7b8   :  { %v938_v14 = vsel %vm937_vm12, %v3783_v59, %v934_v7 }
 0x7b9   :  { %v943_v17 = vsel %vm940_vm13, %v942_v16, %v938_v14 }
 0x7ba   :  { %v944_v60 = vmul.f32 %v3779_v47, %v943_v17 }
 0x7bc   :  { %v945_v21 = vpack.c.bf16 %v944_v60, %v944_v60 }
 0x7c0   :  { %v950_v18 = vpop.permute.xlu1 %949 }
 0x7c1   :  { %v955_v19 = vsel %vm472_vm1, %v950_v18, 0 }
 0x7c2   :  { %964 = vmatpush.bf16.msra.mxu0 %v955_v19 }
 0x7c3   :  { %v1117_v20 = vpop.xlane.xlu0 %1116 }
 0x7c4   :  { %v1118_v23 = vsub.f32 %v1114_v55, %v1117_v20 }
 0x7c5   :  { %3174 = vmatmul.msk.bf16.vlgmr.msra.gmra.mxu0 %vm443_vm2, %v945_v21 }
 0x7c6   :  { %v1119_v26 = vmul.f32 1.442695, %v1118_v23 }
 0x7c8   :  { %3784 = vpow2.f32 %v1119_v26 }
 0x7cb   :  { %v1035_v13 = vpop.xlane.xlu0 %1034 }
 0x7cc   :  { %3786 = vrcp.f32 %v1035_v13  ;;  %v1047_v12 = vand.u32 2147483648, %v1035_v13  ;;  %v1045_v31 = vand.u32 2147483647, %v1035_v13  ;;  %vm1041_vm15 = vweird.f32 %v1035_v13 }
 0x7cd   :  { %3788 = vrcp.f32 %v4113_v25  ;;  %v3638_v25 = vld [vmem:[#allocation13 + $0x54] sm:$0xf0] }
 0x7ce   :  { %v4390_v27 = vpop.eup %3784  ;;  %v1048_v35 = vor.u32 1.1754944e-38, %v1047_v12  ;;  %vm1046_vm4 = vcmp.eq.f32.partialorder %v1045_v31, 8.507059e+37  ;;  %v3243_v12 = vld [vmem:[#allocation13 + $0x78] sm:$0xf0] }
 0x7cf   :  { %v1121_v28 = vsel %vm443_vm2, %v4390_v27, 0.0 }
 0x7d0   :  { %1122 = vadd.xlane.f32.xlu2 %v1121_v28  ;;  %v3241_v28 = vld [vmem:[#allocation13 + $0x70] sm:$0xf] }
 0x7d2   :  { %v3787_v29 = vpop.eup %3786 }
 0x7d3   :  { %v1037_v24 = vmul.f32 %v3787_v29, %v1035_v13  ;;  %vm1042_vm14 = vweird.f32 %v3787_v29  ;;  %v3789_v41 = vpop.eup %3788 }
 0x7d4   :  { %vm1043_vm3 = vmor %vm1041_vm15, %vm1042_vm14  ;;  %v1193_v15 = vmul.f32 128.0, %v3789_v41  ;;  %vm1197_vm5 = vweird.f32 %v3789_v41 }
 0x7d5   :  { %v1038_v11 = vsub.f32 1.0, %v1037_v24  ;;  %v3641_v24 = vld [vmem:[#allocation13 + $0x74] sm:$0xf] }
 0x7d6   :  { %v1194_v42 = vsub.f32 1.0, %v1193_v15 }
 0x7d7   :  { %v1039_v30 = vmul.f32 %v3787_v29, %v1038_v11 }
 0x7d8   :  { %v1195_v43 = vmul.f32 %v3789_v41, %v1194_v42  ;;  %v3227_v42 = vld [vmem:[#allocation13 + $0x58] sm:$0xf0] }
 0x7d9   :  { %v1040_v34 = vadd.f32 %v3787_v29, %v1039_v30 }
 0x7da   :  { %v1196_v44 = vadd.f32 %v3789_v41, %v1195_v43 }
 0x7db   :  { %v1044_v36 = vsel %vm1043_vm3, %v3787_v29, %v1040_v34  ;;  %v3642_v29 = vld [vmem:[#allocation13 + $0x74] sm:$0xf0] }
 0x7dc   :  { %v1049_v37 = vsel %vm1046_vm4, %v1048_v35, %v1044_v36  ;;  %v4400_v45 = vsel %vm1197_vm5, %v3789_v41, %v1196_v44  ;;  %v3242_v11 = vor.u32 %v3642_v29, %v3241_v28  ;;  %v3640_v35 = vld [vmem:[#allocation13 + $0x64] sm:$0xf0]  ;;  %v3639_v36 = vld [vmem:[#allocation13 + $0x64] sm:$0xf]  ;;  %v3637_v41 = vld [vmem:[#allocation13 + $0x54] sm:$0xf] }
 0x7dd   :  { %v1050_v38 = vmul.f32 %v3781_v58, %v1049_v37  ;;  %v3230_v43 = vor.u32 %v3637_v41, %v3227_v42  ;;  %v3649_v28 = vld [vmem:[#allocation14 + $0x30] sm:$0xff] }
 0x7de   :  { %v1053_v39 = vpop.permute.xlu0 %1052  ;;  %v3657_v29 = vld [vmem:[#allocation14 + $0x70] sm:$0xff] }
 0x7df   :  { %v1058_v22 = vsel %vm472_vm1, %v1053_v39, 0  ;;  %v1051_v40 = vpack.c.bf16 %v1050_v38, %v1050_v38  ;;  %v3235_v38 = vld [vmem:[#allocation13 + $0x68] sm:$0xf0] }
 0x7e0   :  { %1067 = vmatpush.bf16.msrb.mxu0 %v1058_v22  ;;  %v3238_v39 = vor.u32 %v3639_v36, %v3235_v38 }
 0x7e3   :  { %3178 = vmatmul.msk.bf16.vlgmr.msrb.gmra.mxu0 %vm443_vm2, %v1051_v40  ;;  %v3225_v40 = vld [vmem:[#allocation13 + $0x50] sm:$0xf] }
 0x7e4   :  { %1171 = vmatpush.bf16.msra.mxu0 %v4348_v1  ;;  %v3226_v15 = vor.u32 %v3638_v25, %v3225_v40  ;;  %v3747_v40 = vld [vmem:[#allocation10] ss:$0 sm:$0xff] }
 0x7e8   :  { %1172 = vmatpush.bf16.msra.mxu0 %v4351_v3  ;;  %1140 = vrot.lane.b32.xlu2 %v4370_v54, %s4112_s12 }
 0x809   :  { %v1189_v46 = vpop.xlane.xlu0 %1188 }
 0x80a   :  { %v1199_v1 = vmul.f32 %v4400_v45, %v1189_v46  ;;  %v3217_v46 = vld [vmem:[#allocation13 + $0x40] sm:$0xf] }
 0x80c   :  { %v4404_v47 = vsub.f32 %v4385_v56, %v1199_v1  ;;  %v3636_v1 = vld [vmem:[#allocation13 + $0x44] sm:$0xf0] }
 0x80e   :  { %v1203_v3 = vmul.f32 %v4404_v47, %v4404_v47 }
 0x811   :  { %1205 = vadd.xlane.f32.xlu2 %v1203_v3  ;;  %v3635_v3 = vld [vmem:[#allocation13 + $0x44] sm:$0xf] }
 0x842   :  { %v966_v48 = vpop.f32.mrf.mxu0 }
 0x843   :  { %v970_v32 = vpack.c.bf16 %v966_v48, %v966_v48  ;;  %v1123_v9 = vpop.xlane.xlu2 %1122  ;;  %v3218_v48 = vor.u32 %v3636_v1, %v3217_v46 }
 0x844   :  { %3790 = vrcp.f32 %v1123_v9  ;;  %v1135_v57 = vand.u32 2147483648, %v1123_v9  ;;  %v1133_v61 = vand.u32 2147483647, %v1123_v9  ;;  %vm1129_vm7 = vweird.f32 %v1123_v9 }
 0x845   :  { %3175 = vmatmul.msk.bf16.vlgmr.msra.gmra.mxu1 %vm422_vm0, %v970_v32  ;;  %v3219_v32 = vld [vmem:[#allocation13 + $0x48] sm:$0xf0] }
 0x846   :  { %v1136_v0 = vor.u32 1.1754944e-38, %v1135_v57  ;;  %vm1134_vm9 = vcmp.eq.f32.partialorder %v1133_v61, 8.507059e+37  ;;  %1348 = vmatpush.bf16.msra.mxu1 %v3242_v11  ;;  %v3632_v61 = vld [vmem:[#allocation13 + $0x24] sm:$0xf0] }
 0x84a   :  { %v3791_v50 = vpop.eup %3790  ;;  %v968_v51 = vpop.f32.mrf.mxu0 }
 0x84b   :  { %v1125_v52 = vmul.f32 %v3791_v50, %v1123_v9  ;;  %v1141_v53 = vpop.permute.xlu2 %1140  ;;  %vm1130_vm6 = vweird.f32 %v3791_v50  ;;  %v3222_v9 = vor.u32 %v3635_v3, %v3219_v32  ;;  %v3209_v51 = vld [vmem:[#allocation13 + $0x30] sm:$0xf]  ;;  %v3655_v32 = vld [vmem:[#allocation14 + $0x60] sm:$0xff] }
 0x84c   :  { %v1146_v54 = vsel %vm472_vm1, %v1141_v53, 0  ;;  %vm1131_vm8 = vmor %vm1129_vm7, %vm1130_vm6  ;;  %v3633_v53 = vld [vmem:[#allocation13 + $0x34] sm:$0xf] }
 0x84d   :  { %v1126_v55 = vsub.f32 1.0, %v1125_v52  ;;  %1155 = vmatpush.bf16.msrb.mxu3 %v1146_v54  ;;  %v3634_v52 = vld [vmem:[#allocation13 + $0x34] sm:$0xf0] }
 0x84e   :  { %v3210_v54 = vor.u32 %v3634_v52, %v3209_v51  ;;  %v3653_v51 = vld [vmem:[#allocation14 + $0x50] sm:$0xff]  ;;  %v3652_v52 = vld [vmem:[#allocation14 + $0x48] sm:$0xff] }
 0x84f   :  { %v1127_v58 = vmul.f32 %v3791_v50, %v1126_v55  ;;  %v3211_v55 = vld [vmem:[#allocation13 + $0x38] sm:$0xf0] }
 0x850   :  { %v3214_v57 = vor.u32 %v3633_v53, %v3211_v55  ;;  %v3651_v53 = vld [vmem:[#allocation14 + $0x40] sm:$0xff] }
 0x851   :  { %v1128_v62 = vadd.f32 %v3791_v50, %v1127_v58  ;;  %v3201_v58 = vld [vmem:[#allocation13 + $0x20] sm:$0xf] }
 0x853   :  { %v1132_v56 = vsel %vm1131_vm8, %v3791_v50, %v1128_v62  ;;  %v3631_v62 = vld [vmem:[#allocation13 + $0x24] sm:$0xf] }
 0x854   :  { %v1137_v2 = vsel %vm1134_vm9, %v1136_v0, %v1132_v56  ;;  %v3202_v0 = vor.u32 %v3632_v61, %v3201_v58  ;;  %v3203_v56 = vld [vmem:[#allocation13 + $0x28] sm:$0xf0] }
 0x855   :  { %v1138_v59 = vmul.f32 %v4390_v27, %v1137_v2  ;;  %v3206_v2 = vor.u32 %v3631_v62, %v3203_v56 }
 0x857   :  { %v1139_v4 = vpack.c.bf16 %v1138_v59, %v1138_v59  ;;  %v3193_v59 = vld [vmem:[#allocation13 + $0x10] sm:$0xf] }
 0x859   :  { %3181 = vmatmul.msk.bf16.vlgmr.msrb.gmra.mxu3 %vm443_vm2, %v1139_v4  ;;  %v3630_v4 = vld [vmem:[#allocation13 + $0x14] sm:$0xf0] }
 0x860   :  { %v1069_v5 = vpop.f32.mrf.mxu0 }
 0x861   :  { %v1073_v6 = vpack.c.bf16 %v1069_v5, %v1069_v5  ;;  %v3629_v5 = vld [vmem:[#allocation13 + $0x14] sm:$0xf] }
 0x863   :  { %3179 = vmatmul.msk.bf16.vlgmr.msrb.gmra.mxu1 %vm422_vm0, %v1073_v6  ;;  %v3194_v6 = vor.u32 %v3630_v4, %v3193_v59 }
 0x868   :  { %v1071_v7 = vpop.f32.mrf.mxu0 }
 0x869   :  { %v3195_v7 = vld [vmem:[#allocation13 + $0x18] sm:$0xf0] }
 0x884   :  { %v1206_v22 = vpop.xlane.xlu2 %1205 }
 0x885   :  { %v1209_v44 = vmul.f32 %v1206_v22, %v4400_v45 }
 0x887   :  { %v4423_v50 = vadd.f32 1e-05, %v1209_v44 }
 0x889   :  { %3792 = vrsqrt.f32 %v4423_v50  ;;  %vm1219_vm11 = vweird.f32 %v4423_v50 }
 0x8c2   :  { %v983_v8 = vpop.f32.mrf.mxu1 }
 0x8c3   :  { %v1000_v17 = vadd.f32 %v4367_v49, %v983_v8  ;;  %v3246_v49 = vor.u32 %v3641_v24, %v3243_v12  ;;  %v3185_v8 = vld [vmem:[#allocation13] sm:$0xf]  ;;  %v3648_v12 = vld [vmem:[#allocation14 + $0x28] sm:$0xff] }
 0x8c5   :  { %1362 = vmatpush.bf16.msra.mxu2 %v3246_v49  ;;  %v3656_v49 = vld [vmem:[#allocation14 + $0x68] sm:$0xff] }
 0x8c9   :  { %1363 = vmatpush.bf16.msra.mxu2 %v3238_v39 }
 0x8ca   :  { %v985_v10 = vpop.f32.mrf.mxu1 }
 0x8cb   :  { %v3628_v10 = vld [vmem:[#allocation13 + $0x4] sm:$0xf0] }
 0x8cd   :  { %1364 = vmatpush.bf16.msra.mxu2 %v3230_v43  ;;  %v3748_v43 = vld [vmem:[#allocation11] ss:$0 sm:$0xff] }
 0x8d1   :  { %1365 = vmatpush.bf16.msra.mxu2 %v3222_v9  ;;  %v3645_v9 = vld [vmem:[#allocation14 + $0x10] sm:$0xff] }
 0x8d5   :  { %1366 = vmatpush.bf16.msra.mxu2 %v3214_v57 }
 0x8d9   :  { %1367 = vmatpush.bf16.msra.mxu2 %v3206_v2 }
 0x8dc   :  { %v1157_v14 = vpop.f32.mrf.mxu3 }
 0x8dd   :  { %v1161_v16 = vpack.c.bf16 %v1157_v14, %v1157_v14  ;;  %v3793_v14 = vpop.eup %3792 }
 0x8de   :  { %vm1220_vm10 = vweird.f32 %v3793_v14 }
 0x8df   :  { %3182 = vmatmul.msk.bf16.vlgmr.msra.gmra.mxu0 %vm422_vm0, %v1161_v16  ;;  %v3198_v16 = vor.u32 %v3629_v5, %v3195_v7  ;;  %vm1221_vm12 = vmor %vm1219_vm11, %vm1220_vm10 }
 0x8e0   :  { %v1086_v60 = vpop.f32.mrf.mxu1 }
 0x8e1   :  { %v1090_v18 = vadd.f32 %v1086_v60, %v1000_v17  ;;  %v3627_v17 = vld [vmem:[#allocation13 + $0x4] sm:$0xf]  ;;  %v3187_v60 = vld [vmem:[#allocation13 + $0x8] sm:$0xf0]  ;;  %1368 = vmatpush.bf16.msra.mxu2 %v3198_v16 }
 0x8e2   :  { %v3749_v16 = vld [vmem:[%s4669_s10] ss:$0 sm:$0xff] }
 0x8e4   :  { %v1159_v19 = vpop.f32.mrf.mxu3 }
 0x8e5   :  { %v3190_v19 = vor.u32 %v3627_v17, %v3187_v60 }
 0x8e7   :  { %1369 = vmatpush.bf16.msra.mxu2 %v3190_v19 }
 0x8e8   :  { %v1088_v20 = vpop.f32.mrf.mxu1 }
 0x8e9   :  { %v1214_v20 = vmul.f32 %v3793_v14, %v4423_v50  ;;  %v3644_v50 = vld [vmem:[#allocation14 + $0x8] sm:$0xff] }
 0x95c   :  { %v1174_v21 = vpop.f32.mrf.mxu0 }
 0x95d   :  { %v1178_v23 = vadd.f32 %v1174_v21, %v1090_v18  ;;  %v3186_v18 = vor.u32 %v3628_v10, %v3185_v8  ;;  %v3650_v21 = vld [vmem:[#allocation14 + $0x38] sm:$0xff] }
 0x95e   :  { %1514 = vmatpush.bf16.msra.mxu3 %v3650_v21 }
 0x95f   :  { %v1183_v26 = vadd.f32 %v4381_v33, %v1178_v23  ;;  %v3658_v23 = vld [vmem:[#allocation14 + $0x78] sm:$0xff] }
 0x960   :  { %1528 = vmatpush.bf16.msrb.mxu0 %v3658_v23 }
 0x961   :  { %v1185_v13 = vadd.f32 %v1183_v26, %v4233_v63  ;;  %v3233_v63 = vld [vmem:[#allocation13 + $0x60] sm:$0xf]  ;;  %v1215_v26 = vmul.f32 %v3793_v14, %v1214_v20 }
 0x962   :  { %v3234_v37 = vor.u32 %v3640_v35, %v3233_v63  ;;  %1515 = vmatpush.bf16.msra.mxu3 %v3649_v28 }
 0x963   :  { %1190 = vadd.xlane.f32.xlu1 %v1185_v13  ;;  %v1216_v11 = vmul.f32 0.5, %v1215_v26 }
 0x964   :  { %v1176_v27 = vpop.f32.mrf.mxu0  ;;  %1349 = vmatpush.bf16.msra.mxu1 %v3234_v37  ;;  %1529 = vmatpush.bf16.msrb.mxu0 %v3657_v29 }
 0x966   :  { %1516 = vmatpush.bf16.msra.mxu3 %v3648_v12 }
 0x968   :  { %1350 = vmatpush.bf16.msra.mxu1 %v3226_v15  ;;  %1530 = vmatpush.bf16.msrb.mxu0 %v3656_v49 }
 0x96c   :  { %1351 = vmatpush.bf16.msra.mxu1 %v3218_v48  ;;  %v3646_v48 = vld [vmem:[#allocation14 + $0x18] sm:$0xff]  ;;  %1531 = vmatpush.bf16.msrb.mxu0 %v3655_v32 }
 0x96d   :  { %v3675_v32 = vld [vmem:[#allocation5 + $0x140] sm:$0xf0] }
 0x970   :  { %1352 = vmatpush.bf16.msra.mxu1 %v3210_v54  ;;  %v1262_v54 = vld [vmem:[%s4667_s8] sm:$0x3] }
 0x971   :  { %v1264_v57 = vperm.slane %v1262_v54, 0 }
 0x974   :  { %1353 = vmatpush.bf16.msra.mxu1 %v3202_v0  ;;  %v1265_v0 = vperm.slane %v1262_v54, 1  ;;  %v3362_v54 = vld [vmem:[#allocation5 + $0x120] sm:$0xf] }
 0x978   :  { %1354 = vmatpush.bf16.msra.mxu1 %v3194_v6 }
 0x97c   :  { %1355 = vmatpush.bf16.msra.mxu1 %v3186_v18 }
 0x9d6   :  { %v1191_v30 = vpop.xlane.xlu1 %1190 }
 0x9d7   :  { %v1200_v31 = vmul.f32 %v4400_v45, %v1191_v30  ;;  %v1217_v30 = vsub.f32 1.5, %v1216_v11 }
 0x9d9   :  { %v4418_v34 = vsub.f32 %v1185_v13, %v1200_v31  ;;  %v3647_v31 = vld [vmem:[#allocation14 + $0x20] sm:$0xff]  ;;  %v1218_v63 = vmul.f32 %v3793_v14, %v1217_v30 }
 0x9da   :  { %1517 = vmatpush.bf16.msra.mxu3 %v3647_v31 }
 0x9db   :  { %v1204_v33 = vmul.f32 %v4418_v34, %v4418_v34  ;;  %v1222_v37 = vsel %vm1221_vm12, %v3793_v14, %v1218_v63  ;;  %v3681_v63 = vld [vmem:[#allocation5 + $0x170] sm:$0xf0] }
 0x9dc   :  { %v1233_v22 = vmul.f32 %v1222_v37, %v4404_v47  ;;  %v3654_v47 = vld [vmem:[#allocation14 + $0x58] sm:$0xff]  ;;  %v3400_v37 = vld [vmem:[#allocation5 + $0x174] sm:$0xf0] }
 0x9dd   :  { %1207 = vadd.xlane.f32.xlu0 %v1204_v33  ;;  %1532 = vmatpush.bf16.msrb.mxu0 %v3654_v47 }
 0x9de   :  { %v1238_v42 = vmul.f32 %v3747_v40, %v1233_v22  ;;  %1518 = vmatpush.bf16.msra.mxu3 %v3646_v48  ;;  %v3374_v48 = vld [vmem:[#allocation5 + $0x138] sm:$0xf] }
 0x9df   :  { %v3375_v47 = vor.u32 %v3675_v32, %v3374_v48 }
 0x9e0   :  { %v1243_v46 = vadd.f32 %v3748_v43, %v1238_v42 }
 0x9e1   :  { %1533 = vmatpush.bf16.msrb.mxu0 %v3653_v51  ;;  %v3382_v51 = vld [vmem:[#allocation5 + $0x140] sm:$0xf] }
 0x9e2   :  { %1519 = vmatpush.bf16.msra.mxu3 %v3645_v9  ;;  %v3674_v9 = vld [vmem:[#allocation5 + $0x13c] sm:$0xf] }
 0x9e5   :  { %1534 = vmatpush.bf16.msrb.mxu0 %v3652_v52 }
 0x9e6   :  { %1520 = vmatpush.bf16.msra.mxu3 %v3644_v50  ;;  %v3376_v50 = vld [vmem:[#allocation5 + $0x144] sm:$0xf0] }
 0x9e7   :  { %v3379_v52 = vor.u32 %v3674_v9, %v3376_v50 }
 0x9e9   :  { %1535 = vmatpush.bf16.msrb.mxu0 %v3651_v53 }
 0xa50   :  { %v1208_v13 = vpop.xlane.xlu0 %1207 }
 0xa51   :  { %v1210_v27 = vmul.f32 %v1208_v13, %v4400_v45 }
 0xa53   :  { %v1212_v24 = vadd.f32 1e-05, %v1210_v27 }
 0xa55   :  { %3794 = vrsqrt.f32 %v1212_v24  ;;  %vm1229_vm14 = vweird.f32 %v1212_v24 }
 0xa5b   :  { %v3795_v33 = vpop.eup %3794 }
 0xa5c   :  { %v1224_v35 = vmul.f32 %v3795_v33, %v1212_v24  ;;  %vm1230_vm13 = vweird.f32 %v3795_v33 }
 0xa5d   :  { %vm1231_vm15 = vmor %vm1229_vm14, %vm1230_vm13 }
 0xa5e   :  { %v1225_v36 = vmul.f32 %v3795_v33, %v1224_v35  ;;  %v3680_v35 = vld [vmem:[#allocation5 + $0x16c] sm:$0xf] }
 0xa5f   :  { %v3403_v22 = vor.u32 %v3680_v35, %v3400_v37  ;;  %v3314_v37 = vld [vmem:[#allocation5 + $0xc0] sm:$0xf] }
 0xa60   :  { %v1226_v38 = vmul.f32 0.5, %v1225_v36 }
 0xa61   :  { %1800 = vmatpush.bf16.msrb.mxu2 %v3403_v22 }
 0xa62   :  { %v1227_v39 = vsub.f32 1.5, %v1226_v38  ;;  %v3406_v38 = vld [vmem:[#allocation5 + $0x170] sm:$0xf] }
 0xa64   :  { %v1228_v25 = vmul.f32 %v3795_v33, %v1227_v39  ;;  %v3682_v39 = vld [vmem:[#allocation5 + $0x178] sm:$0xf0] }
 0xa66   :  { %v1232_v41 = vsel %vm1231_vm15, %v3795_v33, %v1228_v25  ;;  %v3398_v33 = vld [vmem:[#allocation5 + $0x168] sm:$0xf]  ;;  %v3386_v25 = vld [vmem:[#allocation5 + $0x150] sm:$0xf] }
 0xa67   :  { %v1234_v15 = vmul.f32 %v1232_v41, %v4418_v34  ;;  %v3643_v34 = vld [vmem:[#allocation14] sm:$0xff]  ;;  %v3399_v36 = vor.u32 %v3681_v63, %v3398_v33  ;;  %v3678_v41 = vld [vmem:[#allocation5 + $0x158] sm:$0xf0] }
 0xa68   :  { %1521 = vmatpush.bf16.msra.mxu3 %v3643_v34  ;;  %v3387_v42 = vor.u32 %v3678_v41, %v3386_v25  ;;  %v3676_v34 = vld [vmem:[#allocation5 + $0x148] sm:$0xf0]  ;;  %v3322_v25 = vld [vmem:[#allocation5 + $0xc8] sm:$0xf]  ;;  %v3661_v41 = vld [vmem:[#allocation5 + $0xd0] sm:$0xf0] }
 0xa69   :  { %v1239_v44 = vmul.f32 %v3747_v40, %v1234_v15  ;;  %v3407_v40 = vor.u32 %v3682_v39, %v3406_v38  ;;  %1786 = vmatpush.bf16.msrb.mxu1 %v3399_v36  ;;  %v3677_v15 = vld [vmem:[#allocation5 + $0x154] sm:$0xf]  ;;  %v3383_v53 = vor.u32 %v3676_v34, %v3382_v51  ;;  %v3664_v33 = vld [vmem:[#allocation5 + $0xe8] sm:$0xf0]  ;;  %v3659_v39 = vld [vmem:[#allocation5 + $0xc4] sm:$0xf] }
 0xa6a   :  { %v3660_v38 = vld [vmem:[#allocation5 + $0xc8] sm:$0xf0] }
 0xa6b   :  { %v1244_v1 = vadd.f32 %v3748_v43, %v1239_v44  ;;  %v3388_v43 = vld [vmem:[#allocation5 + $0x15c] sm:$0xf0]  ;;  %v3394_v44 = vld [vmem:[#allocation5 + $0x158] sm:$0xf]  ;;  %v3315_v22 = vor.u32 %v3660_v38, %v3314_v37 }
 0xa6c   :  { %1814 = vmatpush.bf16.msrb.mxu3 %v3407_v40  ;;  %v3316_v40 = vld [vmem:[#allocation5 + $0xcc] sm:$0xf0] }
 0xa6d   :  { %v1245_v3 = vpack.c.bf16 %v1244_v1, %v1243_v46  ;;  %1787 = vmatpush.bf16.msrb.mxu1 %v3387_v42  ;;  %v3319_v42 = vor.u32 %v3659_v39, %v3316_v40 }
 0xa6f   :  { %1356 = vmatmul.bf16.vlgmr.msra.gmra.mxu1 %v1245_v3  ;;  %1370 = vmatmul.bf16.vlgmr.msra.gmra.mxu2 %v1245_v3 }
 0xa71   :  { %1788 = vmatpush.bf16.msrb.mxu1 %v3375_v47 }
 0xaec   :  { %v1357_v55 = vpop.f32.mrf.mxu1 }
 0xaed   :  { %v1358_v61 = vadd.f32 %v1357_v55, %v1264_v57  ;;  %v3672_v55 = vld [vmem:[#allocation5 + $0x128] sm:$0xf0] }
 0xaef   :  { %v1376_v2 = vmax.f32 %v1358_v61, 0.0  ;;  %v3364_v61 = vld [vmem:[#allocation5 + $0x12c] sm:$0xf0] }
 0xaf2   :  { %v1371_v58 = vpop.f32.mrf.mxu2 }
 0xaf3   :  { %v1372_v4 = vadd.f32 %v1371_v58, %v1265_v0  ;;  %v3363_v58 = vor.u32 %v3672_v55, %v3362_v54 }
 0xaf4   :  { %v1359_v62 = vpop.f32.mrf.mxu1 }
 0xaf5   :  { %v1360_v56 = vadd.f32 %v1359_v62, %v1264_v57  ;;  %v1377_v8 = vmax.f32 %v1372_v4, 0.0  ;;  %v3671_v57 = vld [vmem:[#allocation5 + $0x124] sm:$0xf]  ;;  %v3370_v62 = vld [vmem:[#allocation5 + $0x128] sm:$0xf]  ;;  %1789 = vmatpush.bf16.msrb.mxu1 %v3363_v58 }
 0xaf6   :  { %v3669_v4 = vld [vmem:[#allocation5 + $0x110] sm:$0xf0]  ;;  %v3750_v58 = vld [vmem:[%s4670_s11] ss:$0 sm:$0xff] }
 0xaf7   :  { %v1378_v59 = vmax.f32 %v1360_v56, 0.0  ;;  %v3367_v56 = vor.u32 %v3671_v57, %v3364_v61 }
 0xaf9   :  { %v1380_v5 = vpack.c.bf16 %v1378_v59, %v1376_v2  ;;  %v3350_v59 = vld [vmem:[#allocation5 + $0x108] sm:$0xf] }
 0xafa   :  { %v1373_v6 = vpop.f32.mrf.mxu2 }
 0xafb   :  { %v1374_v7 = vadd.f32 %v1373_v6, %v1265_v0  ;;  %1522 = vmatmul.bf16.vlgmr.msra.gmra.mxu3 %v1380_v5  ;;  %v3673_v0 = vld [vmem:[#allocation5 + $0x130] sm:$0xf0]  ;;  %v3668_v5 = vld [vmem:[#allocation5 + $0x10c] sm:$0xf]  ;;  %v3351_v6 = vor.u32 %v3669_v4, %v3350_v59 }
 0xafc   :  { %v3371_v2 = vor.u32 %v3673_v0, %v3370_v62 }
 0xafd   :  { %v1379_v10 = vmax.f32 %v1374_v7, 0.0  ;;  %v3352_v7 = vld [vmem:[#allocation5 + $0x114] sm:$0xf0]  ;;  %1790 = vmatpush.bf16.msrb.mxu1 %v3351_v6  ;;  %v4460_v6 = vld [vmem:[#allocation7 + $0x3] sm:$0x7] }
 0xaff   :  { %v1381_v14 = vpack.c.bf16 %v1379_v10, %v1377_v8  ;;  %v3358_v8 = vld [vmem:[#allocation5 + $0x110] sm:$0xf]  ;;  %v3670_v10 = vld [vmem:[#allocation5 + $0x118] sm:$0xf0] }
 0xb01   :  { %1536 = vmatmul.bf16.vlgmr.msrb.gmra.mxu0 %v1381_v14  ;;  %v3355_v14 = vor.u32 %v3668_v5, %v3352_v7  ;;  %v1652_v7 = vperm.slane %v4460_v6, 0 }
 0xb7e   :  { %v1523_v17 = vpop.f32.mrf.mxu3  ;;  %v1537_v60 = vpop.f32.mrf.mxu0 }
 0xb7f   :  { %v1524_v18 = vadd.f32 %v3749_v16, %v1523_v17  ;;  %v3338_v17 = vld [vmem:[#allocation5 + $0xf0] sm:$0xf] }
 0xb81   :  { %v1538_v19 = vadd.f32 %v1537_v60, %v1524_v18  ;;  %v3666_v60 = vld [vmem:[#allocation5 + $0xf8] sm:$0xf0]  ;;  %v3665_v18 = vld [vmem:[#allocation5 + $0xf4] sm:$0xf] }
 0xb83   :  { %v1542_v20 = vadd.f32 %v1538_v19, %v1243_v46  ;;  %v3679_v46 = vld [vmem:[#allocation5 + $0x160] sm:$0xf0]  ;;  %v3339_v19 = vor.u32 %v3666_v60, %v3338_v17 }
 0xb84   :  { %v3395_v3 = vor.u32 %v3679_v46, %v3394_v44 }
 0xb85   :  { %1546 = vadd.xlane.f32.xlu1 %v1542_v20  ;;  %1791 = vmatpush.bf16.msrb.mxu1 %v3339_v19 }
 0xb86   :  { %v1525_v21 = vpop.f32.mrf.mxu3  ;;  %v1539_v26 = vpop.f32.mrf.mxu0  ;;  %1815 = vmatpush.bf16.msrb.mxu3 %v3395_v3 }
 0xb87   :  { %v1526_v23 = vadd.f32 %v3749_v16, %v1525_v21  ;;  %v3359_v16 = vor.u32 %v3670_v10, %v3358_v8  ;;  %v3346_v21 = vld [vmem:[#allocation5 + $0xf8] sm:$0xf] }
 0xb89   :  { %v1540_v13 = vadd.f32 %v1539_v26, %v1526_v23  ;;  %v3667_v23 = vld [vmem:[#allocation5 + $0x100] sm:$0xf0] }
 0xb8a   :  { %1816 = vmatpush.bf16.msrb.mxu3 %v3383_v53 }
 0xb8b   :  { %v1543_v27 = vadd.f32 %v1540_v13, %v1244_v1  ;;  %v3391_v1 = vor.u32 %v3677_v15, %v3388_v43  ;;  %v3347_v13 = vor.u32 %v3667_v23, %v3346_v21  ;;  %v3323_v43 = vor.u32 %v3661_v41, %v3322_v25 }
 0xb8d   :  { %1548 = vadd.xlane.f32.xlu2 %v1543_v27  ;;  %1801 = vmatpush.bf16.msrb.mxu2 %v3391_v1 }
 0xb8e   :  { %1817 = vmatpush.bf16.msrb.mxu3 %v3371_v2  ;;  %v3751_v2 = vld [vmem:[#allocation16] ss:$0 sm:$0xff] }
 0xb91   :  { %1802 = vmatpush.bf16.msrb.mxu2 %v3379_v52 }
 0xb92   :  { %1818 = vmatpush.bf16.msrb.mxu3 %v3359_v16  ;;  %v1654_v16 = vperm.slane %v4460_v6, 2 }
 0xb95   :  { %1803 = vmatpush.bf16.msrb.mxu2 %v3367_v56 }
 0xb96   :  { %1819 = vmatpush.bf16.msrb.mxu3 %v3347_v13 }
 0xb99   :  { %1804 = vmatpush.bf16.msrb.mxu2 %v3355_v14  ;;  %v1653_v14 = vperm.slane %v4460_v6, 1 }
 0xbf8   :  { %v1547_v28 = vpop.xlane.xlu1 %1546 }
 0xbf9   :  { %v1550_v29 = vmul.f32 %v1547_v28, %v4400_v45  ;;  %v3663_v28 = vld [vmem:[#allocation5 + $0xe0] sm:$0xf0] }
 0xbfb   :  { %v4438_v24 = vsub.f32 %v1542_v20, %v1550_v29  ;;  %v3340_v20 = vld [vmem:[#allocation5 + $0xfc] sm:$0xf0]  ;;  %v3662_v29 = vld [vmem:[#allocation5 + $0xdc] sm:$0xf] }
 0xbfc   :  { %v3343_v26 = vor.u32 %v3665_v18, %v3340_v20 }
 0xbfd   :  { %v1554_v11 = vmul.f32 %v4438_v24, %v4438_v24 }
 0xbfe   :  { %1805 = vmatpush.bf16.msrb.mxu2 %v3343_v26 }
 0xbff   :  { %1556 = vadd.xlane.f32.xlu0 %v1554_v11 }
 0xc00   :  { %v1549_v12 = vpop.xlane.xlu2 %1548 }
 0xc01   :  { %v1551_v49 = vmul.f32 %v1549_v12, %v4400_v45 }
 0xc03   :  { %v4443_v30 = vsub.f32 %v1543_v27, %v1551_v49  ;;  %v3326_v27 = vld [vmem:[#allocation5 + $0xd8] sm:$0xf]  ;;  %v3328_v49 = vld [vmem:[#allocation5 + $0xe4] sm:$0xf0] }
 0xc04   :  { %v3327_v12 = vor.u32 %v3663_v28, %v3326_v27  ;;  %v3331_v35 = vor.u32 %v3662_v29, %v3328_v49 }
 0xc05   :  { %v1555_v31 = vmul.f32 %v4443_v30, %v4443_v30 }
 0xc06   :  { %1792 = vmatpush.bf16.msrb.mxu1 %v3327_v12  ;;  %1806 = vmatpush.bf16.msrb.mxu2 %v3331_v35 }
 0xc07   :  { %1558 = vadd.xlane.f32.xlu1 %v1555_v31  ;;  %v3334_v31 = vld [vmem:[#allocation5 + $0xe0] sm:$0xf] }
 0xc08   :  { %v3335_v36 = vor.u32 %v3664_v33, %v3334_v31 }
 0xc0a   :  { %1820 = vmatpush.bf16.msrb.mxu3 %v3335_v36  ;;  %1793 = vmatpush.bf16.msrb.mxu1 %v3315_v22 }
 0xc0b   :  { %1807 = vmatpush.bf16.msrb.mxu2 %v3319_v42 }
 0xc0e   :  { %1821 = vmatpush.bf16.msrb.mxu3 %v3323_v43 }
 0xc72   :  { %v1557_v11 = vpop.xlane.xlu0 %1556 }
 0xc73   :  { %v1560_v63 = vmul.f32 %v1557_v11, %v4400_v45 }
 0xc75   :  { %v1562_v15 = vadd.f32 1e-05, %v1560_v63 }
 0xc77   :  { %3796 = vrsqrt.f32 %v1562_v15  ;;  %vm1570_vm4 = vweird.f32 %v1562_v15 }
 0xc7a   :  { %v1559_v44 = vpop.xlane.xlu1 %1558 }
 0xc7b   :  { %v1561_v46 = vmul.f32 %v1559_v44, %v4400_v45 }
 0xc7d   :  { %v3797_v1 = vpop.eup %3796  ;;  %v1563_v3 = vadd.f32 1e-05, %v1561_v46 }
 0xc7e   :  { %v1565_v48 = vmul.f32 %v3797_v1, %v1562_v15  ;;  %vm1571_vm3 = vweird.f32 %v3797_v1 }
 0xc7f   :  { %3798 = vrsqrt.f32 %v1563_v3  ;;  %vm1572_vm5 = vmor %vm1570_vm4, %vm1571_vm3  ;;  %vm1580_vm7 = vweird.f32 %v1563_v3 }
 0xc80   :  { %v1566_v32 = vmul.f32 %v3797_v1, %v1565_v48 }
 0xc82   :  { %v1567_v9 = vmul.f32 0.5, %v1566_v32 }
 0xc84   :  { %v1568_v47 = vsub.f32 1.5, %v1567_v9 }
 0xc85   :  { %v3799_v50 = vpop.eup %3798 }
 0xc86   :  { %v1569_v51 = vmul.f32 %v3797_v1, %v1568_v47  ;;  %v1575_v34 = vmul.f32 %v3799_v50, %v1563_v3  ;;  %vm1581_vm6 = vweird.f32 %v3799_v50 }
 0xc87   :  { %vm1582_vm8 = vmor %vm1580_vm7, %vm1581_vm6 }
 0xc88   :  { %v1576_v52 = vmul.f32 %v3799_v50, %v1575_v34  ;;  %v1573_v53 = vsel %vm1572_vm5, %v3797_v1, %v1569_v51 }
 0xc89   :  { %v1584_v57 = vmul.f32 %v1573_v53, %v4438_v24 }
 0xc8a   :  { %v1577_v54 = vmul.f32 0.5, %v1576_v52 }
 0xc8b   :  { %v1589_v56 = vmul.f32 %v3750_v58, %v1584_v57 }
 0xc8c   :  { %v1578_v55 = vsub.f32 1.5, %v1577_v54 }
 0xc8d   :  { %v4454_v4 = vadd.f32 %v3751_v2, %v1589_v56 }
 0xc8e   :  { %v1579_v61 = vmul.f32 %v3799_v50, %v1578_v55 }
 0xc90   :  { %v1583_v62 = vsel %vm1582_vm8, %v3799_v50, %v1579_v61 }
 0xc91   :  { %v1585_v0 = vmul.f32 %v1583_v62, %v4443_v30 }
 0xc93   :  { %v1590_v59 = vmul.f32 %v3750_v58, %v1585_v0 }
 0xc95   :  { %v4456_v5 = vadd.f32 %v3751_v2, %v1590_v59 }
 0xc97   :  { %v1650_v24 = vpack.c.bf16 %v4456_v5, %v4454_v4 }
 0xc99   :  { %1794 = vmatmul.bf16.vlgmr.msrb.gmra.mxu1 %v1650_v24  ;;  %1808 = vmatmul.bf16.vlgmr.msrb.gmra.mxu2 %v1650_v24 }
 0xc9a   :  { %1822 = vmatmul.bf16.vlgmr.msrb.gmra.mxu3 %v1650_v24 }
 0xd16   :  { %v1795_v8 = vpop.f32.mrf.mxu1 }
 0xd17   :  { %v1796_v30 = vadd.f32 %v1795_v8, %v1652_v7 }
 0xd19   :  { %v1828_v10 = vpack.c.bf16 %v1796_v30, %v1796_v30 }
 0xd1b   :  { %v1900_v17 = vunpack.c.l.b16 %v1828_v10 }
 0xd1c   :  { %v1809_v60 = vpop.f32.mrf.mxu2 }
 0xd1d   :  { %v1901_v18 = vpack.c.b16 %v1900_v17, %v1900_v17  ;;  %v1810_v19 = vadd.f32 %v1809_v60, %v1653_v14  ;;  %v1823_v20 = vpop.f32.mrf.mxu3 }
 0xd1e   :  { %v1824_v21 = vadd.f32 %v1823_v20, %v1654_v16  ;;  %v4486_v37 = vpop.f32.mrf.mxu1 }
 0xd1f   :  { %v1830_v23 = vpack.c.bf16 %v1810_v19, %v1810_v19  ;;  %1902 = vrot.lane.b32.xlu0 %v1901_v18, %s4111_s7 }
 0xd20   :  { %v1832_v26 = vpack.c.bf16 %v1824_v21, %v1824_v21 }
 0xd21   :  { %v1838_v13 = vsel %vm422_vm0, %v1830_v23, 0  ;;  %v1905_v27 = vunpack.c.l.b16 %v1830_v23 }
 0xd22   :  { %v1883_v28 = vsel %vm472_vm1, %v1832_v26, 0  ;;  %1847 = vmatpush.bf16.xpose.msra.mxu0 %v1838_v13  ;;  %v1955_v43 = vunpack.c.l.b16 %v1832_v26  ;;  %v4503_v13 = vld [vmem:[#allocation8 + $0x58] sm:$0xff] }
 0xd23   :  { %v4474_v29 = vpack.c.b16 %v1905_v27, %v1905_v27  ;;  %2000 = vmatpush.bf16.msra.mxu3 %v4503_v13 }
 0xd24   :  { %v4490_v44 = vpack.c.b16 %v1955_v43, %v1955_v43  ;;  %v1811_v43 = vpop.f32.mrf.mxu2 }
 0xd25   :  { %2037 = vrot.lane.b32.xlu1 %v4474_v29, %s4096_s20  ;;  %1907 = vrot.lane.b32.xlu2 %v4474_v29, %s4111_s7 }
 0xd29   :  { %3408 = vmatmul.msk.bf16.vlgmr.msra.gmra.mxu0 %vm422_vm0, %v1828_v10 }
 0xd2a   :  { %1892 = vmatpush.bf16.msrb.mxu0 %v1883_v28 }
 0xd2d   :  { %2035 = vrot.lane.b32.xlu2 %v1901_v18, %s4096_s20 }
 0xd7f   :  { %v1908_v11 = vpop.permute.xlu2 %1907 }
 0xd80   :  { %v1913_v12 = vsel %vm422_vm0, %v1908_v11, 0 }
 0xd81   :  { %1922 = vmatpush.bf16.xpose.msra.mxu1 %v1913_v12  ;;  %v4506_v12 = vld [vmem:[#allocation8 + $0x50] sm:$0xff] }
 0xd82   :  { %2001 = vmatpush.bf16.msra.mxu3 %v4506_v12 }
 0xd87   :  { %v2036_v63 = vpop.permute.xlu2 %2035 }
 0xd91   :  { %v1903_v49 = vpop.permute.xlu0 %1902 }
 0xd92   :  { %3410 = vmatmul.msk.bf16.vlgmr.msra.gmra.mxu1 %vm422_vm0, %v1903_v49 }
 0xd97   :  { %v2038_v31 = vpop.permute.xlu1 %2037 }
 0xd98   :  { %v2043_v33 = vsel %vm422_vm0, %v2038_v31, 0 }
 0xd99   :  { %2052 = vmatpush.bf16.xpose.msrb.mxu1 %v2043_v33  ;;  %v4508_v33 = vld [vmem:[#allocation8 + $0x68] sm:$0xff] }
 0xd9a   :  { %2127 = vmatpush.bf16.msrb.mxu3 %v4508_v33 }
 0xda2   :  { %3430 = vmatmul.msk.bf16.vlgmr.msrb.gmra.mxu1 %vm422_vm0, %v2036_v63 }
 0xda6   :  { %v1849_v35 = vpop.f32.mrf.mxu0 }
 0xda7   :  { %v1853_v52 = vmul.f32 0.17677669, %v1849_v35 }
 0xda9   :  { %v1854_v53 = vsel %vm443_vm2, %v1853_v52, -inf }
 0xdae   :  { %v1851_v36 = vpop.f32.mrf.mxu0 }
 0xe0f   :  { %v1924_v38 = vpop.f32.mrf.mxu1 }
 0xe10   :  { %v1928_v39 = vmul.f32 0.17677669, %v1924_v38 }
 0xe12   :  { %v1929_v22 = vsel %vm443_vm2, %v1928_v39, -inf }
 0xe13   :  { %1930 = vmax.xlane.f32.xlu0 %v1929_v22 }
 0xe17   :  { %v1926_v40 = vpop.f32.mrf.mxu1 }
 0xe1f   :  { %v2054_v25 = vpop.f32.mrf.mxu1 }
 0xe20   :  { %v2058_v41 = vmul.f32 0.17677669, %v2054_v25 }
 0xe22   :  { %v2059_v15 = vsel %vm443_vm2, %v2058_v41, -inf }
 0xe23   :  { %2060 = vmax.xlane.f32.xlu1 %v2059_v15  ;;  %v3684_v15 = vld [vmem:[#allocation8 + $0x48] sm:$0xff] }
 0xe24   :  { %2028 = vmatpush.bf16.msra.mxu0 %v3684_v15 }
 0xe27   :  { %v2056_v42 = vpop.f32.mrf.mxu1 }
 0xe28   :  { %v4516_v42 = vld [vmem:[#allocation8 + $0x40] sm:$0xff] }
 0xe29   :  { %2029 = vmatpush.bf16.msra.mxu0 %v4516_v42 }
 0xe3c   :  { %2084 = vrot.lane.b32.xlu1 %v4490_v44, %s4096_s20 }
 0xe86   :  { %v1931_v46 = vpop.xlane.xlu0 %1930 }
 0xe87   :  { %v1932_v1 = vsub.f32 %v1928_v39, %v1931_v46  ;;  %v1812_v46 = vadd.f32 %v1811_v43, %v1653_v14 }
 0xe89   :  { %v1933_v3 = vmul.f32 1.442695, %v1932_v1  ;;  %v4521_v1 = vpack.c.bf16 %v1812_v46, %v1812_v46 }
 0xe8b   :  { %3800 = vpow2.f32 %v1933_v3 }
 0xe91   :  { %v3801_v48 = vpop.eup %3800 }
 0xe92   :  { %v1935_v32 = vsel %vm443_vm2, %v3801_v48, 0.0 }
 0xe93   :  { %1936 = vadd.xlane.f32.xlu2 %v1935_v32 }
 0xe96   :  { %v2061_v9 = vpop.xlane.xlu1 %2060 }
 0xe97   :  { %v2062_v47 = vsub.f32 %v2058_v41, %v2061_v9  ;;  %v3687_v41 = vld [vmem:[#allocation8 + $0x60] sm:$0xff] }
 0xe98   :  { %2128 = vmatpush.bf16.msrb.mxu3 %v3687_v41 }
 0xe99   :  { %v2063_v50 = vmul.f32 1.442695, %v2062_v47 }
 0xe9b   :  { %3802 = vpow2.f32 %v2063_v50 }
 0xea1   :  { %v3803_v51 = vpop.eup %3802 }
 0xea2   :  { %v2065_v34 = vsel %vm443_vm2, %v3803_v51, 0.0 }
 0xea3   :  { %2066 = vadd.xlane.f32.xlu0 %v2065_v34 }
 0xeab   :  { %1957 = vrot.lane.b32.xlu2 %v4490_v44, %s4111_s7  ;;  %1855 = vmax.xlane.f32.xlu0 %v1854_v53 }
 0xeae   :  { %v2085_v57 = vpop.permute.xlu1 %2084 }
 0xeaf   :  { %v2090_v0 = vsel %vm472_vm1, %v2085_v57, 0 }
 0xeb3   :  { %2135 = vrot.lane.b32.xlu2 %v1901_v18, %s4112_s12 }
 0xf06   :  { %v1937_v54 = vpop.xlane.xlu2 %1936 }
 0xf07   :  { %3804 = vrcp.f32 %v1937_v54  ;;  %v1949_v2 = vand.u32 2147483648, %v1937_v54  ;;  %v1947_v24 = vand.u32 2147483647, %v1937_v54  ;;  %vm1943_vm10 = vweird.f32 %v1937_v54 }
 0xf09   :  { %v1950_v30 = vor.u32 1.1754944e-38, %v1949_v2  ;;  %vm1948_vm12 = vcmp.eq.f32.partialorder %v1947_v24, 8.507059e+37  ;;  %v1798_v24 = vadd.f32 %v4486_v37, %v1652_v7 }
 0xf0d   :  { %v3805_v55 = vpop.eup %3804 }
 0xf0e   :  { %v1939_v58 = vmul.f32 %v3805_v55, %v1937_v54  ;;  %v1958_v61 = vpop.permute.xlu2 %1957  ;;  %vm1944_vm9 = vweird.f32 %v3805_v55 }
 0xf0f   :  { %v1963_v62 = vsel %vm472_vm1, %v1958_v61, 0  ;;  %vm1945_vm11 = vmor %vm1943_vm10, %vm1944_vm9 }
 0xf10   :  { %v1940_v56 = vsub.f32 1.0, %v1939_v58  ;;  %1972 = vmatpush.bf16.msra.mxu2 %v1963_v62 }
 0xf12   :  { %v1941_v59 = vmul.f32 %v3805_v55, %v1940_v56 }
 0xf14   :  { %2099 = vmatpush.bf16.msrb.mxu2 %v2090_v0  ;;  %v1942_v8 = vadd.f32 %v3805_v55, %v1941_v59 }
 0xf16   :  { %v1946_v10 = vsel %vm1945_vm11, %v3805_v55, %v1942_v8  ;;  %v2067_v17 = vpop.xlane.xlu0 %2066  ;;  %v1829_v8 = vpack.c.bf16 %v1798_v24, %v1798_v24 }
 0xf17   :  { %v1951_v60 = vsel %vm1948_vm12, %v1950_v30, %v1946_v10  ;;  %3806 = vrcp.f32 %v2067_v17  ;;  %v2079_v28 = vand.u32 2147483648, %v2067_v17  ;;  %v2077_v31 = vand.u32 2147483647, %v2067_v17  ;;  %v1825_v30 = vpop.f32.mrf.mxu3 }
 0xf18   :  { %v1952_v18 = vmul.f32 %v3801_v48, %v1951_v60  ;;  %vm2073_vm14 = vweird.f32 %v2067_v17 }
 0xf19   :  { %v2080_v35 = vor.u32 1.1754944e-38, %v2079_v28  ;;  %vm2078_vm3 = vcmp.eq.f32.partialorder %v2077_v31, 8.507059e+37 }
 0xf1a   :  { %v1953_v19 = vpack.c.bf16 %v1952_v18, %v1952_v18 }
 0xf1c   :  { %3411 = vmatmul.msk.bf16.vlgmr.msra.gmra.mxu2 %vm443_vm2, %v1953_v19 }
 0xf1d   :  { %v3807_v20 = vpop.eup %3806 }
 0xf1e   :  { %v2069_v21 = vmul.f32 %v3807_v20, %v2067_v17  ;;  %v1856_v23 = vpop.xlane.xlu0 %1855  ;;  %vm2074_vm13 = vweird.f32 %v3807_v20  ;;  %v1826_v17 = vadd.f32 %v1825_v30, %v1654_v16 }
 0xf1f   :  { %v1857_v26 = vsub.f32 %v1853_v52, %v1856_v23  ;;  %vm2075_vm15 = vmor %vm2073_vm14, %vm2074_vm13 }
 0xf20   :  { %v2070_v27 = vsub.f32 1.0, %v2069_v21  ;;  %v4540_v18 = vpack.c.bf16 %v1826_v17, %v1826_v17 }
 0xf21   :  { %v1858_v11 = vmul.f32 1.442695, %v1857_v26  ;;  %v2136_v26 = vpop.permute.xlu2 %2135 }
 0xf22   :  { %v2071_v49 = vmul.f32 %v3807_v20, %v2070_v27  ;;  %v2284_v7 = vsel %vm472_vm1, %v4540_v18, 0 }
 0xf23   :  { %3808 = vpow2.f32 %v1858_v11 }
 0xf24   :  { %v2072_v63 = vadd.f32 %v3807_v20, %v2071_v49 }
 0xf26   :  { %v2076_v36 = vsel %vm2075_vm15, %v3807_v20, %v2072_v63 }
 0xf27   :  { %v2081_v38 = vsel %vm2078_vm3, %v2080_v35, %v2076_v36 }
 0xf28   :  { %v2082_v39 = vmul.f32 %v3803_v51, %v2081_v38 }
 0xf29   :  { %v3809_v22 = vpop.eup %3808 }
 0xf2a   :  { %v1860_v40 = vsel %vm443_vm2, %v3809_v22, 0.0  ;;  %v2083_v25 = vpack.c.bf16 %v2082_v39, %v2082_v39 }
 0xf2b   :  { %1861 = vadd.xlane.f32.xlu0 %v1860_v40 }
 0xf2c   :  { %3431 = vmatmul.msk.bf16.vlgmr.msrb.gmra.mxu2 %vm443_vm2, %v2083_v25  ;;  %v2306_v25 = vunpack.c.l.b16 %v4521_v1 }
 0xf3f   :  { %2137 = vrot.lane.b32.xlu0 %v4474_v29, %s4112_s12  ;;  %v2239_v29 = vsel %vm422_vm0, %v4521_v1, 0 }
 0xf9e   :  { %v1862_v3 = vpop.xlane.xlu0 %1861 }
 0xf9f   :  { %3810 = vrcp.f32 %v1862_v3  ;;  %v1974_v48 = vpop.f32.mrf.mxu2  ;;  %v1874_v34 = vand.u32 2147483648, %v1862_v3  ;;  %v1872_v14 = vand.u32 2147483647, %v1862_v3  ;;  %vm1868_vm5 = vweird.f32 %v1862_v3 }
 0xfa0   :  { %v1978_v32 = vpack.c.bf16 %v1974_v48, %v1974_v48 }
 0xfa1   :  { %v1875_v54 = vor.u32 1.1754944e-38, %v1874_v34  ;;  %vm1873_vm7 = vcmp.eq.f32.partialorder %v1872_v14, 8.507059e+37 }
 0xfa2   :  { %3420 = vmatmul.msk.bf16.vlgmr.msra.gmra.mxu3 %vm422_vm0, %v1978_v32 }
 0xfa3   :  { %2248 = vmatpush.bf16.xpose.msra.mxu3 %v2239_v29 }
 0xfa5   :  { %v3811_v9 = vpop.eup %3810 }
 0xfa6   :  { %v1864_v47 = vmul.f32 %v3811_v9, %v1862_v3  ;;  %vm1869_vm4 = vweird.f32 %v3811_v9 }
 0xfa7   :  { %v1976_v50 = vpop.f32.mrf.mxu2  ;;  %vm1870_vm6 = vmor %vm1868_vm5, %vm1869_vm4 }
 0xfa8   :  { %v1865_v51 = vsub.f32 1.0, %v1864_v47 }
 0xfaa   :  { %v1866_v52 = vmul.f32 %v3811_v9, %v1865_v51 }
 0xfac   :  { %v1867_v53 = vadd.f32 %v3811_v9, %v1866_v52 }
 0xfae   :  { %v1871_v55 = vsel %vm1870_vm6, %v3811_v9, %v1867_v53 }
 0xfaf   :  { %v1876_v57 = vsel %vm1873_vm7, %v1875_v54, %v1871_v55  ;;  %v2101_v58 = vpop.f32.mrf.mxu2 }
 0xfb0   :  { %v1877_v61 = vmul.f32 %v3809_v22, %v1876_v57  ;;  %v2105_v62 = vpack.c.bf16 %v2101_v58, %v2101_v58  ;;  %v2301_v22 = vunpack.c.l.b16 %v1829_v8 }
 0xfb1   :  { %v2138_v0 = vpop.permute.xlu0 %2137 }
 0xfb2   :  { %v2143_v56 = vsel %vm422_vm0, %v2138_v0, 0  ;;  %3440 = vmatmul.msk.bf16.vlgmr.msrb.gmra.mxu3 %vm422_vm0, %v2105_v62  ;;  %v1878_v2 = vpack.c.bf16 %v1877_v61, %v1877_v61  ;;  %v2302_v40 = vpack.c.b16 %v2301_v22, %v2301_v22 }
 0xfb3   :  { %2389 = vmatpush.bf16.msrb.mxu3 %v4503_v13 }
 0xfb4   :  { %3409 = vmatmul.msk.bf16.vlgmr.msrb.gmra.mxu0 %vm443_vm2, %v1878_v2 }
 0xfb5   :  { %2152 = vmatpush.bf16.xpose.msrb.mxu0 %v2143_v56 }
 0xfb7   :  { %v2103_v59 = vpop.f32.mrf.mxu2  ;;  %2390 = vmatpush.bf16.msrb.mxu3 %v4506_v12 }
 0xfc2   :  { %3452 = vmatmul.msk.bf16.vlgmr.msra.gmra.mxu3 %vm422_vm0, %v1829_v8 }
 0xfc3   :  { %2492 = vmatpush.bf16.msra.mxu3 %v4508_v33 }
 0xfc7   :  { %2493 = vmatpush.bf16.msra.mxu3 %v3687_v41  ;;  %v2307_v41 = vpack.c.b16 %v2306_v25, %v2306_v25 }
0x1025   :  { %v4536_v10 = vpop.f32.mrf.mxu3 }
0x102d   :  { %v2005_v60 = vpop.f32.mrf.mxu3 }
0x1031   :  { %v1894_v19 = vpop.f32.mrf.mxu0 }
0x1032   :  { %v1898_v20 = vpack.c.bf16 %v1894_v19, %v1894_v19  ;;  %v4567_v19 = vld [vmem:[#allocation8 + $0x78] sm:$0xff] }
0x1033   :  { %2227 = vmatpush.bf16.msra.mxu2 %v4567_v19 }
0x1034   :  { %3429 = vmatmul.msk.bf16.vlgmr.msra.gmra.mxu0 %vm422_vm0, %v1898_v20 }
0x1035   :  { %2293 = vmatpush.bf16.msra.mxu0 %v2284_v7  ;;  %v4545_v37 = vpop.f32.mrf.mxu3 }
0x1039   :  { %v1896_v21 = vpop.f32.mrf.mxu0 }
0x103d   :  { %v2132_v23 = vpop.f32.mrf.mxu3 }
0x1044   :  { %3441 = vmatmul.msk.bf16.vlgmr.msrb.gmra.mxu0 %vm422_vm0, %v2136_v26 }
0x1045   :  { %v2250_v6 = vpop.f32.mrf.mxu3  ;;  %2405 = vmatpush.bf16.msrb.mxu0 %v3684_v15 }
0x1046   :  { %v2254_v16 = vmul.f32 0.17677669, %v2250_v6 }
0x1048   :  { %v2255_v13 = vsel %vm443_vm2, %v2254_v16, -inf }
0x1049   :  { %2256 = vmax.xlane.f32.xlu1 %v2255_v13  ;;  %2406 = vmatpush.bf16.msrb.mxu0 %v4516_v42 }
0x104d   :  { %v2252_v27 = vpop.f32.mrf.mxu3 }
0x10b1   :  { %v4550_v28 = vpop.f32.mrf.mxu0 }
0x10b9   :  { %v2033_v11 = vpop.f32.mrf.mxu0 }
0x10bc   :  { %v2257_v12 = vpop.xlane.xlu1 %2256 }
0x10bd   :  { %v2258_v49 = vsub.f32 %v2254_v16, %v2257_v12 }
0x10bf   :  { %v2259_v31 = vmul.f32 1.442695, %v2258_v49 }
0x10c1   :  { %3812 = vpow2.f32 %v2259_v31  ;;  %v2154_v33 = vpop.f32.mrf.mxu0  ;;  %v4577_v31 = vld [vmem:[#allocation8 + $0x70] sm:$0xff] }
0x10c2   :  { %v2158_v63 = vmul.f32 0.17677669, %v2154_v33  ;;  %2228 = vmatpush.bf16.msra.mxu2 %v4577_v31 }
0x10c4   :  { %v2159_v35 = vsel %vm443_vm2, %v2158_v63, -inf }
0x10c5   :  { %2160 = vmax.xlane.f32.xlu0 %v2159_v35 }
0x10c7   :  { %v3813_v36 = vpop.eup %3812 }
0x10c8   :  { %v2261_v38 = vsel %vm443_vm2, %v3813_v36, 0.0 }
0x10c9   :  { %2262 = vadd.xlane.f32.xlu2 %v2261_v38  ;;  %v2156_v39 = vpop.f32.mrf.mxu0 }
0x10d9   :  { %2303 = vrot.lane.b32.xlu0 %v2302_v40, %s4111_s7 }
0x10e1   :  { %2184 = vrot.lane.b32.xlu2 %v4490_v44, %s4112_s12  ;;  %2412 = vrot.lane.b32.xlu0 %v2302_v40, %s4096_s20 }
0x10e9   :  { %2414 = vrot.lane.b32.xlu2 %v2307_v41, %s4096_s20 }
0x10f1   :  { %2500 = vrot.lane.b32.xlu2 %v2302_v40, %s4112_s12 }
0x1138   :  { %v2161_v15 = vpop.xlane.xlu0 %2160 }
0x1139   :  { %v2162_v42 = vsub.f32 %v2158_v63, %v2161_v15 }
0x113b   :  { %v2163_v43 = vmul.f32 1.442695, %v2162_v42 }
0x113c   :  { %v2263_v46 = vpop.xlane.xlu2 %2262 }
0x113d   :  { %3814 = vpow2.f32 %v2163_v43  ;;  %v2275_v47 = vand.u32 2147483648, %v2263_v46  ;;  %v2273_v51 = vand.u32 2147483647, %v2263_v46  ;;  %vm2269_vm9 = vweird.f32 %v2263_v46 }
0x113e   :  { %3816 = vrcp.f32 %v2263_v46 }
0x113f   :  { %v2276_v52 = vor.u32 1.1754944e-38, %v2275_v47  ;;  %vm2274_vm11 = vcmp.eq.f32.partialorder %v2273_v51, 8.507059e+37  ;;  %v4594_v47 = vld [vmem:[%s4663_s4 + $0x1] ss:$0 sm:$0xff] }
0x1143   :  { %v3815_v3 = vpop.eup %3814 }
0x1144   :  { %v3817_v48 = vpop.eup %3816  ;;  %v2185_v32 = vpop.permute.xlu2 %2184  ;;  %v2165_v44 = vsel %vm443_vm2, %v3815_v3, 0.0 }
0x1145   :  { %v2265_v29 = vmul.f32 %v3817_v48, %v2263_v46  ;;  %v2190_v9 = vsel %vm472_vm1, %v2185_v32, 0  ;;  %2166 = vadd.xlane.f32.xlu1 %v2165_v44  ;;  %vm2270_vm8 = vweird.f32 %v3817_v48  ;;  %v2356_v44 = vunpack.c.l.b16 %v4540_v18 }
0x1146   :  { %2199 = vmatpush.bf16.msra.mxu1 %v2190_v9  ;;  %vm2271_vm10 = vmor %vm2269_vm9, %vm2270_vm8  ;;  %v2032_v9 = vadd.f32 %v4550_v28, %v4536_v10 }
0x1147   :  { %v2266_v1 = vsub.f32 1.0, %v2265_v29  ;;  %v2357_v29 = vpack.c.b16 %v2356_v44, %v2356_v44 }
0x1149   :  { %v2267_v50 = vmul.f32 %v3817_v48, %v2266_v1  ;;  %v2134_v1 = vadd.f32 %v4545_v37, %v2032_v9 }
0x114b   :  { %v2268_v34 = vadd.f32 %v3817_v48, %v2267_v50  ;;  %v2304_v11 = vpop.permute.xlu0 %2303 }
0x114c   :  { %v2415_v20 = vpop.permute.xlu2 %2414 }
0x114d   :  { %v2272_v14 = vsel %vm2271_vm10, %v3817_v48, %v2268_v34  ;;  %v2420_v6 = vsel %vm422_vm0, %v2415_v20, 0 }
0x114e   :  { %v2277_v53 = vsel %vm2274_vm11, %v2276_v52, %v2272_v14 }
0x114f   :  { %v2278_v54 = vmul.f32 %v3813_v36, %v2277_v53 }
0x1151   :  { %v2279_v55 = vpack.c.bf16 %v2278_v54, %v2278_v54 }
0x1153   :  { %3453 = vmatmul.msk.bf16.vlgmr.msra.gmra.mxu0 %vm443_vm2, %v2279_v55  ;;  %v2413_v49 = vpop.permute.xlu0 %2412 }
0x1154   :  { %v2501_v12 = vpop.permute.xlu2 %2500 }
0x115e   :  { %2308 = vrot.lane.b32.xlu1 %v2307_v41, %s4111_s7 }
0x1166   :  { %2502 = vrot.lane.b32.xlu1 %v2307_v41, %s4112_s12 }
0x11b8   :  { %v2167_v57 = vpop.xlane.xlu1 %2166 }
0x11b9   :  { %3818 = vrcp.f32 %v2167_v57  ;;  %v2179_v0 = vand.u32 2147483648, %v2167_v57  ;;  %v2177_v2 = vand.u32 2147483647, %v2167_v57  ;;  %vm2173_vm13 = vweird.f32 %v2167_v57 }
0x11bb   :  { %v2180_v24 = vor.u32 1.1754944e-38, %v2179_v0  ;;  %vm2178_vm15 = vcmp.eq.f32.partialorder %v2177_v2, 8.507059e+37 }
0x11bf   :  { %v3819_v58 = vpop.eup %3818 }
0x11c0   :  { %v2169_v61 = vmul.f32 %v3819_v58, %v2167_v57  ;;  %vm2174_vm12 = vweird.f32 %v3819_v58 }
0x11c1   :  { %vm2175_vm14 = vmor %vm2173_vm13, %vm2174_vm12 }
0x11c2   :  { %v2170_v62 = vsub.f32 1.0, %v2169_v61 }
0x11c4   :  { %v2171_v56 = vmul.f32 %v3819_v58, %v2170_v62 }
0x11c6   :  { %v2172_v59 = vadd.f32 %v3819_v58, %v2171_v56 }
0x11c8   :  { %v2176_v8 = vsel %vm2175_vm14, %v3819_v58, %v2172_v59 }
0x11c9   :  { %v2181_v30 = vsel %vm2178_vm15, %v2180_v24, %v2176_v8 }
0x11ca   :  { %v2182_v17 = vmul.f32 %v3815_v3, %v2181_v30 }
0x11cc   :  { %v2183_v60 = vpack.c.bf16 %v2182_v17, %v2182_v17 }
0x11ce   :  { %3442 = vmatmul.msk.bf16.vlgmr.msra.gmra.mxu1 %vm443_vm2, %v2183_v60 }
0x11d0   :  { %v2295_v7 = vpop.f32.mrf.mxu0  ;;  %v2309_v21 = vpop.permute.xlu1 %2308 }
0x11d1   :  { %v2299_v23 = vpack.c.bf16 %v2295_v7, %v2295_v7  ;;  %v2314_v26 = vsel %vm422_vm0, %v2309_v21, 0 }
0x11d2   :  { %2323 = vmatpush.bf16.xpose.msrb.mxu1 %v2314_v26 }
0x11d3   :  { %3457 = vmatmul.msk.bf16.vlgmr.msrb.gmra.mxu0 %vm422_vm0, %v2299_v23 }
0x11d8   :  { %v2297_v16 = vpop.f32.mrf.mxu0  ;;  %v2503_v13 = vpop.permute.xlu1 %2502 }
0x11d9   :  { %v2508_v27 = vsel %vm422_vm0, %v2503_v13, 0 }
0x11da   :  { %2429 = vmatpush.bf16.xpose.msra.mxu1 %v2420_v6  ;;  %2517 = vmatpush.bf16.xpose.msra.mxu0 %v2508_v27 }
0x11de   :  { %3454 = vmatmul.msk.bf16.vlgmr.msrb.gmra.mxu1 %vm422_vm0, %v2304_v11 }
0x11e3   :  { %3461 = vmatmul.msk.bf16.vlgmr.msra.gmra.mxu0 %vm422_vm0, %v2501_v12 }
0x11ee   :  { %3458 = vmatmul.msk.bf16.vlgmr.msra.gmra.mxu1 %vm422_vm0, %v2413_v49 }
0x124b   :  { %v2201_v33 = vpop.f32.mrf.mxu1 }
0x124c   :  { %v2205_v63 = vpack.c.bf16 %v2201_v33, %v2201_v33 }
0x124e   :  { %3451 = vmatmul.msk.bf16.vlgmr.msra.gmra.mxu2 %vm422_vm0, %v2205_v63 }
0x1250   :  { %v4581_v35 = vpop.f32.mrf.mxu0 }
0x1253   :  { %v2203_v36 = vpop.f32.mrf.mxu1 }
0x1258   :  { %v2410_v38 = vpop.f32.mrf.mxu0 }
0x125b   :  { %v2325_v39 = vpop.f32.mrf.mxu1 }
0x125c   :  { %v2329_v22 = vmul.f32 0.17677669, %v2325_v39 }
0x125e   :  { %v2330_v40 = vsel %vm443_vm2, %v2329_v22, -inf }
0x125f   :  { %2331 = vmax.xlane.f32.xlu0 %v2330_v40 }
0x1260   :  { %v2519_v25 = vpop.f32.mrf.mxu0 }
0x1261   :  { %v2523_v41 = vmul.f32 0.17677669, %v2519_v25 }
0x1263   :  { %v2327_v15 = vpop.f32.mrf.mxu1  ;;  %v2524_v42 = vsel %vm443_vm2, %v2523_v41, -inf }
0x1264   :  { %2525 = vmax.xlane.f32.xlu2 %v2524_v42 }
0x1268   :  { %v2521_v43 = vpop.f32.mrf.mxu0 }
0x126b   :  { %v2431_v46 = vpop.f32.mrf.mxu1 }
0x126c   :  { %v2435_v3 = vmul.f32 0.17677669, %v2431_v46 }
0x126e   :  { %v2436_v48 = vsel %vm443_vm2, %v2435_v3, -inf }
0x126f   :  { %2437 = vmax.xlane.f32.xlu1 %v2436_v48 }
0x1273   :  { %v2433_v32 = vpop.f32.mrf.mxu1 }
0x127c   :  { %2358 = vrot.lane.b32.xlu2 %v2357_v29, %s4111_s7 }
0x12d1   :  { %v2230_v50 = vpop.f32.mrf.mxu2 }
0x12d2   :  { %v2234_v51 = vadd.f32 %v2230_v50, %v2134_v1  ;;  %v2332_v34 = vpop.xlane.xlu0 %2331 }
0x12d3   :  { %v2333_v52 = vsub.f32 %v2329_v22, %v2332_v34 }
0x12d4   :  { %v2591_v14 = vadd.f32 %v4594_v47, %v2234_v51 }
0x12d5   :  { %v2334_v18 = vmul.f32 1.442695, %v2333_v52 }
0x12d6   :  { %v2593_v53 = vadd.f32 %v2591_v14, %v4454_v4 }
0x12d7   :  { %3820 = vpow2.f32 %v2334_v18  ;;  %v2526_v54 = vpop.xlane.xlu2 %2525 }
0x12d8   :  { %v2527_v55 = vsub.f32 %v2523_v41, %v2526_v54  ;;  %2599 = vadd.xlane.f32.xlu2 %v2593_v53 }
0x12d9   :  { %v2232_v10 = vpop.f32.mrf.mxu2 }
0x12da   :  { %v2528_v37 = vmul.f32 1.442695, %v2527_v55 }
0x12dc   :  { %3822 = vpow2.f32 %v2528_v37 }
0x12dd   :  { %v3821_v28 = vpop.eup %3820 }
0x12de   :  { %v2336_v57 = vsel %vm443_vm2, %v3821_v28, 0.0 }
0x12df   :  { %v2359_v58 = vpop.permute.xlu2 %2358  ;;  %2337 = vadd.xlane.f32.xlu0 %v2336_v57 }
0x12e0   :  { %v2364_v61 = vsel %vm472_vm1, %v2359_v58, 0 }
0x12e1   :  { %2373 = vmatpush.bf16.msrb.mxu2 %v2364_v61 }
0x12e2   :  { %v2438_v62 = vpop.xlane.xlu1 %2437  ;;  %v3823_v0 = vpop.eup %3822 }
0x12e3   :  { %v2439_v56 = vsub.f32 %v2435_v3, %v2438_v62  ;;  %v2530_v4 = vsel %vm443_vm2, %v3823_v0, 0.0 }
0x12e5   :  { %v2440_v2 = vmul.f32 1.442695, %v2439_v56 }
0x12e7   :  { %3824 = vpow2.f32 %v2440_v2  ;;  %2531 = vadd.xlane.f32.xlu0 %v2530_v4 }
0x12ed   :  { %v4601_v59 = vpop.eup %3824 }
0x12ee   :  { %v2442_v24 = vsel %vm443_vm2, %v4601_v59, 0.0 }
0x12ef   :  { %2443 = vadd.xlane.f32.xlu1 %v2442_v24 }
0x12fb   :  { %2549 = vrot.lane.b32.xlu0 %v2357_v29, %s4112_s12 }
0x1308   :  { %2461 = vrot.lane.b32.xlu1 %v2357_v29, %s4096_s20 }
0x134b   :  { %v2600_v8 = vpop.xlane.xlu2 %2599 }
0x134c   :  { %v2603_v30 = vmul.f32 %v2600_v8, %v4400_v45 }
0x134e   :  { %v4608_v17 = vsub.f32 %v2593_v53, %v2603_v30 }
0x1350   :  { %v2607_v60 = vmul.f32 %v4608_v17, %v4608_v17 }
0x1352   :  { %v2338_v20 = vpop.xlane.xlu0 %2337  ;;  %2609 = vadd.xlane.f32.xlu0 %v2607_v60 }
0x1353   :  { %3826 = vrcp.f32 %v2338_v20  ;;  %v2350_v6 = vand.u32 2147483648, %v2338_v20  ;;  %v2348_v13 = vand.u32 2147483647, %v2338_v20  ;;  %vm2344_vm4 = vweird.f32 %v2338_v20 }
0x1355   :  { %v2351_v12 = vor.u32 1.1754944e-38, %v2350_v6  ;;  %vm2349_vm6 = vcmp.eq.f32.partialorder %v2348_v13, 8.507059e+37  ;;  %v3706_v6 = vld [vmem:[#allocation13 + $0xf4] sm:$0xf0] }
0x1359   :  { %v3827_v7 = vpop.eup %3826 }
0x135a   :  { %v2340_v21 = vmul.f32 %v3827_v7, %v2338_v20  ;;  %v2532_v23 = vpop.xlane.xlu0 %2531  ;;  %vm2345_vm3 = vweird.f32 %v3827_v7 }
0x135b   :  { %3828 = vrcp.f32 %v2532_v23  ;;  %vm2346_vm5 = vmor %vm2344_vm4, %vm2345_vm3  ;;  %v2544_v22 = vand.u32 2147483648, %v2532_v23  ;;  %v2542_v25 = vand.u32 2147483647, %v2532_v23  ;;  %vm2538_vm8 = vweird.f32 %v2532_v23 }
0x135c   :  { %v2341_v26 = vsub.f32 1.0, %v2340_v21 }
0x135d   :  { %v2545_v43 = vor.u32 1.1754944e-38, %v2544_v22  ;;  %vm2543_vm10 = vcmp.eq.f32.partialorder %v2542_v25, 8.507059e+37  ;;  %v3702_v25 = vld [vmem:[#allocation13 + $0xd4] sm:$0xf0] }
0x135e   :  { %v2342_v16 = vmul.f32 %v3827_v7, %v2341_v26  ;;  %v3523_v26 = vld [vmem:[#allocation13 + $0xf0] sm:$0xf] }
0x135f   :  { %v3524_v13 = vor.u32 %v3706_v6, %v3523_v26  ;;  %v3721_v26 = vld [vmem:[#allocation14 + $0xf0] sm:$0xff] }
0x1360   :  { %v2343_v27 = vadd.f32 %v3827_v7, %v2342_v16  ;;  %v3705_v16 = vld [vmem:[#allocation13 + $0xf4] sm:$0xf] }
0x1361   :  { %v3829_v11 = vpop.eup %3828  ;;  %v3713_v6 = vld [vmem:[#allocation14 + $0xb0] sm:$0xff] }
0x1362   :  { %v2347_v49 = vsel %vm2346_vm5, %v3827_v7, %v2343_v27  ;;  %v2534_v33 = vmul.f32 %v3829_v11, %v2532_v23  ;;  %v2444_v63 = vpop.xlane.xlu1 %2443  ;;  %vm2539_vm7 = vweird.f32 %v3829_v11  ;;  %v3525_v27 = vld [vmem:[#allocation13 + $0xf8] sm:$0xf0] }
0x1363   :  { %v2352_v36 = vsel %vm2349_vm6, %v2351_v12, %v2347_v49  ;;  %3830 = vrcp.f32 %v2444_v63  ;;  %vm2540_vm9 = vmor %vm2538_vm8, %vm2539_vm7  ;;  %v2456_v34 = vand.u32 2147483648, %v2444_v63  ;;  %vm2450_vm12 = vweird.f32 %v2444_v63 }
0x1364   :  { %v2353_v38 = vmul.f32 %v3821_v28, %v2352_v36  ;;  %v2535_v39 = vsub.f32 1.0, %v2534_v33  ;;  %v2454_v52 = vand.u32 2147483647, %v2444_v63  ;;  %v3704_v33 = vld [vmem:[#allocation13 + $0xe4] sm:$0xf0] }
0x1365   :  { %v2457_v18 = vor.u32 1.1754944e-38, %v2456_v34  ;;  %v3697_v34 = vld [vmem:[#allocation13 + $0xb4] sm:$0xf] }
0x1366   :  { %v2536_v40 = vmul.f32 %v3829_v11, %v2535_v39  ;;  %v2354_v41 = vpack.c.bf16 %v2353_v38, %v2353_v38  ;;  %vm2455_vm14 = vcmp.eq.f32.partialorder %v2454_v52, 8.507059e+37  ;;  %v3517_v38 = vld [vmem:[#allocation13 + $0xe8] sm:$0xf0] }
0x1368   :  { %v2537_v15 = vadd.f32 %v3829_v11, %v2536_v40  ;;  %3455 = vmatmul.msk.bf16.vlgmr.msrb.gmra.mxu2 %vm443_vm2, %v2354_v41  ;;  %v3507_v40 = vld [vmem:[#allocation13 + $0xd0] sm:$0xf]  ;;  %v3701_v41 = vld [vmem:[#allocation13 + $0xd4] sm:$0xf] }
0x1369   :  { %v3831_v42 = vpop.eup %3830 }
0x136a   :  { %v2541_v46 = vsel %vm2540_vm9, %v3829_v11, %v2537_v15  ;;  %v2446_v3 = vmul.f32 %v3831_v42, %v2444_v63  ;;  %vm2451_vm11 = vweird.f32 %v3831_v42  ;;  %v3528_v11 = vor.u32 %v3705_v16, %v3525_v27  ;;  %v3703_v63 = vld [vmem:[#allocation13 + $0xe4] sm:$0xf]  ;;  %v3720_v27 = vld [vmem:[#allocation14 + $0xe8] sm:$0xff] }
0x136b   :  { %v2546_v48 = vsel %vm2543_vm10, %v2545_v43, %v2541_v46  ;;  %vm2452_vm13 = vmor %vm2450_vm12, %vm2451_vm11  ;;  %v3520_v39 = vor.u32 %v3703_v63, %v3517_v38  ;;  %v3508_v15 = vor.u32 %v3702_v25, %v3507_v40 }
0x136c   :  { %v2547_v32 = vmul.f32 %v3823_v0, %v2546_v48  ;;  %v2447_v44 = vsub.f32 1.0, %v2446_v3  ;;  %2768 = vmatpush.bf16.msrb.mxu0 %v3528_v11  ;;  %v3499_v3 = vld [vmem:[#allocation13 + $0xc0] sm:$0xf]  ;;  %v3700_v48 = vld [vmem:[#allocation13 + $0xc4] sm:$0xf0] }
0x136d   :  { %v2550_v29 = vpop.permute.xlu0 %2549  ;;  %v3712_v11 = vld [vmem:[#allocation14 + $0xa8] sm:$0xff] }
0x136e   :  { %v2448_v9 = vmul.f32 %v3831_v42, %v2447_v44  ;;  %v2555_v1 = vsel %vm472_vm1, %v2550_v29, 0  ;;  %v2548_v50 = vpack.c.bf16 %v2547_v32, %v2547_v32  ;;  %v3699_v32 = vld [vmem:[#allocation13 + $0xc4] sm:$0xf]  ;;  %v3500_v44 = vor.u32 %v3700_v48, %v3499_v3  ;;  %v3501_v29 = vld [vmem:[#allocation13 + $0xc8] sm:$0xf0] }
0x136f   :  { %2564 = vmatpush.bf16.msrb.mxu1 %v2555_v1 }
0x1370   :  { %v2449_v51 = vadd.f32 %v3831_v42, %v2448_v9  ;;  %2769 = vmatpush.bf16.msrb.mxu0 %v3520_v39  ;;  %v3504_v9 = vor.u32 %v3699_v32, %v3501_v29  ;;  %v3711_v29 = vld [vmem:[#allocation14 + $0xa0] sm:$0xff] }
0x1372   :  { %3462 = vmatmul.msk.bf16.vlgmr.msrb.gmra.mxu1 %vm443_vm2, %v2548_v50  ;;  %v2453_v14 = vsel %vm2452_vm13, %v3831_v42, %v2449_v51  ;;  %v3509_v42 = vld [vmem:[#allocation13 + $0xd8] sm:$0xf0]  ;;  %v3491_v50 = vld [vmem:[#allocation13 + $0xb0] sm:$0xf]  ;;  %v3698_v51 = vld [vmem:[#allocation13 + $0xb4] sm:$0xf0] }
0x1373   :  { %v2458_v53 = vsel %vm2455_vm14, %v2457_v18, %v2453_v14  ;;  %v3512_v43 = vor.u32 %v3701_v41, %v3509_v42  ;;  %v3492_v52 = vor.u32 %v3698_v51, %v3491_v50  ;;  %v3493_v14 = vld [vmem:[#allocation13 + $0xb8] sm:$0xf0]  ;;  %v3709_v50 = vld [vmem:[#allocation14 + $0x90] sm:$0xff]  ;;  %v3715_v51 = vld [vmem:[#allocation14 + $0xc0] sm:$0xff] }
0x1374   :  { %v2459_v54 = vmul.f32 %v4601_v59, %v2458_v53  ;;  %v3496_v18 = vor.u32 %v3697_v34, %v3493_v14  ;;  %v3483_v53 = vld [vmem:[#allocation13 + $0xa0] sm:$0xf] }
0x1375   :  { %2770 = vmatpush.bf16.msrb.mxu0 %v3512_v43  ;;  %v3707_v34 = vld [vmem:[#allocation14 + $0x80] sm:$0xff] }
0x1376   :  { %v2460_v37 = vpack.c.bf16 %v2459_v54, %v2459_v54  ;;  %v3696_v54 = vld [vmem:[#allocation13 + $0xa4] sm:$0xf0] }
0x1379   :  { %2771 = vmatpush.bf16.msrb.mxu0 %v3504_v9  ;;  %v3717_v9 = vld [vmem:[#allocation14 + $0xd0] sm:$0xff] }
0x137a   :  { %v2462_v55 = vpop.permute.xlu1 %2461 }
0x137b   :  { %v2467_v10 = vsel %vm472_vm1, %v2462_v55, 0  ;;  %v3695_v55 = vld [vmem:[#allocation13 + $0xa4] sm:$0xf] }
0x137c   :  { %2476 = vmatpush.bf16.msra.mxu2 %v2467_v10  ;;  %v3484_v10 = vor.u32 %v3696_v54, %v3483_v53 }
0x137d   :  { %2772 = vmatpush.bf16.msrb.mxu0 %v3496_v18 }
0x137f   :  { %3459 = vmatmul.msk.bf16.vlgmr.msra.gmra.mxu2 %vm443_vm2, %v2460_v37  ;;  %v3485_v37 = vld [vmem:[#allocation13 + $0xa8] sm:$0xf0] }
0x1380   :  { %2580 = vmatpush.bf16.msrb.mxu2 %v4567_v19 }
0x1384   :  { %2581 = vmatpush.bf16.msrb.mxu2 %v4577_v31 }
0x13c5   :  { %v2610_v22 = vpop.xlane.xlu0 %2609 }
0x13c6   :  { %v2613_v46 = vmul.f32 %v2610_v22, %v4400_v45  ;;  %v3753_v22 = vld [vmem:[#allocation10 + $0x1] ss:$0 sm:$0xff] }
0x13c8   :  { %v4632_v1 = vadd.f32 1e-05, %v2613_v46 }
0x13ca   :  { %3832 = vrsqrt.f32 %v4632_v1  ;;  %vm2623_vm1 = vweird.f32 %v4632_v1 }
0x13eb   :  { %v2375_v28 = vpop.f32.mrf.mxu2 }
0x13ec   :  { %v2379_v57 = vpack.c.bf16 %v2375_v28, %v2375_v28  ;;  %v3488_v28 = vor.u32 %v3695_v55, %v3485_v37 }
0x13ee   :  { %3456 = vmatmul.msk.bf16.vlgmr.msrb.gmra.mxu3 %vm422_vm0, %v2379_v57  ;;  %2773 = vmatpush.bf16.msrb.mxu0 %v3488_v28  ;;  %v3475_v57 = vld [vmem:[#allocation13 + $0x90] sm:$0xf] }
0x13ef   :  { %v2566_v58 = vpop.f32.mrf.mxu1  ;;  %2754 = vmatpush.bf16.msrb.mxu3 %v3524_v13 }
0x13f0   :  { %v2570_v61 = vpack.c.bf16 %v2566_v58, %v2566_v58  ;;  %v3694_v58 = vld [vmem:[#allocation13 + $0x94] sm:$0xf0] }
0x13f2   :  { %3463 = vmatmul.msk.bf16.vlgmr.msrb.gmra.mxu2 %vm422_vm0, %v2570_v61  ;;  %v3693_v61 = vld [vmem:[#allocation13 + $0x94] sm:$0xf] }
0x13f3   :  { %v2377_v62 = vpop.f32.mrf.mxu2 }
0x13f4   :  { %v3476_v62 = vor.u32 %v3694_v58, %v3475_v57 }
0x13f7   :  { %v2568_v0 = vpop.f32.mrf.mxu1 }
0x13f8   :  { %v3477_v0 = vld [vmem:[#allocation13 + $0x98] sm:$0xf0] }
0x1402   :  { %v2478_v56 = vpop.f32.mrf.mxu2 }
0x1403   :  { %v2482_v2 = vpack.c.bf16 %v2478_v56, %v2478_v56  ;;  %v3833_v56 = vpop.eup %3832 }
0x1405   :  { %3460 = vmatmul.msk.bf16.vlgmr.msra.gmra.mxu3 %vm422_vm0, %v2482_v2  ;;  %v3480_v2 = vor.u32 %v3693_v61, %v3477_v0  ;;  %vm2624_vm0 = vweird.f32 %v3833_v56 }
0x1406   :  { %vm2625_vm2 = vmor %vm2623_vm1, %vm2624_vm0 }
0x1407   :  { %2774 = vmatpush.bf16.msrb.mxu0 %v3480_v2 }
0x140a   :  { %v2480_v4 = vpop.f32.mrf.mxu2 }
0x140b   :  { %v3467_v4 = vld [vmem:[#allocation13 + $0x80] sm:$0xf] }
0x1471   :  { %v2392_v19 = vpop.f32.mrf.mxu3 }
0x1472   :  { %v2409_v31 = vadd.f32 %v4581_v35, %v2392_v19  ;;  %v3692_v19 = vld [vmem:[#allocation13 + $0x84] sm:$0xf0] }
0x1475   :  { %v2583_v59 = vpop.f32.mrf.mxu2 }
0x1479   :  { %v2394_v24 = vpop.f32.mrf.mxu3 }
0x147a   :  { %v2618_v24 = vmul.f32 %v3833_v56, %v4632_v1  ;;  %v3716_v1 = vld [vmem:[#allocation14 + $0xc8] sm:$0xff] }
0x147d   :  { %v2585_v8 = vpop.f32.mrf.mxu2 }
0x147e   :  { %v3468_v8 = vor.u32 %v3692_v19, %v3467_v4  ;;  %v3755_v19 = vld [vmem:[%s4669_s10 + $0x1] ss:$0 sm:$0xff] }
0x1488   :  { %v2495_v30 = vpop.f32.mrf.mxu3 }
0x1489   :  { %v2499_v60 = vadd.f32 %v2495_v30, %v2409_v31  ;;  %v3469_v31 = vld [vmem:[#allocation13 + $0x88] sm:$0xf0] }
0x148b   :  { %v2587_v20 = vadd.f32 %v2583_v59, %v2499_v60  ;;  %v3691_v59 = vld [vmem:[#allocation13 + $0x84] sm:$0xf]  ;;  %v3722_v60 = vld [vmem:[#allocation14 + $0xf8] sm:$0xff] }
0x148c   :  { %v3472_v30 = vor.u32 %v3691_v59, %v3469_v31  ;;  %2936 = vmatpush.bf16.msra.mxu2 %v3722_v60 }
0x148d   :  { %v2592_v7 = vadd.f32 %v4594_v47, %v2587_v20  ;;  %v3714_v20 = vld [vmem:[#allocation14 + $0xb8] sm:$0xff] }
0x148e   :  { %2775 = vmatpush.bf16.msrb.mxu0 %v3472_v30  ;;  %2922 = vmatpush.bf16.msra.mxu1 %v3714_v20 }
0x148f   :  { %v2594_v21 = vadd.f32 %v2592_v7, %v4456_v5  ;;  %v3515_v5 = vld [vmem:[#allocation13 + $0xe0] sm:$0xf]  ;;  %v2619_v7 = vmul.f32 %v3833_v56, %v2618_v24 }
0x1490   :  { %v2497_v23 = vpop.f32.mrf.mxu3  ;;  %v3516_v36 = vor.u32 %v3704_v33, %v3515_v5  ;;  %2937 = vmatpush.bf16.msra.mxu2 %v3721_v26 }
0x1491   :  { %2601 = vadd.xlane.f32.xlu1 %v2594_v21  ;;  %v2620_v13 = vmul.f32 0.5, %v2619_v7 }
0x1492   :  { %2755 = vmatpush.bf16.msrb.mxu3 %v3516_v36  ;;  %2923 = vmatpush.bf16.msra.mxu1 %v3713_v6 }
0x1494   :  { %2938 = vmatpush.bf16.msra.mxu2 %v3720_v27 }
0x1496   :  { %2756 = vmatpush.bf16.msrb.mxu3 %v3508_v15  ;;  %2924 = vmatpush.bf16.msra.mxu1 %v3712_v11  ;;  %v3754_v15 = vld [vmem:[#allocation11 + $0x1] ss:$0 sm:$0xff] }
0x149a   :  { %2757 = vmatpush.bf16.msrb.mxu3 %v3500_v44  ;;  %v3718_v44 = vld [vmem:[#allocation14 + $0xd8] sm:$0xff]  ;;  %2925 = vmatpush.bf16.msra.mxu1 %v3711_v29 }
0x149e   :  { %2758 = vmatpush.bf16.msrb.mxu3 %v3492_v52  ;;  %v3464_v52 = vld [vmem:[%s4667_s8 + $0x2] sm:$0x3] }
0x149f   :  { %v2671_v18 = vperm.slane %v3464_v52, 1 }
0x14a2   :  { %2759 = vmatpush.bf16.msrb.mxu3 %v3484_v10  ;;  %v2670_v10 = vperm.slane %v3464_v52, 0 }
0x14a6   :  { %2760 = vmatpush.bf16.msrb.mxu3 %v3476_v62 }
0x14aa   :  { %2761 = vmatpush.bf16.msrb.mxu3 %v3468_v8 }
0x1504   :  { %v2602_v12 = vpop.xlane.xlu1 %2601 }
0x1505   :  { %v2604_v35 = vmul.f32 %v2602_v12, %v4400_v45  ;;  %v2621_v12 = vsub.f32 1.5, %v2620_v13 }
0x1507   :  { %v4627_v49 = vsub.f32 %v2594_v21, %v2604_v35  ;;  %v3719_v35 = vld [vmem:[#allocation14 + $0xe0] sm:$0xff]  ;;  %v2622_v5 = vmul.f32 %v3833_v56, %v2621_v12 }
0x1508   :  { %2939 = vmatpush.bf16.msra.mxu2 %v3719_v35 }
0x1509   :  { %v2608_v47 = vmul.f32 %v4627_v49, %v4627_v49  ;;  %v2626_v36 = vsel %vm2625_vm2, %v3833_v56, %v2622_v5 }
0x150a   :  { %v2637_v40 = vmul.f32 %v2626_v36, %v4608_v17  ;;  %v3710_v17 = vld [vmem:[#allocation14 + $0x98] sm:$0xff] }
0x150b   :  { %2611 = vadd.xlane.f32.xlu2 %v2608_v47  ;;  %2926 = vmatpush.bf16.msra.mxu1 %v3710_v17 }
0x150c   :  { %v2642_v42 = vmul.f32 %v3753_v22, %v2637_v40  ;;  %2940 = vmatpush.bf16.msra.mxu2 %v3718_v44 }
0x150e   :  { %v2647_v3 = vadd.f32 %v3754_v15, %v2642_v42 }
0x150f   :  { %2927 = vmatpush.bf16.msra.mxu1 %v3709_v50 }
0x1510   :  { %2941 = vmatpush.bf16.msra.mxu2 %v3717_v9 }
0x1514   :  { %2942 = vmatpush.bf16.msra.mxu2 %v3716_v1 }
0x1518   :  { %2943 = vmatpush.bf16.msra.mxu2 %v3715_v51 }
0x157e   :  { %v2612_v21 = vpop.xlane.xlu2 %2611 }
0x157f   :  { %v2614_v23 = vmul.f32 %v2612_v21, %v4400_v45 }
0x1581   :  { %v2616_v16 = vadd.f32 1e-05, %v2614_v23 }
0x1583   :  { %3834 = vrsqrt.f32 %v2616_v16  ;;  %vm2633_vm3 = vweird.f32 %v2616_v16 }
0x1589   :  { %v3835_v47 = vpop.eup %3834 }
0x158a   :  { %v2628_v33 = vmul.f32 %v3835_v47, %v2616_v16  ;;  %vm2634_vm15 = vweird.f32 %v3835_v47 }
0x158b   :  { %vm2635_vm4 = vmor %vm2633_vm3, %vm2634_vm15 }
0x158c   :  { %v2629_v63 = vmul.f32 %v3835_v47, %v2628_v33 }
0x158e   :  { %v2630_v38 = vmul.f32 0.5, %v2629_v63 }
0x1590   :  { %v2631_v39 = vsub.f32 1.5, %v2630_v38 }
0x1592   :  { %v2632_v25 = vmul.f32 %v3835_v47, %v2631_v39 }
0x1594   :  { %v2636_v41 = vsel %vm2635_vm4, %v3835_v47, %v2632_v25 }
0x1595   :  { %v2638_v43 = vmul.f32 %v2636_v41, %v4627_v49  ;;  %v3708_v49 = vld [vmem:[#allocation14 + $0x88] sm:$0xff] }
0x1596   :  { %2928 = vmatpush.bf16.msra.mxu1 %v3708_v49 }
0x1597   :  { %v2643_v46 = vmul.f32 %v3753_v22, %v2638_v43 }
0x1599   :  { %v2648_v48 = vadd.f32 %v3754_v15, %v2643_v46  ;;  %v3756_v46 = vld [vmem:[%s4670_s11 + $0x1] ss:$0 sm:$0xff]  ;;  %s3014_s11 = sshll.u32 %s4672_s13, 4  ;;  %s3015_s11 = int_to_ptr.hbm [resolvable:$true] %s3014_s11 }
0x159a   :  { %2929 = vmatpush.bf16.msra.mxu1 %v3707_v34 }
0x159b   :  { %v2649_v32 = vpack.c.bf16 %v2648_v48, %v2647_v3 }
0x159d   :  { %2762 = vmatmul.bf16.vlgmr.msrb.gmra.mxu3 %v2649_v32  ;;  %2776 = vmatmul.bf16.vlgmr.msrb.gmra.mxu0 %v2649_v32  ;;  %v3757_v32 = vld [vmem:[#allocation16 + $0x1] ss:$0 sm:$0xff] }
0x161a   :  { %v2777_v14 = vpop.f32.mrf.mxu0 }
0x161b   :  { %v2778_v54 = vadd.f32 %v2777_v14, %v2671_v18 }
0x161d   :  { %v2783_v28 = vmax.f32 %v2778_v54, 0.0 }
0x1620   :  { %v2763_v53 = vpop.f32.mrf.mxu3 }
0x1621   :  { %v2764_v58 = vadd.f32 %v2763_v53, %v2670_v10 }
0x1622   :  { %v2779_v55 = vpop.f32.mrf.mxu0 }
0x1623   :  { %v2780_v37 = vadd.f32 %v2779_v55, %v2671_v18  ;;  %v2782_v56 = vmax.f32 %v2764_v58, 0.0 }
0x1625   :  { %v2785_v57 = vmax.f32 %v2780_v37, 0.0 }
0x1627   :  { %v2787_v61 = vpack.c.bf16 %v2785_v57, %v2783_v28 }
0x1628   :  { %v2765_v62 = vpop.f32.mrf.mxu3 }
0x1629   :  { %v2766_v0 = vadd.f32 %v2765_v62, %v2670_v10  ;;  %2944 = vmatmul.bf16.vlgmr.msra.gmra.mxu2 %v2787_v61 }
0x162b   :  { %v2784_v2 = vmax.f32 %v2766_v0, 0.0 }
0x162d   :  { %v2786_v4 = vpack.c.bf16 %v2784_v2, %v2782_v56 }
0x162f   :  { %2930 = vmatmul.bf16.vlgmr.msra.gmra.mxu1 %v2786_v4 }
0x16ac   :  { %v2931_v59 = vpop.f32.mrf.mxu1  ;;  %v2945_v24 = vpop.f32.mrf.mxu2 }
0x16ad   :  { %v2932_v8 = vadd.f32 %v3755_v19, %v2931_v59 }
0x16af   :  { %v2946_v31 = vadd.f32 %v2945_v24, %v2932_v8 }
0x16b1   :  { %v2950_v30 = vadd.f32 %v2946_v31, %v2647_v3 }
0x16b3   :  { %2956 = vadd.xlane.f32.xlu1 %v2950_v30 }
0x16b4   :  { %v2933_v60 = vpop.f32.mrf.mxu1  ;;  %v2947_v7 = vpop.f32.mrf.mxu2 }
0x16b5   :  { %v2934_v20 = vadd.f32 %v3755_v19, %v2933_v60 }
0x16b7   :  { %v2948_v21 = vadd.f32 %v2947_v7, %v2934_v20 }
0x16b9   :  { %v2951_v23 = vadd.f32 %v2948_v21, %v2648_v48 }
0x16bb   :  { %2958 = vadd.xlane.f32.xlu2 %v2951_v23 }
0x1726   :  { %v2957_v26 = vpop.xlane.xlu1 %2956 }
0x1727   :  { %v2960_v6 = vmul.f32 %v2957_v26, %v4400_v45 }
0x1729   :  { %v2962_v16 = vsub.f32 %v2950_v30, %v2960_v6 }
0x172b   :  { %v2964_v13 = vmul.f32 %v2962_v16, %v2962_v16 }
0x172d   :  { %2966 = vadd.xlane.f32.xlu0 %v2964_v13 }
0x172e   :  { %v2959_v27 = vpop.xlane.xlu2 %2958 }
0x172f   :  { %v2961_v11 = vmul.f32 %v2959_v27, %v4400_v45 }
0x1731   :  { %v2963_v12 = vsub.f32 %v2951_v23, %v2961_v11 }
0x1733   :  { %v2965_v35 = vmul.f32 %v2963_v12, %v2963_v12 }
0x1735   :  { %2968 = vadd.xlane.f32.xlu1 %v2965_v35 }
0x17a0   :  { %v2967_v47 = vpop.xlane.xlu0 %2966 }
0x17a1   :  { %v2970_v5 = vmul.f32 %v2967_v47, %v4400_v45 }
0x17a3   :  { %v2972_v33 = vadd.f32 1e-05, %v2970_v5 }
0x17a5   :  { %3836 = vrsqrt.f32 %v2972_v33  ;;  %vm2980_vm6 = vweird.f32 %v2972_v33 }
0x17a8   :  { %v2969_v63 = vpop.xlane.xlu1 %2968 }
0x17a9   :  { %v2971_v36 = vmul.f32 %v2969_v63, %v4400_v45 }
0x17ab   :  { %v3837_v38 = vpop.eup %3836  ;;  %v2973_v39 = vadd.f32 1e-05, %v2971_v36 }
0x17ac   :  { %v2975_v22 = vmul.f32 %v3837_v38, %v2972_v33  ;;  %vm2981_vm5 = vweird.f32 %v3837_v38 }
0x17ad   :  { %3838 = vrsqrt.f32 %v2973_v39  ;;  %vm2982_vm7 = vmor %vm2980_vm6, %vm2981_vm5  ;;  %vm2990_vm9 = vweird.f32 %v2973_v39 }
0x17ae   :  { %v2976_v40 = vmul.f32 %v3837_v38, %v2975_v22 }
0x17b0   :  { %v2977_v25 = vmul.f32 0.5, %v2976_v40 }
0x17b2   :  { %v2978_v41 = vsub.f32 1.5, %v2977_v25 }
0x17b3   :  { %v3839_v15 = vpop.eup %3838 }
0x17b4   :  { %v2979_v42 = vmul.f32 %v3837_v38, %v2978_v41  ;;  %v2985_v43 = vmul.f32 %v3839_v15, %v2973_v39  ;;  %vm2991_vm8 = vweird.f32 %v3839_v15 }
0x17b5   :  { %vm2992_vm10 = vmor %vm2990_vm9, %vm2991_vm8 }
0x17b6   :  { %v2983_v3 = vsel %vm2982_vm7, %v3837_v38, %v2979_v42  ;;  %v2986_v48 = vmul.f32 %v3839_v15, %v2985_v43 }
0x17b7   :  { %v2994_v45 = vmul.f32 %v2983_v3, %v2962_v16 }
0x17b8   :  { %v2987_v44 = vmul.f32 0.5, %v2986_v48 }
0x17b9   :  { %v2999_v29 = vmul.f32 %v3756_v46, %v2994_v45 }
0x17ba   :  { %v2988_v9 = vsub.f32 1.5, %v2987_v44 }
0x17bb   :  { %v3004_v17 = vadd.f32 %v3757_v32, %v2999_v29 }
0x17bc   :  { %v2989_v1 = vmul.f32 %v3839_v15, %v2988_v9 }
0x17bd   :  { %3006 = vst [vmem:[#allocation17] sm:$0xff] %v3004_v17 }
0x17be   :  { %v2993_v50 = vsel %vm2992_vm10, %v3839_v15, %v2989_v1 }
0x17bf   :  { %v2995_v51 = vmul.f32 %v2993_v50, %v2963_v12 }
0x17c1   :  { %v3000_v49 = vmul.f32 %v3756_v46, %v2995_v51 }
0x17c3   :  { %v3005_v34 = vadd.f32 %v3757_v32, %v3000_v49 }
0x17c5   :  { %3007 = vst [vmem:[#allocation17 + $0x8] sm:$0xff] %v3005_v34 }
0x17c6   :  { %3020 = dma.vmem_to_hbm [thread:$0]  %s3013_s16, 256, %s3015_s11, [#allocation4], %s4103_s22, %s4103_s22, %s4104_s23  }
0x17c7   :  { %4090 = dma.done.wait [#allocation4], 256  }
0x17c8   :  { %4091 = vsyncadd [#allocation4], 4294967040 }
0x17c9   :  { %3025 = vsyncpa [#allocation3], 1 }
0x17ca   :  { %3026 = vsyncpa [#allocation6], 1 }
0x17cb   :  { %3027 = vsyncpa [#allocation9], 1 }
0x17cc   :  { %3028 = vsyncpa [#allocation12], 1 }
0x17cd   :  { %3029 = vsyncpa [#allocation15], 1 }
0x17ce   :  { %3030 = vsyncpa [#allocation4], 1 }

</bundles_post_ra>
